<compile_context>
chip_gen: v7x
topology: tpu7x:2x2x1
jax: 0.10.0
libtpu: 0.0.40
codegen_flags: <defaults>
</compile_context>

<pallas_src>
import jax
import jax.numpy as jnp
import numpy as np
from jax import lax
from jax.experimental import pallas as pl
from jax.experimental.pallas import tpu as pltpu


# ----------------------------------------------------------------------------
# Pallas kernels
# ----------------------------------------------------------------------------
def _conv_relu_pool_kernel(x_ref, w_ref, b_ref, o_ref):
    """Fused 3x3 'SAME' conv + bias + ReLU + 2x2 max-pool for one image.

    x_ref: (1, 2, Ho+1, L) bf16  -- even/odd padded rows, L = (W+2)*Cin lanes
    w_ref: (3, 2, L, N)    bf16  -- banded weights per (kh, out-column parity)
    b_ref: (1, N)          f32   -- bias tiled along lanes (N = Wo*Cout)
    o_ref: (Ho, N)         bf16  -- pooled activation, lane index = wo*Cout+co
    """
    ho = o_ref.shape[0]

    def branch(row_par, col_par):
        # conv output rows 2r+row_par, columns 2wo+col_par, pre-bias.
        acc = None
        for kh in range(3):
            pr = (row_par + kh) % 2           # parity of the padded input row
            off = (row_par + kh) // 2         # offset inside that parity band
            xs = x_ref[0, pr, off:off + ho, :]                  # (Ho, L)
            d = jnp.dot(xs, w_ref[kh, col_par],
                        preferred_element_type=jnp.float32)     # (Ho, N)
            acc = d if acc is None else acc + d
        return acc

    # relu/bias commute with the max, so pool first (fewer VPU ops).
    m = jnp.maximum(jnp.maximum(branch(0, 0), branch(0, 1)),
                    jnp.maximum(branch(1, 0), branch(1, 1)))
    o_ref[...] = jnp.maximum(m + b_ref[...], 0.0).astype(o_ref.dtype)


def _mlp_kernel(x_ref, w1_ref, b1_ref, w2_ref, b2_ref, o_ref):
    """Fused fc1 + ReLU + fc2 (fc2 output pre-padded to 128 lanes)."""
    h = jnp.dot(x_ref[...], w1_ref[...], preferred_element_type=jnp.float32)
    h = jnp.maximum(h + b1_ref[...], 0.0)
    o = jnp.dot(h.astype(jnp.bfloat16), w2_ref[...],
                preferred_element_type=jnp.float32)
    o_ref[...] = (o + b2_ref[...]).astype(o_ref.dtype)


# ----------------------------------------------------------------------------
# Wrapper-side parameter / layout plumbing (cheap XLA glue only)
# ----------------------------------------------------------------------------
def _build_banded_pool_weights(w_oihw, width):
    """(Cout,Cin,3,3) -> (3, 2, (W+2)*Cin, (W//2)*Cout) banded matmul weights.

    A[kh, p][win*Cin+ci, wo*Cout+co] = w[co, ci, kh, win-(2*wo+p)] when the kw
    offset win-(2*wo+p) is in {0,1,2}, else 0.  A padded input row band
    (lane index win*Cin+ci) times A[kh, p] yields the conv contribution of row
    shift kh for output columns of parity p, already laid out as wo*Cout+co.
    """
    cout, cin, _, _ = w_oihw.shape
    wo_n = width // 2
    wt = jnp.transpose(w_oihw, (2, 3, 1, 0))               # (kh, kw, Cin, Cout)
    win = jnp.arange(width + 2)
    wo = jnp.arange(wo_n)
    kw = jnp.arange(3)
    par = jnp.arange(2)
    sel = (win[None, None, :, None] ==
           (2 * wo[None, None, None, :] + par[None, :, None, None]
            + kw[:, None, None, None])).astype(jnp.float32)   # (3,2,W+2,Wo)
    a = jnp.einsum("kpiw,hkcd->hpicwd", sel, wt)           # (3,2,W+2,Cin,Wo,Cout)
    return a.reshape(3, 2, (width + 2) * cin, wo_n * cout)


def conv_relu_pool(x_nhwc, w_oihw, b):
    """One fused conv+relu+pool stage; input/output are NHWC activations."""
    B, H, W, Cin = x_nhwc.shape
    Cout = w_oihw.shape[0]
    Ho, Wo = H // 2, W // 2
    L = (W + 2) * Cin
    N = Wo * Cout

    # Pad once, flatten (W, C) into lanes, split rows into even/odd bands.
    xp = jnp.pad(x_nhwc, ((0, 0), (1, 1), (1, 1), (0, 0)))
    xp = xp.reshape(B, H + 2, L)
    x_eo = xp.reshape(B, Ho + 1, 2, L).transpose(0, 2, 1, 3).astype(jnp.bfloat16)

    wb = _build_banded_pool_weights(w_oihw, W).astype(jnp.bfloat16)  # (3,2,L,N)
    bl = jnp.tile(b.astype(jnp.float32), (Wo,)).reshape(1, N)        # (1, N)

    out = pl.pallas_call(
        _conv_relu_pool_kernel,
        out_shape=jax.ShapeDtypeStruct((B * Ho, N), jnp.bfloat16),
        grid_spec=pltpu.PrefetchScalarGridSpec(
            num_scalar_prefetch=0,
            grid=(B,),
            in_specs=[
                pl.BlockSpec((1, 2, Ho + 1, L), lambda bi: (bi, 0, 0, 0)),
                pl.BlockSpec((3, 2, L, N), lambda bi: (0, 0, 0, 0)),
                pl.BlockSpec((1, N), lambda bi: (0, 0)),
            ],
            out_specs=pl.BlockSpec((Ho, N), lambda bi: (bi, 0)),
        ),
        compiler_params=pltpu.CompilerParams(
            dimension_semantics=("parallel",)),
    )(x_eo, wb, bl)
    return out.reshape(B, Ho, Wo, Cout)        # pooled NHWC activation (bf16)


def mlp_head(x_nhwc, fc1_w, fc1_b, fc2_w, fc2_b):
    """Fused fc1+ReLU+fc2 on the flattened activations."""
    B, Ho, Wo, C = x_nhwc.shape
    K = Ho * Wo * C
    H1 = fc1_w.shape[0]
    NP = 128                                    # lane-dense padded fc2 width
    n_out = fc2_w.shape[0]

    x_flat = x_nhwc.reshape(B, K).astype(jnp.bfloat16)
    # Permute fc1 columns from PyTorch's NCHW flatten (c,h,w) to NHWC (h,w,c),
    # so no activation transpose is needed before the matmul.
    w1 = (fc1_w.reshape(H1, C, Ho, Wo).transpose(0, 2, 3, 1)
          .reshape(H1, K).T).astype(jnp.bfloat16)                 # (K, H1)
    b1 = fc1_b.reshape(1, H1).astype(jnp.float32)
    w2 = jnp.zeros((H1, NP), jnp.float32).at[:, :n_out].set(fc2_w.T)
    w2 = w2.astype(jnp.bfloat16)                                  # (H1, NP)
    b2 = jnp.zeros((1, NP), jnp.float32).at[:, :n_out].set(fc2_b[None, :])

    # TODO(synk): with batch=2 there is no useful parallel split for this tiny
    # fused FC tail, so it stays a single grid step (one kernel launch total).
    out = pl.pallas_call(
        _mlp_kernel,
        out_shape=jax.ShapeDtypeStruct((B, NP), jnp.float32),
        grid_spec=pltpu.PrefetchScalarGridSpec(
            num_scalar_prefetch=0,
            grid=(1,),
            in_specs=[
                pl.BlockSpec((B, K), lambda i: (0, 0)),
                pl.BlockSpec((K, H1), lambda i: (0, 0)),
                pl.BlockSpec((1, H1), lambda i: (0, 0)),
                pl.BlockSpec((H1, NP), lambda i: (0, 0)),
                pl.BlockSpec((1, NP), lambda i: (0, 0)),
            ],
            out_specs=pl.BlockSpec((B, NP), lambda i: (0, 0)),
        ),
        compiler_params=pltpu.CompilerParams(
            dimension_semantics=("arbitrary",)),
    )(x_flat, w1, b1, w2, b2)
    return out[:, :n_out]


# ----------------------------------------------------------------------------
# Full forward pass (BasicCNN semantics)
# ----------------------------------------------------------------------------
def basic_cnn_forward(params, x_nchw):
    x = jnp.transpose(x_nchw, (0, 2, 3, 1))                       # NCHW -> NHWC
    x = conv_relu_pool(x, params["conv1"]["w"], params["conv1"]["b"])  # (B,16,16,16)
    x = conv_relu_pool(x, params["conv2"]["w"], params["conv2"]["b"])  # (B,8,8,32)
    return mlp_head(x, params["fc1"]["w"], params["fc1"]["b"],
                    params["fc2"]["w"], params["fc2"]["b"])        # (B, 10) f32


# ----------------------------------------------------------------------------
# Deterministic parameter init (shapes match the PyTorch module)
# ----------------------------------------------------------------------------
def init_params(key):
    k = jax.random.split(key, 8)

    def conv_p(kw_, kb_, cin, cout):
        return dict(
            w=jax.random.normal(kw_, (cout, cin, 3, 3), jnp.float32)
              / np.sqrt(cin * 9.0),
            b=0.1 * jax.random.normal(kb_, (cout,), jnp.float32))

    def lin_p(kw_, kb_, din, dout):
        return dict(
            w=jax.random.normal(kw_, (dout, din), jnp.float32) / np.sqrt(din),
            b=0.1 * jax.random.normal(kb_, (dout,), jnp.float32))

    return dict(
        conv1=conv_p(k[0], k[1], 3, 16),
        conv2=conv_p(k[2], k[3], 16, 32),
        fc1=lin_p(k[4], k[5], 32 * 8 * 8, 128),
        fc2=lin_p(k[6], k[7], 128, 10))


# ----------------------------------------------------------------------------
# Pure-JAX f32 reference for the sanity check
# ----------------------------------------------------------------------------
def reference_forward(params, x):
    def conv_relu_pool_ref(x, w, b):
        y = lax.conv_general_dilated(
            x, w, window_strides=(1, 1), padding="SAME",
            dimension_numbers=("NCHW", "OIHW", "NCHW"), precision="highest")
        y = jnp.maximum(y + b[None, :, None, None], 0.0)
        B, C, H, W = y.shape
        return y.reshape(B, C, H // 2, 2, W // 2, 2).max(axis=(3, 5))

    x = conv_relu_pool_ref(x, params["conv1"]["w"], params["conv1"]["b"])
    x = conv_relu_pool_ref(x, params["conv2"]["w"], params["conv2"]["b"])
    x = x.reshape(x.shape[0], -1)
    x = jnp.maximum(jnp.dot(x, params["fc1"]["w"].T, precision="highest")
                    + params["fc1"]["b"], 0.0)
    return jnp.dot(x, params["fc2"]["w"].T, precision="highest") + params["fc2"]["b"]


if __name__ == "__main__":
    key = jax.random.PRNGKey(0)
    pkey, xkey = jax.random.split(key)
    params = init_params(pkey)
    x = jax.random.normal(xkey, (2, 3, 32, 32), jnp.float32)   # NCHW, CIFAR-sized

    out = jax.block_until_ready(jax.jit(basic_cnn_forward)(params, x))
    assert out.shape == (2, 10) and out.dtype == jnp.float32

    ref = jax.block_until_ready(reference_forward(params, x))
    np.testing.assert_allclose(np.asarray(out), np.asarray(ref),
                               rtol=5e-2, atol=5e-2)
    print("KERNEL_OK")
</pallas_src>

<mosaic_0001>
module attributes {stable_mosaic.version = 11 : i64} {
  func.func @_conv_relu_pool_kernel(%arg0: i32, %arg1: memref<1x2x17x102xbf16, #tpu.memory_space<vmem>>, %arg2: memref<3x2x102x256xbf16, #tpu.memory_space<vmem>>, %arg3: memref<1x256xf32, #tpu.memory_space<vmem>>, %arg4: memref<16x256xbf16, #tpu.memory_space<vmem>>) attributes {dimension_semantics = [#tpu.dimension_semantics<parallel>], iteration_bounds = array<i64: 2>, scalar_prefetch = 0 : i64, scratch_operands = 0 : i64, tpu.core_type = #tpu.core_type<tc>, window_params = [{transform_indices = @transform_0, window_bounds = array<i64: 1, 2, 17, 102>}, {pipeline_mode = #tpu.pipeline_mode<synchronous>, transform_indices = @transform_1, window_bounds = array<i64: 3, 2, 102, 256>}, {pipeline_mode = #tpu.pipeline_mode<synchronous>, transform_indices = @transform_2, window_bounds = array<i64: 1, 256>}, {transform_indices = @transform_3, window_bounds = array<i64: 16, 256>}]} {
    %c0 = arith.constant 0 : index
    %c0_0 = arith.constant 0 : index
    %c0_1 = arith.constant 0 : index
    %c0_2 = arith.constant 0 : index
    %0 = vector.load %arg1[%c0, %c0_0, %c0_1, %c0_2] : memref<1x2x17x102xbf16, #tpu.memory_space<vmem>>, vector<1x1x16x102xbf16>
    %1 = vector.shape_cast %0 : vector<1x1x16x102xbf16> to vector<16x102xbf16>
    %c0_3 = arith.constant 0 : index
    %c0_4 = arith.constant 0 : index
    %c0_5 = arith.constant 0 : index
    %c0_6 = arith.constant 0 : index
    %2 = vector.load %arg2[%c0_3, %c0_4, %c0_5, %c0_6] : memref<3x2x102x256xbf16, #tpu.memory_space<vmem>>, vector<1x1x102x256xbf16>
    %3 = vector.shape_cast %2 : vector<1x1x102x256xbf16> to vector<102x256xbf16>
    %cst = arith.constant dense<0.000000e+00> : vector<16x256xf32>
    %4 = tpu.matmul %1, %3, %cst {dimension_numbers = #tpu.dot_dimension_numbers<[1], [0], [0], [1], [0, 0, 1, 1], [], []>} : vector<16x102xbf16>, vector<102x256xbf16>, vector<16x256xf32> -> vector<16x256xf32>
    %c0_7 = arith.constant 0 : index
    %c1 = arith.constant 1 : index
    %c0_8 = arith.constant 0 : index
    %c0_9 = arith.constant 0 : index
    %5 = vector.load %arg1[%c0_7, %c1, %c0_8, %c0_9] : memref<1x2x17x102xbf16, #tpu.memory_space<vmem>>, vector<1x1x16x102xbf16>
    %6 = vector.shape_cast %5 : vector<1x1x16x102xbf16> to vector<16x102xbf16>
    %c1_10 = arith.constant 1 : index
    %c0_11 = arith.constant 0 : index
    %c0_12 = arith.constant 0 : index
    %c0_13 = arith.constant 0 : index
    %7 = vector.load %arg2[%c1_10, %c0_11, %c0_12, %c0_13] : memref<3x2x102x256xbf16, #tpu.memory_space<vmem>>, vector<1x1x102x256xbf16>
    %8 = vector.shape_cast %7 : vector<1x1x102x256xbf16> to vector<102x256xbf16>
    %cst_14 = arith.constant dense<0.000000e+00> : vector<16x256xf32>
    %9 = tpu.matmul %6, %8, %cst_14 {dimension_numbers = #tpu.dot_dimension_numbers<[1], [0], [0], [1], [0, 0, 1, 1], [], []>} : vector<16x102xbf16>, vector<102x256xbf16>, vector<16x256xf32> -> vector<16x256xf32>
    %10 = arith.addf %4, %9 : vector<16x256xf32>
    %c0_15 = arith.constant 0 : index
    %c0_16 = arith.constant 0 : index
    %c1_17 = arith.constant 1 : index
    %c0_18 = arith.constant 0 : index
    %11 = vector.load %arg1[%c0_15, %c0_16, %c1_17, %c0_18] : memref<1x2x17x102xbf16, #tpu.memory_space<vmem>>, vector<1x1x16x102xbf16>
    %12 = vector.shape_cast %11 : vector<1x1x16x102xbf16> to vector<16x102xbf16>
    %c2 = arith.constant 2 : index
    %c0_19 = arith.constant 0 : index
    %c0_20 = arith.constant 0 : index
    %c0_21 = arith.constant 0 : index
    %13 = vector.load %arg2[%c2, %c0_19, %c0_20, %c0_21] : memref<3x2x102x256xbf16, #tpu.memory_space<vmem>>, vector<1x1x102x256xbf16>
    %14 = vector.shape_cast %13 : vector<1x1x102x256xbf16> to vector<102x256xbf16>
    %cst_22 = arith.constant dense<0.000000e+00> : vector<16x256xf32>
    %15 = tpu.matmul %12, %14, %cst_22 {dimension_numbers = #tpu.dot_dimension_numbers<[1], [0], [0], [1], [0, 0, 1, 1], [], []>} : vector<16x102xbf16>, vector<102x256xbf16>, vector<16x256xf32> -> vector<16x256xf32>
    %16 = arith.addf %10, %15 : vector<16x256xf32>
    %c0_23 = arith.constant 0 : index
    %c0_24 = arith.constant 0 : index
    %c0_25 = arith.constant 0 : index
    %c0_26 = arith.constant 0 : index
    %17 = vector.load %arg1[%c0_23, %c0_24, %c0_25, %c0_26] : memref<1x2x17x102xbf16, #tpu.memory_space<vmem>>, vector<1x1x16x102xbf16>
    %18 = vector.shape_cast %17 : vector<1x1x16x102xbf16> to vector<16x102xbf16>
    %c0_27 = arith.constant 0 : index
    %c1_28 = arith.constant 1 : index
    %c0_29 = arith.constant 0 : index
    %c0_30 = arith.constant 0 : index
    %19 = vector.load %arg2[%c0_27, %c1_28, %c0_29, %c0_30] : memref<3x2x102x256xbf16, #tpu.memory_space<vmem>>, vector<1x1x102x256xbf16>
    %20 = vector.shape_cast %19 : vector<1x1x102x256xbf16> to vector<102x256xbf16>
    %cst_31 = arith.constant dense<0.000000e+00> : vector<16x256xf32>
    %21 = tpu.matmul %18, %20, %cst_31 {dimension_numbers = #tpu.dot_dimension_numbers<[1], [0], [0], [1], [0, 0, 1, 1], [], []>} : vector<16x102xbf16>, vector<102x256xbf16>, vector<16x256xf32> -> vector<16x256xf32>
    %c0_32 = arith.constant 0 : index
    %c1_33 = arith.constant 1 : index
    %c0_34 = arith.constant 0 : index
    %c0_35 = arith.constant 0 : index
    %22 = vector.load %arg1[%c0_32, %c1_33, %c0_34, %c0_35] : memref<1x2x17x102xbf16, #tpu.memory_space<vmem>>, vector<1x1x16x102xbf16>
    %23 = vector.shape_cast %22 : vector<1x1x16x102xbf16> to vector<16x102xbf16>
    %c1_36 = arith.constant 1 : index
    %c1_37 = arith.constant 1 : index
    %c0_38 = arith.constant 0 : index
    %c0_39 = arith.constant 0 : index
    %24 = vector.load %arg2[%c1_36, %c1_37, %c0_38, %c0_39] : memref<3x2x102x256xbf16, #tpu.memory_space<vmem>>, vector<1x1x102x256xbf16>
    %25 = vector.shape_cast %24 : vector<1x1x102x256xbf16> to vector<102x256xbf16>
    %cst_40 = arith.constant dense<0.000000e+00> : vector<16x256xf32>
    %26 = tpu.matmul %23, %25, %cst_40 {dimension_numbers = #tpu.dot_dimension_numbers<[1], [0], [0], [1], [0, 0, 1, 1], [], []>} : vector<16x102xbf16>, vector<102x256xbf16>, vector<16x256xf32> -> vector<16x256xf32>
    %27 = arith.addf %21, %26 : vector<16x256xf32>
    %c0_41 = arith.constant 0 : index
    %c0_42 = arith.constant 0 : index
    %c1_43 = arith.constant 1 : index
    %c0_44 = arith.constant 0 : index
    %28 = vector.load %arg1[%c0_41, %c0_42, %c1_43, %c0_44] : memref<1x2x17x102xbf16, #tpu.memory_space<vmem>>, vector<1x1x16x102xbf16>
    %29 = vector.shape_cast %28 : vector<1x1x16x102xbf16> to vector<16x102xbf16>
    %c2_45 = arith.constant 2 : index
    %c1_46 = arith.constant 1 : index
    %c0_47 = arith.constant 0 : index
    %c0_48 = arith.constant 0 : index
    %30 = vector.load %arg2[%c2_45, %c1_46, %c0_47, %c0_48] : memref<3x2x102x256xbf16, #tpu.memory_space<vmem>>, vector<1x1x102x256xbf16>
    %31 = vector.shape_cast %30 : vector<1x1x102x256xbf16> to vector<102x256xbf16>
    %cst_49 = arith.constant dense<0.000000e+00> : vector<16x256xf32>
    %32 = tpu.matmul %29, %31, %cst_49 {dimension_numbers = #tpu.dot_dimension_numbers<[1], [0], [0], [1], [0, 0, 1, 1], [], []>} : vector<16x102xbf16>, vector<102x256xbf16>, vector<16x256xf32> -> vector<16x256xf32>
    %33 = arith.addf %27, %32 : vector<16x256xf32>
    %34 = arith.maximumf %16, %33 : vector<16x256xf32>
    %c0_50 = arith.constant 0 : index
    %c1_51 = arith.constant 1 : index
    %c0_52 = arith.constant 0 : index
    %c0_53 = arith.constant 0 : index
    %35 = vector.load %arg1[%c0_50, %c1_51, %c0_52, %c0_53] : memref<1x2x17x102xbf16, #tpu.memory_space<vmem>>, vector<1x1x16x102xbf16>
    %36 = vector.shape_cast %35 : vector<1x1x16x102xbf16> to vector<16x102xbf16>
    %c0_54 = arith.constant 0 : index
    %c0_55 = arith.constant 0 : index
    %c0_56 = arith.constant 0 : index
    %c0_57 = arith.constant 0 : index
    %37 = vector.load %arg2[%c0_54, %c0_55, %c0_56, %c0_57] : memref<3x2x102x256xbf16, #tpu.memory_space<vmem>>, vector<1x1x102x256xbf16>
    %38 = vector.shape_cast %37 : vector<1x1x102x256xbf16> to vector<102x256xbf16>
    %cst_58 = arith.constant dense<0.000000e+00> : vector<16x256xf32>
    %39 = tpu.matmul %36, %38, %cst_58 {dimension_numbers = #tpu.dot_dimension_numbers<[1], [0], [0], [1], [0, 0, 1, 1], [], []>} : vector<16x102xbf16>, vector<102x256xbf16>, vector<16x256xf32> -> vector<16x256xf32>
    %c0_59 = arith.constant 0 : index
    %c0_60 = arith.constant 0 : index
    %c1_61 = arith.constant 1 : index
    %c0_62 = arith.constant 0 : index
    %40 = vector.load %arg1[%c0_59, %c0_60, %c1_61, %c0_62] : memref<1x2x17x102xbf16, #tpu.memory_space<vmem>>, vector<1x1x16x102xbf16>
    %41 = vector.shape_cast %40 : vector<1x1x16x102xbf16> to vector<16x102xbf16>
    %c1_63 = arith.constant 1 : index
    %c0_64 = arith.constant 0 : index
    %c0_65 = arith.constant 0 : index
    %c0_66 = arith.constant 0 : index
    %42 = vector.load %arg2[%c1_63, %c0_64, %c0_65, %c0_66] : memref<3x2x102x256xbf16, #tpu.memory_space<vmem>>, vector<1x1x102x256xbf16>
    %43 = vector.shape_cast %42 : vector<1x1x102x256xbf16> to vector<102x256xbf16>
    %cst_67 = arith.constant dense<0.000000e+00> : vector<16x256xf32>
    %44 = tpu.matmul %41, %43, %cst_67 {dimension_numbers = #tpu.dot_dimension_numbers<[1], [0], [0], [1], [0, 0, 1, 1], [], []>} : vector<16x102xbf16>, vector<102x256xbf16>, vector<16x256xf32> -> vector<16x256xf32>
    %45 = arith.addf %39, %44 : vector<16x256xf32>
    %c0_68 = arith.constant 0 : index
    %c1_69 = arith.constant 1 : index
    %c1_70 = arith.constant 1 : index
    %c0_71 = arith.constant 0 : index
    %46 = vector.load %arg1[%c0_68, %c1_69, %c1_70, %c0_71] : memref<1x2x17x102xbf16, #tpu.memory_space<vmem>>, vector<1x1x16x102xbf16>
    %47 = vector.shape_cast %46 : vector<1x1x16x102xbf16> to vector<16x102xbf16>
    %c2_72 = arith.constant 2 : index
    %c0_73 = arith.constant 0 : index
    %c0_74 = arith.constant 0 : index
    %c0_75 = arith.constant 0 : index
    %48 = vector.load %arg2[%c2_72, %c0_73, %c0_74, %c0_75] : memref<3x2x102x256xbf16, #tpu.memory_space<vmem>>, vector<1x1x102x256xbf16>
    %49 = vector.shape_cast %48 : vector<1x1x102x256xbf16> to vector<102x256xbf16>
    %cst_76 = arith.constant dense<0.000000e+00> : vector<16x256xf32>
    %50 = tpu.matmul %47, %49, %cst_76 {dimension_numbers = #tpu.dot_dimension_numbers<[1], [0], [0], [1], [0, 0, 1, 1], [], []>} : vector<16x102xbf16>, vector<102x256xbf16>, vector<16x256xf32> -> vector<16x256xf32>
    %51 = arith.addf %45, %50 : vector<16x256xf32>
    %c0_77 = arith.constant 0 : index
    %c1_78 = arith.constant 1 : index
    %c0_79 = arith.constant 0 : index
    %c0_80 = arith.constant 0 : index
    %52 = vector.load %arg1[%c0_77, %c1_78, %c0_79, %c0_80] : memref<1x2x17x102xbf16, #tpu.memory_space<vmem>>, vector<1x1x16x102xbf16>
    %53 = vector.shape_cast %52 : vector<1x1x16x102xbf16> to vector<16x102xbf16>
    %c0_81 = arith.constant 0 : index
    %c1_82 = arith.constant 1 : index
    %c0_83 = arith.constant 0 : index
    %c0_84 = arith.constant 0 : index
    %54 = vector.load %arg2[%c0_81, %c1_82, %c0_83, %c0_84] : memref<3x2x102x256xbf16, #tpu.memory_space<vmem>>, vector<1x1x102x256xbf16>
    %55 = vector.shape_cast %54 : vector<1x1x102x256xbf16> to vector<102x256xbf16>
    %cst_85 = arith.constant dense<0.000000e+00> : vector<16x256xf32>
    %56 = tpu.matmul %53, %55, %cst_85 {dimension_numbers = #tpu.dot_dimension_numbers<[1], [0], [0], [1], [0, 0, 1, 1], [], []>} : vector<16x102xbf16>, vector<102x256xbf16>, vector<16x256xf32> -> vector<16x256xf32>
    %c0_86 = arith.constant 0 : index
    %c0_87 = arith.constant 0 : index
    %c1_88 = arith.constant 1 : index
    %c0_89 = arith.constant 0 : index
    %57 = vector.load %arg1[%c0_86, %c0_87, %c1_88, %c0_89] : memref<1x2x17x102xbf16, #tpu.memory_space<vmem>>, vector<1x1x16x102xbf16>
    %58 = vector.shape_cast %57 : vector<1x1x16x102xbf16> to vector<16x102xbf16>
    %c1_90 = arith.constant 1 : index
    %c1_91 = arith.constant 1 : index
    %c0_92 = arith.constant 0 : index
    %c0_93 = arith.constant 0 : index
    %59 = vector.load %arg2[%c1_90, %c1_91, %c0_92, %c0_93] : memref<3x2x102x256xbf16, #tpu.memory_space<vmem>>, vector<1x1x102x256xbf16>
    %60 = vector.shape_cast %59 : vector<1x1x102x256xbf16> to vector<102x256xbf16>
    %cst_94 = arith.constant dense<0.000000e+00> : vector<16x256xf32>
    %61 = tpu.matmul %58, %60, %cst_94 {dimension_numbers = #tpu.dot_dimension_numbers<[1], [0], [0], [1], [0, 0, 1, 1], [], []>} : vector<16x102xbf16>, vector<102x256xbf16>, vector<16x256xf32> -> vector<16x256xf32>
    %62 = arith.addf %56, %61 : vector<16x256xf32>
    %c0_95 = arith.constant 0 : index
    %c1_96 = arith.constant 1 : index
    %c1_97 = arith.constant 1 : index
    %c0_98 = arith.constant 0 : index
    %63 = vector.load %arg1[%c0_95, %c1_96, %c1_97, %c0_98] : memref<1x2x17x102xbf16, #tpu.memory_space<vmem>>, vector<1x1x16x102xbf16>
    %64 = vector.shape_cast %63 : vector<1x1x16x102xbf16> to vector<16x102xbf16>
    %c2_99 = arith.constant 2 : index
    %c1_100 = arith.constant 1 : index
    %c0_101 = arith.constant 0 : index
    %c0_102 = arith.constant 0 : index
    %65 = vector.load %arg2[%c2_99, %c1_100, %c0_101, %c0_102] : memref<3x2x102x256xbf16, #tpu.memory_space<vmem>>, vector<1x1x102x256xbf16>
    %66 = vector.shape_cast %65 : vector<1x1x102x256xbf16> to vector<102x256xbf16>
    %cst_103 = arith.constant dense<0.000000e+00> : vector<16x256xf32>
    %67 = tpu.matmul %64, %66, %cst_103 {dimension_numbers = #tpu.dot_dimension_numbers<[1], [0], [0], [1], [0, 0, 1, 1], [], []>} : vector<16x102xbf16>, vector<102x256xbf16>, vector<16x256xf32> -> vector<16x256xf32>
    %68 = arith.addf %62, %67 : vector<16x256xf32>
    %69 = arith.maximumf %51, %68 : vector<16x256xf32>
    %70 = arith.maximumf %34, %69 : vector<16x256xf32>
    %c0_104 = arith.constant 0 : index
    %c0_105 = arith.constant 0 : index
    %71 = vector.load %arg3[%c0_104, %c0_105] : memref<1x256xf32, #tpu.memory_space<vmem>>, vector<1x256xf32>
    %72 = vector.broadcast %71 : vector<1x256xf32> to vector<16x256xf32>
    %73 = arith.addf %70, %72 : vector<16x256xf32>
    %cst_106 = arith.constant 0.000000e+00 : f32
    %74 = vector.broadcast %cst_106 : f32 to vector<16x256xf32>
    %75 = arith.maximumf %73, %74 : vector<16x256xf32>
    %76 = arith.truncf %75 : vector<16x256xf32> to vector<16x256xbf16>
    %c0_107 = arith.constant 0 : index
    %c0_108 = arith.constant 0 : index
    %77 = vector.load %arg4[%c0_107, %c0_108] : memref<16x256xbf16, #tpu.memory_space<vmem>>, vector<16x256xbf16>
    tpu.vector_store %arg4[%c0_107, %c0_108], %76 {strides = array<i32>} : memref<16x256xbf16, #tpu.memory_space<vmem>>, vector<16x256xbf16>,
    return
  }
  func.func @transform_0(%arg0: i32) -> (i32, i32, i32, i32) {
    %c0_i32 = arith.constant 0 : i32
    %c0_i32_0 = arith.constant 0 : i32
    %c0_i32_1 = arith.constant 0 : i32
    %c0_i32_2 = arith.constant 0 : i32
    return %arg0, %c0_i32, %c0_i32_0, %c0_i32_1 : i32, i32, i32, i32
  }
  func.func @transform_1(%arg0: i32) -> (i32, i32, i32, i32) {
    %c0_i32 = arith.constant 0 : i32
    %c0_i32_0 = arith.constant 0 : i32
    %c0_i32_1 = arith.constant 0 : i32
    %c0_i32_2 = arith.constant 0 : i32
    %c0_i32_3 = arith.constant 0 : i32
    return %c0_i32, %c0_i32_0, %c0_i32_1, %c0_i32_2 : i32, i32, i32, i32
  }
  func.func @transform_2(%arg0: i32) -> (i32, i32) {
    %c0_i32 = arith.constant 0 : i32
    %c0_i32_0 = arith.constant 0 : i32
    %c0_i32_1 = arith.constant 0 : i32
    return %c0_i32, %c0_i32_0 : i32, i32
  }
  func.func @transform_3(%arg0: i32) -> (i32, i32) {
    %c0_i32 = arith.constant 0 : i32
    %c0_i32_0 = arith.constant 0 : i32
    return %arg0, %c0_i32 : i32, i32
  }
}

module attributes {stable_mosaic.version = 11 : i64} {
  func.func @_conv_relu_pool_kernel(%arg0: i32, %arg1: memref<1x2x9x288xbf16, #tpu.memory_space<vmem>>, %arg2: memref<3x2x288x256xbf16, #tpu.memory_space<vmem>>, %arg3: memref<1x256xf32, #tpu.memory_space<vmem>>, %arg4: memref<8x256xbf16, #tpu.memory_space<vmem>>) attributes {dimension_semantics = [#tpu.dimension_semantics<parallel>], iteration_bounds = array<i64: 2>, scalar_prefetch = 0 : i64, scratch_operands = 0 : i64, tpu.core_type = #tpu.core_type<tc>, window_params = [{transform_indices = @transform_0, window_bounds = array<i64: 1, 2, 9, 288>}, {pipeline_mode = #tpu.pipeline_mode<synchronous>, transform_indices = @transform_1, window_bounds = array<i64: 3, 2, 288, 256>}, {pipeline_mode = #tpu.pipeline_mode<synchronous>, transform_indices = @transform_2, window_bounds = array<i64: 1, 256>}, {transform_indices = @transform_3, window_bounds = array<i64: 8, 256>}]} {
    %c0 = arith.constant 0 : index
    %c0_0 = arith.constant 0 : index
    %c0_1 = arith.constant 0 : index
    %c0_2 = arith.constant 0 : index
    %0 = vector.load %arg1[%c0, %c0_0, %c0_1, %c0_2] : memref<1x2x9x288xbf16, #tpu.memory_space<vmem>>, vector<1x1x8x288xbf16>
    %1 = vector.shape_cast %0 : vector<1x1x8x288xbf16> to vector<8x288xbf16>
    %c0_3 = arith.constant 0 : index
    %c0_4 = arith.constant 0 : index
    %c0_5 = arith.constant 0 : index
    %c0_6 = arith.constant 0 : index
    %2 = vector.load %arg2[%c0_3, %c0_4, %c0_5, %c0_6] : memref<3x2x288x256xbf16, #tpu.memory_space<vmem>>, vector<1x1x288x256xbf16>
    %3 = vector.shape_cast %2 : vector<1x1x288x256xbf16> to vector<288x256xbf16>
    %cst = arith.constant dense<0.000000e+00> : vector<8x256xf32>
    %4 = tpu.matmul %1, %3, %cst {dimension_numbers = #tpu.dot_dimension_numbers<[1], [0], [0], [1], [0, 0, 1, 1], [], []>} : vector<8x288xbf16>, vector<288x256xbf16>, vector<8x256xf32> -> vector<8x256xf32>
    %c0_7 = arith.constant 0 : index
    %c1 = arith.constant 1 : index
    %c0_8 = arith.constant 0 : index
    %c0_9 = arith.constant 0 : index
    %5 = vector.load %arg1[%c0_7, %c1, %c0_8, %c0_9] : memref<1x2x9x288xbf16, #tpu.memory_space<vmem>>, vector<1x1x8x288xbf16>
    %6 = vector.shape_cast %5 : vector<1x1x8x288xbf16> to vector<8x288xbf16>
    %c1_10 = arith.constant 1 : index
    %c0_11 = arith.constant 0 : index
    %c0_12 = arith.constant 0 : index
    %c0_13 = arith.constant 0 : index
    %7 = vector.load %arg2[%c1_10, %c0_11, %c0_12, %c0_13] : memref<3x2x288x256xbf16, #tpu.memory_space<vmem>>, vector<1x1x288x256xbf16>
    %8 = vector.shape_cast %7 : vector<1x1x288x256xbf16> to vector<288x256xbf16>
    %cst_14 = arith.constant dense<0.000000e+00> : vector<8x256xf32>
    %9 = tpu.matmul %6, %8, %cst_14 {dimension_numbers = #tpu.dot_dimension_numbers<[1], [0], [0], [1], [0, 0, 1, 1], [], []>} : vector<8x288xbf16>, vector<288x256xbf16>, vector<8x256xf32> -> vector<8x256xf32>
    %10 = arith.addf %4, %9 : vector<8x256xf32>
    %c0_15 = arith.constant 0 : index
    %c0_16 = arith.constant 0 : index
    %c1_17 = arith.constant 1 : index
    %c0_18 = arith.constant 0 : index
    %11 = vector.load %arg1[%c0_15, %c0_16, %c1_17, %c0_18] : memref<1x2x9x288xbf16, #tpu.memory_space<vmem>>, vector<1x1x8x288xbf16>
    %12 = vector.shape_cast %11 : vector<1x1x8x288xbf16> to vector<8x288xbf16>
    %c2 = arith.constant 2 : index
    %c0_19 = arith.constant 0 : index
    %c0_20 = arith.constant 0 : index
    %c0_21 = arith.constant 0 : index
    %13 = vector.load %arg2[%c2, %c0_19, %c0_20, %c0_21] : memref<3x2x288x256xbf16, #tpu.memory_space<vmem>>, vector<1x1x288x256xbf16>
    %14 = vector.shape_cast %13 : vector<1x1x288x256xbf16> to vector<288x256xbf16>
    %cst_22 = arith.constant dense<0.000000e+00> : vector<8x256xf32>
    %15 = tpu.matmul %12, %14, %cst_22 {dimension_numbers = #tpu.dot_dimension_numbers<[1], [0], [0], [1], [0, 0, 1, 1], [], []>} : vector<8x288xbf16>, vector<288x256xbf16>, vector<8x256xf32> -> vector<8x256xf32>
    %16 = arith.addf %10, %15 : vector<8x256xf32>
    %c0_23 = arith.constant 0 : index
    %c0_24 = arith.constant 0 : index
    %c0_25 = arith.constant 0 : index
    %c0_26 = arith.constant 0 : index
    %17 = vector.load %arg1[%c0_23, %c0_24, %c0_25, %c0_26] : memref<1x2x9x288xbf16, #tpu.memory_space<vmem>>, vector<1x1x8x288xbf16>
    %18 = vector.shape_cast %17 : vector<1x1x8x288xbf16> to vector<8x288xbf16>
    %c0_27 = arith.constant 0 : index
    %c1_28 = arith.constant 1 : index
    %c0_29 = arith.constant 0 : index
    %c0_30 = arith.constant 0 : index
    %19 = vector.load %arg2[%c0_27, %c1_28, %c0_29, %c0_30] : memref<3x2x288x256xbf16, #tpu.memory_space<vmem>>, vector<1x1x288x256xbf16>
    %20 = vector.shape_cast %19 : vector<1x1x288x256xbf16> to vector<288x256xbf16>
    %cst_31 = arith.constant dense<0.000000e+00> : vector<8x256xf32>
    %21 = tpu.matmul %18, %20, %cst_31 {dimension_numbers = #tpu.dot_dimension_numbers<[1], [0], [0], [1], [0, 0, 1, 1], [], []>} : vector<8x288xbf16>, vector<288x256xbf16>, vector<8x256xf32> -> vector<8x256xf32>
    %c0_32 = arith.constant 0 : index
    %c1_33 = arith.constant 1 : index
    %c0_34 = arith.constant 0 : index
    %c0_35 = arith.constant 0 : index
    %22 = vector.load %arg1[%c0_32, %c1_33, %c0_34, %c0_35] : memref<1x2x9x288xbf16, #tpu.memory_space<vmem>>, vector<1x1x8x288xbf16>
    %23 = vector.shape_cast %22 : vector<1x1x8x288xbf16> to vector<8x288xbf16>
    %c1_36 = arith.constant 1 : index
    %c1_37 = arith.constant 1 : index
    %c0_38 = arith.constant 0 : index
    %c0_39 = arith.constant 0 : index
    %24 = vector.load %arg2[%c1_36, %c1_37, %c0_38, %c0_39] : memref<3x2x288x256xbf16, #tpu.memory_space<vmem>>, vector<1x1x288x256xbf16>
    %25 = vector.shape_cast %24 : vector<1x1x288x256xbf16> to vector<288x256xbf16>
    %cst_40 = arith.constant dense<0.000000e+00> : vector<8x256xf32>
    %26 = tpu.matmul %23, %25, %cst_40 {dimension_numbers = #tpu.dot_dimension_numbers<[1], [0], [0], [1], [0, 0, 1, 1], [], []>} : vector<8x288xbf16>, vector<288x256xbf16>, vector<8x256xf32> -> vector<8x256xf32>
    %27 = arith.addf %21, %26 : vector<8x256xf32>
    %c0_41 = arith.constant 0 : index
    %c0_42 = arith.constant 0 : index
    %c1_43 = arith.constant 1 : index
    %c0_44 = arith.constant 0 : index
    %28 = vector.load %arg1[%c0_41, %c0_42, %c1_43, %c0_44] : memref<1x2x9x288xbf16, #tpu.memory_space<vmem>>, vector<1x1x8x288xbf16>
    %29 = vector.shape_cast %28 : vector<1x1x8x288xbf16> to vector<8x288xbf16>
    %c2_45 = arith.constant 2 : index
    %c1_46 = arith.constant 1 : index
    %c0_47 = arith.constant 0 : index
    %c0_48 = arith.constant 0 : index
    %30 = vector.load %arg2[%c2_45, %c1_46, %c0_47, %c0_48] : memref<3x2x288x256xbf16, #tpu.memory_space<vmem>>, vector<1x1x288x256xbf16>
    %31 = vector.shape_cast %30 : vector<1x1x288x256xbf16> to vector<288x256xbf16>
    %cst_49 = arith.constant dense<0.000000e+00> : vector<8x256xf32>
    %32 = tpu.matmul %29, %31, %cst_49 {dimension_numbers = #tpu.dot_dimension_numbers<[1], [0], [0], [1], [0, 0, 1, 1], [], []>} : vector<8x288xbf16>, vector<288x256xbf16>, vector<8x256xf32> -> vector<8x256xf32>
    %33 = arith.addf %27, %32 : vector<8x256xf32>
    %34 = arith.maximumf %16, %33 : vector<8x256xf32>
    %c0_50 = arith.constant 0 : index
    %c1_51 = arith.constant 1 : index
    %c0_52 = arith.constant 0 : index
    %c0_53 = arith.constant 0 : index
    %35 = vector.load %arg1[%c0_50, %c1_51, %c0_52, %c0_53] : memref<1x2x9x288xbf16, #tpu.memory_space<vmem>>, vector<1x1x8x288xbf16>
    %36 = vector.shape_cast %35 : vector<1x1x8x288xbf16> to vector<8x288xbf16>
    %c0_54 = arith.constant 0 : index
    %c0_55 = arith.constant 0 : index
    %c0_56 = arith.constant 0 : index
    %c0_57 = arith.constant 0 : index
    %37 = vector.load %arg2[%c0_54, %c0_55, %c0_56, %c0_57] : memref<3x2x288x256xbf16, #tpu.memory_space<vmem>>, vector<1x1x288x256xbf16>
    %38 = vector.shape_cast %37 : vector<1x1x288x256xbf16> to vector<288x256xbf16>
    %cst_58 = arith.constant dense<0.000000e+00> : vector<8x256xf32>
    %39 = tpu.matmul %36, %38, %cst_58 {dimension_numbers = #tpu.dot_dimension_numbers<[1], [0], [0], [1], [0, 0, 1, 1], [], []>} : vector<8x288xbf16>, vector<288x256xbf16>, vector<8x256xf32> -> vector<8x256xf32>
    %c0_59 = arith.constant 0 : index
    %c0_60 = arith.constant 0 : index
    %c1_61 = arith.constant 1 : index
    %c0_62 = arith.constant 0 : index
    %40 = vector.load %arg1[%c0_59, %c0_60, %c1_61, %c0_62] : memref<1x2x9x288xbf16, #tpu.memory_space<vmem>>, vector<1x1x8x288xbf16>
    %41 = vector.shape_cast %40 : vector<1x1x8x288xbf16> to vector<8x288xbf16>
    %c1_63 = arith.constant 1 : index
    %c0_64 = arith.constant 0 : index
    %c0_65 = arith.constant 0 : index
    %c0_66 = arith.constant 0 : index
    %42 = vector.load %arg2[%c1_63, %c0_64, %c0_65, %c0_66] : memref<3x2x288x256xbf16, #tpu.memory_space<vmem>>, vector<1x1x288x256xbf16>
    %43 = vector.shape_cast %42 : vector<1x1x288x256xbf16> to vector<288x256xbf16>
    %cst_67 = arith.constant dense<0.000000e+00> : vector<8x256xf32>
    %44 = tpu.matmul %41, %43, %cst_67 {dimension_numbers = #tpu.dot_dimension_numbers<[1], [0], [0], [1], [0, 0, 1, 1], [], []>} : vector<8x288xbf16>, vector<288x256xbf16>, vector<8x256xf32> -> vector<8x256xf32>
    %45 = arith.addf %39, %44 : vector<8x256xf32>
    %c0_68 = arith.constant 0 : index
    %c1_69 = arith.constant 1 : index
    %c1_70 = arith.constant 1 : index
    %c0_71 = arith.constant 0 : index
    %46 = vector.load %arg1[%c0_68, %c1_69, %c1_70, %c0_71] : memref<1x2x9x288xbf16, #tpu.memory_space<vmem>>, vector<1x1x8x288xbf16>
    %47 = vector.shape_cast %46 : vector<1x1x8x288xbf16> to vector<8x288xbf16>
    %c2_72 = arith.constant 2 : index
    %c0_73 = arith.constant 0 : index
    %c0_74 = arith.constant 0 : index
    %c0_75 = arith.constant 0 : index
    %48 = vector.load %arg2[%c2_72, %c0_73, %c0_74, %c0_75] : memref<3x2x288x256xbf16, #tpu.memory_space<vmem>>, vector<1x1x288x256xbf16>
    %49 = vector.shape_cast %48 : vector<1x1x288x256xbf16> to vector<288x256xbf16>
    %cst_76 = arith.constant dense<0.000000e+00> : vector<8x256xf32>
    %50 = tpu.matmul %47, %49, %cst_76 {dimension_numbers = #tpu.dot_dimension_numbers<[1], [0], [0], [1], [0, 0, 1, 1], [], []>} : vector<8x288xbf16>, vector<288x256xbf16>, vector<8x256xf32> -> vector<8x256xf32>
    %51 = arith.addf %45, %50 : vector<8x256xf32>
    %c0_77 = arith.constant 0 : index
    %c1_78 = arith.constant 1 : index
    %c0_79 = arith.constant 0 : index
    %c0_80 = arith.constant 0 : index
    %52 = vector.load %arg1[%c0_77, %c1_78, %c0_79, %c0_80] : memref<1x2x9x288xbf16, #tpu.memory_space<vmem>>, vector<1x1x8x288xbf16>
    %53 = vector.shape_cast %52 : vector<1x1x8x288xbf16> to vector<8x288xbf16>
    %c0_81 = arith.constant 0 : index
    %c1_82 = arith.constant 1 : index
    %c0_83 = arith.constant 0 : index
    %c0_84 = arith.constant 0 : index
    %54 = vector.load %arg2[%c0_81, %c1_82, %c0_83, %c0_84] : memref<3x2x288x256xbf16, #tpu.memory_space<vmem>>, vector<1x1x288x256xbf16>
    %55 = vector.shape_cast %54 : vector<1x1x288x256xbf16> to vector<288x256xbf16>
    %cst_85 = arith.constant dense<0.000000e+00> : vector<8x256xf32>
    %56 = tpu.matmul %53, %55, %cst_85 {dimension_numbers = #tpu.dot_dimension_numbers<[1], [0], [0], [1], [0, 0, 1, 1], [], []>} : vector<8x288xbf16>, vector<288x256xbf16>, vector<8x256xf32> -> vector<8x256xf32>
    %c0_86 = arith.constant 0 : index
    %c0_87 = arith.constant 0 : index
    %c1_88 = arith.constant 1 : index
    %c0_89 = arith.constant 0 : index
    %57 = vector.load %arg1[%c0_86, %c0_87, %c1_88, %c0_89] : memref<1x2x9x288xbf16, #tpu.memory_space<vmem>>, vector<1x1x8x288xbf16>
    %58 = vector.shape_cast %57 : vector<1x1x8x288xbf16> to vector<8x288xbf16>
    %c1_90 = arith.constant 1 : index
    %c1_91 = arith.constant 1 : index
    %c0_92 = arith.constant 0 : index
    %c0_93 = arith.constant 0 : index
    %59 = vector.load %arg2[%c1_90, %c1_91, %c0_92, %c0_93] : memref<3x2x288x256xbf16, #tpu.memory_space<vmem>>, vector<1x1x288x256xbf16>
    %60 = vector.shape_cast %59 : vector<1x1x288x256xbf16> to vector<288x256xbf16>
    %cst_94 = arith.constant dense<0.000000e+00> : vector<8x256xf32>
    %61 = tpu.matmul %58, %60, %cst_94 {dimension_numbers = #tpu.dot_dimension_numbers<[1], [0], [0], [1], [0, 0, 1, 1], [], []>} : vector<8x288xbf16>, vector<288x256xbf16>, vector<8x256xf32> -> vector<8x256xf32>
    %62 = arith.addf %56, %61 : vector<8x256xf32>
    %c0_95 = arith.constant 0 : index
    %c1_96 = arith.constant 1 : index
    %c1_97 = arith.constant 1 : index
    %c0_98 = arith.constant 0 : index
    %63 = vector.load %arg1[%c0_95, %c1_96, %c1_97, %c0_98] : memref<1x2x9x288xbf16, #tpu.memory_space<vmem>>, vector<1x1x8x288xbf16>
    %64 = vector.shape_cast %63 : vector<1x1x8x288xbf16> to vector<8x288xbf16>
    %c2_99 = arith.constant 2 : index
    %c1_100 = arith.constant 1 : index
    %c0_101 = arith.constant 0 : index
    %c0_102 = arith.constant 0 : index
    %65 = vector.load %arg2[%c2_99, %c1_100, %c0_101, %c0_102] : memref<3x2x288x256xbf16, #tpu.memory_space<vmem>>, vector<1x1x288x256xbf16>
    %66 = vector.shape_cast %65 : vector<1x1x288x256xbf16> to vector<288x256xbf16>
    %cst_103 = arith.constant dense<0.000000e+00> : vector<8x256xf32>
    %67 = tpu.matmul %64, %66, %cst_103 {dimension_numbers = #tpu.dot_dimension_numbers<[1], [0], [0], [1], [0, 0, 1, 1], [], []>} : vector<8x288xbf16>, vector<288x256xbf16>, vector<8x256xf32> -> vector<8x256xf32>
    %68 = arith.addf %62, %67 : vector<8x256xf32>
    %69 = arith.maximumf %51, %68 : vector<8x256xf32>
    %70 = arith.maximumf %34, %69 : vector<8x256xf32>
    %c0_104 = arith.constant 0 : index
    %c0_105 = arith.constant 0 : index
    %71 = vector.load %arg3[%c0_104, %c0_105] : memref<1x256xf32, #tpu.memory_space<vmem>>, vector<1x256xf32>
    %72 = vector.broadcast %71 : vector<1x256xf32> to vector<8x256xf32>
    %73 = arith.addf %70, %72 : vector<8x256xf32>
    %cst_106 = arith.constant 0.000000e+00 : f32
    %74 = vector.broadcast %cst_106 : f32 to vector<8x256xf32>
    %75 = arith.maximumf %73, %74 : vector<8x256xf32>
    %76 = arith.truncf %75 : vector<8x256xf32> to vector<8x256xbf16>
    %c0_107 = arith.constant 0 : index
    %c0_108 = arith.constant 0 : index
    %77 = vector.load %arg4[%c0_107, %c0_108] : memref<8x256xbf16, #tpu.memory_space<vmem>>, vector<8x256xbf16>
    tpu.vector_store %arg4[%c0_107, %c0_108], %76 {strides = array<i32>} : memref<8x256xbf16, #tpu.memory_space<vmem>>, vector<8x256xbf16>,
    return
  }
  func.func @transform_0(%arg0: i32) -> (i32, i32, i32, i32) {
    %c0_i32 = arith.constant 0 : i32
    %c0_i32_0 = arith.constant 0 : i32
    %c0_i32_1 = arith.constant 0 : i32
    %c0_i32_2 = arith.constant 0 : i32
    return %arg0, %c0_i32, %c0_i32_0, %c0_i32_1 : i32, i32, i32, i32
  }
  func.func @transform_1(%arg0: i32) -> (i32, i32, i32, i32) {
    %c0_i32 = arith.constant 0 : i32
    %c0_i32_0 = arith.constant 0 : i32
    %c0_i32_1 = arith.constant 0 : i32
    %c0_i32_2 = arith.constant 0 : i32
    %c0_i32_3 = arith.constant 0 : i32
    return %c0_i32, %c0_i32_0, %c0_i32_1, %c0_i32_2 : i32, i32, i32, i32
  }
  func.func @transform_2(%arg0: i32) -> (i32, i32) {
    %c0_i32 = arith.constant 0 : i32
    %c0_i32_0 = arith.constant 0 : i32
    %c0_i32_1 = arith.constant 0 : i32
    return %c0_i32, %c0_i32_0 : i32, i32
  }
  func.func @transform_3(%arg0: i32) -> (i32, i32) {
    %c0_i32 = arith.constant 0 : i32
    %c0_i32_0 = arith.constant 0 : i32
    return %arg0, %c0_i32 : i32, i32
  }
}

module attributes {stable_mosaic.version = 11 : i64} {
  func.func @_mlp_kernel(%arg0: i32, %arg1: memref<2x2048xbf16, #tpu.memory_space<vmem>>, %arg2: memref<2048x128xbf16, #tpu.memory_space<vmem>>, %arg3: memref<1x128xf32, #tpu.memory_space<vmem>>, %arg4: memref<128x128xbf16, #tpu.memory_space<vmem>>, %arg5: memref<1x128xf32, #tpu.memory_space<vmem>>, %arg6: memref<2x128xf32, #tpu.memory_space<vmem>>) attributes {dimension_semantics = [#tpu.dimension_semantics<arbitrary>], iteration_bounds = array<i64: 1>, scalar_prefetch = 0 : i64, scratch_operands = 0 : i64, tpu.core_type = #tpu.core_type<tc>, window_params = [{pipeline_mode = #tpu.pipeline_mode<synchronous>, transform_indices = @transform_0, window_bounds = array<i64: 2, 2048>}, {pipeline_mode = #tpu.pipeline_mode<synchronous>, transform_indices = @transform_1, window_bounds = array<i64: 2048, 128>}, {pipeline_mode = #tpu.pipeline_mode<synchronous>, transform_indices = @transform_2, window_bounds = array<i64: 1, 128>}, {pipeline_mode = #tpu.pipeline_mode<synchronous>, transform_indices = @transform_3, window_bounds = array<i64: 128, 128>}, {pipeline_mode = #tpu.pipeline_mode<synchronous>, transform_indices = @transform_4, window_bounds = array<i64: 1, 128>}, {pipeline_mode = #tpu.pipeline_mode<synchronous>, transform_indices = @transform_5, window_bounds = array<i64: 2, 128>}]} {
    %c0 = arith.constant 0 : index
    %c0_0 = arith.constant 0 : index
    %0 = vector.load %arg1[%c0, %c0_0] : memref<2x2048xbf16, #tpu.memory_space<vmem>>, vector<2x2048xbf16>
    %c0_1 = arith.constant 0 : index
    %c0_2 = arith.constant 0 : index
    %1 = vector.load %arg2[%c0_1, %c0_2] : memref<2048x128xbf16, #tpu.memory_space<vmem>>, vector<2048x128xbf16>
    %cst = arith.constant dense<0.000000e+00> : vector<2x128xf32>
    %2 = tpu.matmul %0, %1, %cst {dimension_numbers = #tpu.dot_dimension_numbers<[1], [0], [0], [1], [0, 0, 1, 1], [], []>} : vector<2x2048xbf16>, vector<2048x128xbf16>, vector<2x128xf32> -> vector<2x128xf32>
    %c0_3 = arith.constant 0 : index
    %c0_4 = arith.constant 0 : index
    %3 = vector.load %arg3[%c0_3, %c0_4] : memref<1x128xf32, #tpu.memory_space<vmem>>, vector<1x128xf32>
    %4 = vector.broadcast %3 : vector<1x128xf32> to vector<2x128xf32>
    %5 = arith.addf %2, %4 : vector<2x128xf32>
    %cst_5 = arith.constant 0.000000e+00 : f32
    %6 = vector.broadcast %cst_5 : f32 to vector<2x128xf32>
    %7 = arith.maximumf %5, %6 : vector<2x128xf32>
    %8 = arith.truncf %7 : vector<2x128xf32> to vector<2x128xbf16>
    %c0_6 = arith.constant 0 : index
    %c0_7 = arith.constant 0 : index
    %9 = vector.load %arg4[%c0_6, %c0_7] : memref<128x128xbf16, #tpu.memory_space<vmem>>, vector<128x128xbf16>
    %cst_8 = arith.constant dense<0.000000e+00> : vector<2x128xf32>
    %10 = tpu.matmul %8, %9, %cst_8 {dimension_numbers = #tpu.dot_dimension_numbers<[1], [0], [0], [1], [0, 0, 1, 1], [], []>} : vector<2x128xbf16>, vector<128x128xbf16>, vector<2x128xf32> -> vector<2x128xf32>
    %c0_9 = arith.constant 0 : index
    %c0_10 = arith.constant 0 : index
    %11 = vector.load %arg5[%c0_9, %c0_10] : memref<1x128xf32, #tpu.memory_space<vmem>>, vector<1x128xf32>
    %12 = vector.broadcast %11 : vector<1x128xf32> to vector<2x128xf32>
    %13 = arith.addf %10, %12 : vector<2x128xf32>
    %c0_11 = arith.constant 0 : index
    %c0_12 = arith.constant 0 : index
    %14 = vector.load %arg6[%c0_11, %c0_12] : memref<2x128xf32, #tpu.memory_space<vmem>>, vector<2x128xf32>
    tpu.vector_store %arg6[%c0_11, %c0_12], %13 {strides = array<i32>} : memref<2x128xf32, #tpu.memory_space<vmem>>, vector<2x128xf32>,
    return
  }
  func.func @transform_0(%arg0: i32) -> (i32, i32) {
    %c0_i32 = arith.constant 0 : i32
    %c0_i32_0 = arith.constant 0 : i32
    %c0_i32_1 = arith.constant 0 : i32
    return %c0_i32, %c0_i32_0 : i32, i32
  }
  func.func @transform_1(%arg0: i32) -> (i32, i32) {
    %c0_i32 = arith.constant 0 : i32
    %c0_i32_0 = arith.constant 0 : i32
    %c0_i32_1 = arith.constant 0 : i32
    return %c0_i32, %c0_i32_0 : i32, i32
  }
  func.func @transform_2(%arg0: i32) -> (i32, i32) {
    %c0_i32 = arith.constant 0 : i32
    %c0_i32_0 = arith.constant 0 : i32
    %c0_i32_1 = arith.constant 0 : i32
    return %c0_i32, %c0_i32_0 : i32, i32
  }
  func.func @transform_3(%arg0: i32) -> (i32, i32) {
    %c0_i32 = arith.constant 0 : i32
    %c0_i32_0 = arith.constant 0 : i32
    %c0_i32_1 = arith.constant 0 : i32
    return %c0_i32, %c0_i32_0 : i32, i32
  }
  func.func @transform_4(%arg0: i32) -> (i32, i32) {
    %c0_i32 = arith.constant 0 : i32
    %c0_i32_0 = arith.constant 0 : i32
    %c0_i32_1 = arith.constant 0 : i32
    return %c0_i32, %c0_i32_0 : i32, i32
  }
  func.func @transform_5(%arg0: i32) -> (i32, i32) {
    %c0_i32 = arith.constant 0 : i32
    %c0_i32_0 = arith.constant 0 : i32
    %c0_i32_1 = arith.constant 0 : i32
    return %c0_i32, %c0_i32_0 : i32, i32
  }
}

</mosaic_0001>

<bundles_post_ra>
// kernel: tile.13
= control target key start
LH: loop header
LB: loop body
LE: loop exit
PB: predicated region body
PF: predicated region fallthrough
CT: control target
= control target key end

     0   :  { %s28_s0 = inlined_call_operand.vmem [shape: f32[16], index: 0, kind: input, shape index: {}]   ;;  %s29_s1 = inlined_call_operand.vmem [shape: f32[16,16], index: 1, kind: output, shape index: {}]  }
   0x1   :  { %v4_v0 = vld [vmem:[%s28_s0] ss:$0 sm:$0xff] }
   0x2   :  { %5 = vst [vmem:[%s29_s1] sm:$0xff] %v4_v0  ;;  %8 = vst [vmem:[%s29_s1 + $0x8] sm:$0xff] %v4_v0 }

// kernel: tile.14
= control target key start
LH: loop header
LB: loop body
LE: loop exit
PB: predicated region body
PF: predicated region fallthrough
CT: control target
= control target key end

     0   :  { %s7_s6 = smov 3  ;;  %s21_s9 = smov 3  ;;  %vm4_vm0 = vcmask 130048   ;;  %vm11_vm1 = vcmask 1048448   ;;  %vm18_vm2 = vcmask 917248   ;;  %vm25_vm3 = vcmask 786048   ;;  %s128_s0 = inlined_call_operand.vmem [shape: f32[16,16], index: 0, kind: input, shape index: {}]   ;;  %s129_s1 = inlined_call_operand.vmem [shape: f32[1,256], index: 1, kind: output, shape index: {}]  }
   0x1   :  { %v66_v0 = vld [vmem:[%s128_s0 + $0x7] ss:$8 sm:%s7_s6]   ;;  %s81_s10 = smov 112   ;;  %v68_v1 = vld [vmem:[%s128_s0 + $0x5] ss:$8 sm:%s21_s9]   ;;  %s14_s13 = smov 3 }
   0x2   :  { %9 = vrot.lane.b32.xlu0 %v66_v0, %s81_s10  ;;  %s82_s14 = smov 80   ;;  %v67_v2 = vld [vmem:[%s128_s0 + $0x6] ss:$8 sm:%s14_s13]   ;;  %s28_s17 = smov 3  ;;  %vm32_vm4 = vcmask 654848   ;;  %vm39_vm5 = vcmask 523648  }
   0x3   :  { %23 = vrot.lane.b32.xlu1 %v68_v1, %s82_s14  ;;  %v69_v3 = vld [vmem:[%s128_s0 + $0x4] ss:$8 sm:%s28_s17]   ;;  %s35_s20 = smov 3  ;;  %s42_s21 = smov 3  ;;  %vm46_vm6 = vcmask 392448   ;;  %vm53_vm7 = vcmask 261248  }
   0x4   :  { %s83_s22 = smov 96   ;;  %s84_s23 = smov 64   ;;  %v70_v4 = vld [vmem:[%s128_s0 + $0x3] ss:$8 sm:%s35_s20]   ;;  %v71_v5 = vld [vmem:[%s128_s0 + $0x2] ss:$8 sm:%s42_s21]  }
   0x5   :  { %s2_s26 = smov 3  ;;  %s49_s29 = smov 3 }
   0x6   :  { %16 = vrot.lane.b32.xlu0 %v67_v2, %s83_s22  ;;  %v3_v6 = vld [vmem:[%s128_s0] ss:$8 sm:%s2_s26]   ;;  %s85_s3 = smov 48   ;;  %s86_s4 = smov 32  }
   0x7   :  { %30 = vrot.lane.b32.xlu1 %v69_v3, %s84_s23  ;;  %5 = vst.msk [vmem:[#allocation0] ss:$8 sm:$0x3] %vm4_vm0, %v3_v6   ;;  %v72_v7 = vld [vmem:[%s128_s0 + $0x1] ss:$8 sm:%s49_s29]   ;;  %s87_s0 = smov 16  }
   0xa   :  { %37 = vrot.lane.b32.xlu0 %v70_v4, %s85_s3 }
   0xb   :  { %44 = vrot.lane.b32.xlu1 %v71_v5, %s86_s4 }
   0xe   :  { %51 = vrot.lane.b32.xlu0 %v72_v7, %s87_s0 }
  0x74   :  { %v10_v8 = vpop.permute.xlu0 %9  }
  0x75   :  { %12 = vst.msk [vmem:[#allocation0] ss:$8 sm:$0x3] %vm11_vm1, %v10_v8   ;;  %v24_v9 = vpop.permute.xlu1 %23  }
  0x78   :  { %v17_v10 = vpop.permute.xlu0 %16  }
  0x79   :  { %19 = vst.msk [vmem:[#allocation0] ss:$8 sm:$0x3] %vm18_vm2, %v17_v10   ;;  %v31_v11 = vpop.permute.xlu1 %30  }
  0x7a   :  { %26 = vst.msk [vmem:[#allocation0] ss:$8 sm:$0x3] %vm25_vm3, %v24_v9  }
  0x7b   :  { %33 = vst.msk [vmem:[#allocation0] ss:$8 sm:$0x3] %vm32_vm4, %v31_v11  }
  0x7c   :  { %v38_v12 = vpop.permute.xlu0 %37  }
  0x7d   :  { %40 = vst.msk [vmem:[#allocation0] ss:$8 sm:$0x3] %vm39_vm5, %v38_v12   ;;  %v45_v13 = vpop.permute.xlu1 %44  }
  0x7e   :  { %47 = vst.msk [vmem:[#allocation0] ss:$8 sm:$0x3] %vm46_vm6, %v45_v13  }
  0x80   :  { %v52_v14 = vpop.permute.xlu0 %51  }
  0x81   :  { %54 = vst.msk [vmem:[#allocation0] ss:$8 sm:$0x3] %vm53_vm7, %v52_v14  }
  0x88   :  { %v58_v15 = vld [vmem:[#allocation0] sm:$0x1]  ;;  %v62_v16 = vld [vmem:[#allocation0 + $0x8] sm:$0x1] }
  0x89   :  { %60 = vst [vmem:[%s129_s1] sm:$0x1] %v58_v15  ;;  %73 = vst [vmem:[%s129_s1 + $0x1] sm:$0x1] %v62_v16 }

// kernel: basic_cnn_forward.3
= control target key start
LH: loop header
LB: loop body
LE: loop exit
PB: predicated region body
PF: predicated region fallthrough
CT: control target
= control target key end

     0   :  { %s1793_s12 = smov 0   ;;  %s2450_s0 = inlined_call_operand.vmem [shape: bf16[2,2,17,102], index: 0, kind: input, shape index: {}]   ;;  %s2451_s1 = inlined_call_operand.vmem [shape: bf16[3,2,102,256], index: 1, kind: input, shape index: {}]   ;;  %s2452_s2 = inlined_call_operand.vmem [shape: f32[1,256], index: 2, kind: input, shape index: {}]   ;;  %s2453_s3 = inlined_call_operand.vmem [shape: bf16[32,256], index: 3, kind: output, shape index: {}]  }
   0x1 LB: > { %s1799_s13 = sadd.s32 4294967295, %s1770_s12   ;;  %p1400_p0 = scmp.ge.s32.totalorder %s1770_s12, 1  ;;  %s1770_s12 = sphi %s1793_s12, %s13_s12  }
   0x2   : > { %p137_p1 = scmp.lt.s32.totalorder %s1770_s12, 3 }
   0x4   : > { %p138_p2 = pnand %p1400_p0, %p137_p1 }
   0x6   : > { %141 = sbr.rel (%p138_p2) target bundleno = 409 (0x199), region = 32 }
   0xd   : > { %v1806_v0 = vld [vmem:[%s2451_s1 + $0xd4] ss:$8 sps:$4 sm:$0xff]   ;;  %v2454_v2 = vmov 0   ;;  %v1819_v3 = vld [vmem:[%s2451_s1 + $0xd0] ss:$8 sps:$4 sm:$0xff]   ;;  %p162_p3 = scmp.lt.s32.totalorder %s1799_s13, 1 }
   0xe   : > { %v1811_v1 = vld [vmem:[%s2451_s1 + $0x13c] ss:$8 sps:$4 sm:$0xff]   ;;  %320 = vmatprep.mubr.bf16.mxu0 %v2454_v2  ;;  %743 = vmatprep.mubr.bf16.mxu1 %v2454_v2  ;;  %v1824_v4 = vld [vmem:[%s2451_s1 + $0x138] ss:$8 sps:$4 sm:$0xff]   ;;  %v1837_v6 = vld [vmem:[%s2451_s1 + $0x14c] ss:$8 sps:$4 sm:$0xff]  }
   0xf   : > { %288 = vmatprep.subr.bf16.mxu0 %v1806_v0  ;;  %711 = vmatprep.subr.bf16.mxu1 %v1811_v1  ;;  %v1830_v5 = vld [vmem:[%s2451_s1 + $0xe4] ss:$8 sps:$4 sm:$0xff]   ;;  %v1842_v7 = vld [vmem:[%s2451_s1 + $0xe0] ss:$8 sps:$4 sm:$0xff]   ;;  %v1854_v9 = vld [vmem:[%s2451_s1 + $0xf4] ss:$8 sps:$4 sm:$0xff]  }
  0x10   : > { %289 = vmatpush1.bf16.msra.mxu0 %v1819_v3  ;;  %712 = vmatpush1.bf16.msra.mxu1 %v1824_v4  ;;  %v1848_v8 = vld [vmem:[%s2451_s1 + $0x148] ss:$8 sps:$4 sm:$0xff]   ;;  %v1860_v10 = vld [vmem:[%s2451_s1 + $0x15c] ss:$8 sps:$4 sm:$0xff]   ;;  %v1870_v12 = vld [vmem:[%s2451_s1 + $0x158] ss:$8 sps:$4 sm:$0xff]  }
  0x11   : > { %290 = vmatprep.subr.bf16.mxu0 %v1830_v5  ;;  %713 = vmatprep.subr.bf16.mxu1 %v1837_v6  ;;  %v1865_v11 = vld [vmem:[%s2451_s1 + $0xf0] ss:$8 sps:$4 sm:$0xff]   ;;  %v1877_v13 = vld [vmem:[%s2451_s1 + $0x104] ss:$8 sps:$4 sm:$0xff]   ;;  %s163_s17 = scalar_select %p162_p3, %s1799_s13, 1  ;;  %vm281_vm0 = vcmask 1042432  }
  0x12   : > { %v1884_v14 = vld [vmem:[%s2451_s1 + $0x16c] ss:$8 sps:$4 sm:$0xff]   ;;  %v1890_v15 = vld [vmem:[%s2451_s1 + $0x100] ss:$8 sps:$4 sm:$0xff]   ;;  %v1909_v18 = vld [vmem:[%s2451_s1 + $0x17c] ss:$8 sps:$4 sm:$0xff]  }
  0x13   : > { %v1897_v16 = vld [vmem:[%s2451_s1 + $0x168] ss:$8 sps:$4 sm:$0xff]   ;;  %v1902_v17 = vld [vmem:[%s2451_s1 + $0x114] ss:$8 sps:$4 sm:$0xff]   ;;  %s1628_s26 = smul.u32 24, %s163_s17  ;;  %vm277_vm1 = vcmask 834560  }
  0x14   : > { %291 = vmatpush1.bf16.msra.mxu0 %v1842_v7  ;;  %714 = vmatpush1.bf16.msra.mxu1 %v1848_v8  ;;  %v1914_v19 = vld [vmem:[%s2451_s1 + $0x110] ss:$8 sps:$4 sm:$0xff]   ;;  %v1926_v21 = vld [vmem:[%s2451_s1 + $0x124] ss:$8 sps:$4 sm:$0xff]   ;;  %v1949_v25 = vld [vmem:[%s2451_s1 + $0x120] ss:$8 sps:$4 sm:$0xff]  }
  0x15   : > { %292 = vmatprep.subr.bf16.mxu0 %v1854_v9  ;;  %715 = vmatprep.subr.bf16.mxu1 %v1860_v10  ;;  %v1921_v20 = vld [vmem:[%s2451_s1 + $0x178] ss:$8 sps:$4 sm:$0xff]   ;;  %v1933_v22 = vld [vmem:[%s2451_s1 + $0x18c] ss:$8 sps:$4 sm:$0xff]   ;;  %s1944_s16 = scalar_lea.vmem %s2450_s0, %s1628_s26  ;;  %v1954_v26 = vld [vmem:[%s2451_s1 + $0x188] ss:$8 sps:$4 sm:$0xff]  }
  0x16   : > { %v1419_v23 = vld [vmem:[%s2451_s1 + $0x130] sm:$0x77]  ;;  %v1510_v24 = vld [vmem:[%s2451_s1 + $0x198] sm:$0x77]  ;;  %v1969_v31 = vld [vmem:[%s2451_s1 + $0x4] ss:$8 sps:$4 sm:$0xff]  }
  0x17   : > { %v1958_v27 = vcombine.high %v1419_v23, %v1419_v23  ;;  %v1962_v28 = vcombine.high %v1510_v24, %v1510_v24  ;;  %v1433_v29 = vcombine.low %v1419_v23, %v1419_v23  ;;  %v1523_v30 = vcombine.low %v1510_v24, %v1510_v24  ;;  %v1984_v34 = vld [vmem:[%s2451_s1 + $0x6c] ss:$8 sps:$4 sm:$0xff]   ;;  %v1989_v35 = vld [vmem:[%s2451_s1] ss:$8 sps:$4 sm:$0xff]   ;;  %v2011_v39 = vld [vmem:[%s2451_s1 + $0x7c] ss:$8 sps:$4 sm:$0xff]  }
  0x18   : > { %293 = vmatpush1.bf16.msra.mxu0 %v1865_v11  ;;  %716 = vmatpush1.bf16.msra.mxu1 %v1870_v12  ;;  %v1992_v36 = vld [vmem:[%s1944_s16 + $0xc] sm:$0xff]   ;;  %v2006_v38 = vld [vmem:[%s2451_s1 + $0x14] ss:$8 sps:$4 sm:$0xff]   ;;  %v2027_v41 = vld [vmem:[%s2451_s1 + $0x78] ss:$8 sps:$4 sm:$0xff]   ;;  %s1402_s28 = sshll.u32 %s1799_s13, 1 }
  0x19   : > { %294 = vmatprep.subr.bf16.mxu0 %v1877_v13  ;;  %717 = vmatprep.subr.bf16.mxu1 %v1884_v14  ;;  %v1976_v32 = vsel %vm281_vm0, %v1433_v29, 0  ;;  %v1979_v33 = vsel %vm281_vm0, %v1523_v30, 0  ;;  %2490 = vst [vmem:[#allocation2_spill] sm:$0xff] %v1992_v36  ;;  %v1999_v37 = vld [vmem:[%s2451_s1 + $0x68] ss:$8 sps:$4 sm:$0xff]   ;;  %p168_p4 = scmp.lt.s32.totalorder %s1402_s28, 3 }
  0x1a   : > { %v2020_v40 = vld [vmem:[%s2451_s1 + $0x10] ss:$8 sps:$4 sm:$0xff]   ;;  %v2034_v42 = vld [vmem:[%s2451_s1 + $0x24] ss:$8 sps:$4 sm:$0xff]   ;;  %v2046_v44 = vld [vmem:[%s2451_s1 + $0x20] ss:$8 sps:$4 sm:$0xff]  }
  0x1b   : > { %v2039_v43 = vld [vmem:[%s2451_s1 + $0x8c] ss:$8 sps:$4 sm:$0xff]   ;;  %v2053_v45 = vld [vmem:[%s2451_s1 + $0x88] ss:$8 sps:$4 sm:$0xff]   ;;  %v2065_v47 = vld [vmem:[%s2451_s1 + $0x9c] ss:$8 sps:$4 sm:$0xff]  }
  0x1c   : > { %295 = vmatpush1.bf16.msra.mxu0 %v1890_v15  ;;  %718 = vmatpush1.bf16.msra.mxu1 %v1897_v16  ;;  %v2058_v46 = vld [vmem:[%s2451_s1 + $0x34] ss:$8 sps:$4 sm:$0xff]   ;;  %v2072_v48 = vld [vmem:[%s2451_s1 + $0x30] ss:$8 sps:$4 sm:$0xff]   ;;  %v2084_v50 = vld [vmem:[%s2451_s1 + $0x44] ss:$8 sps:$4 sm:$0xff]  }
  0x1d   : > { %296 = vmatprep.subr.bf16.mxu0 %v1902_v17  ;;  %719 = vmatprep.subr.bf16.mxu1 %v1909_v18  ;;  %v2077_v49 = vld [vmem:[%s2451_s1 + $0x98] ss:$8 sps:$4 sm:$0xff]   ;;  %v2089_v51 = vld [vmem:[%s2451_s1 + $0xac] ss:$8 sps:$4 sm:$0xff]   ;;  %v2101_v53 = vld [vmem:[%s2451_s1 + $0xa8] ss:$8 sps:$4 sm:$0xff]  }
  0x1e   : > { %2491 = vst [vmem:[#allocation3_spill] sm:$0xff] %v2089_v51  ;;  %v2094_v52 = vld [vmem:[%s2451_s1 + $0x40] ss:$8 sps:$4 sm:$0xff]   ;;  %2493 = vst [vmem:[#allocation5_spill] sm:$0xff] %v2101_v53  ;;  %v2106_v54 = vld [vmem:[%s2451_s1 + $0x54] ss:$8 sps:$4 sm:$0xff]  }
  0x1f   : > { %2492 = vst [vmem:[#allocation4_spill] sm:$0xff] %v2094_v52  ;;  %2494 = vst [vmem:[#allocation6_spill] sm:$0xff] %v2106_v54  ;;  %v2113_v55 = vld [vmem:[%s2451_s1 + $0xbc] ss:$8 sps:$4 sm:$0xff]   ;;  %v1497_v57 = vld [vmem:[%s2451_s1 + $0xc8] sm:$0x77] }
  0x20   : > { %297 = vmatpush1.bf16.msra.mxu0 %v1914_v19  ;;  %720 = vmatpush1.bf16.msra.mxu1 %v1921_v20  ;;  %2495 = vst [vmem:[#allocation7_spill] sm:$0xff] %v2113_v55  ;;  %v189_v56 = vld [vmem:[%s2451_s1 + $0x60] sm:$0x77]  ;;  %v2126_v58 = vld [vmem:[%s2451_s1 + $0x50] ss:$8 sps:$4 sm:$0xff]   ;;  %v2137_v61 = vcombine.high %v1497_v57, %v1497_v57  ;;  %v1539_v63 = vcombine.low %v1497_v57, %v1497_v57  ;;  %s2558_s28 = smov (!%p168_p4, %s1402_s28), 3 }
  0x21   : > { %298 = vmatprep.subr.bf16.mxu0 %v1926_v21  ;;  %721 = vmatprep.subr.bf16.mxu1 %v1933_v22  ;;  %2496 = vst [vmem:[#allocation8_spill] sm:$0xff] %v2126_v58  ;;  %v2131_v59 = vld [vmem:[%s2451_s1 + $0xb8] ss:$8 sps:$4 sm:$0xff]   ;;  %v2133_v60 = vcombine.high %v189_v56, %v189_v56  ;;  %v1450_v62 = vcombine.low %v189_v56, %v189_v56  ;;  %v2142_v23 = vld [vmem:[%s2451_s1 + $0x1a4] ss:$8 sps:$4 sm:$0xff]   ;;  %s1593_s13 = sshll.u32 %s2558_s28, 3 }
  0x22   : > { %2497 = vst [vmem:[#allocation9_spill] sm:$0xff] %v2131_v59  ;;  %2499 = vst [vmem:[#allocation11_spill] sm:$0xff] %v2137_v61  ;;  %v2154_v29 = vsel %vm281_vm0, %v1539_v63, 0  ;;  %v2159_v30 = vld [vmem:[%s2451_s1 + $0x20c] ss:$8 sps:$4 sm:$0xff]   ;;  %s172_s6 = scalar_lea.vmem %s2453_s3, %s1593_s13 }
  0x23   : > { %2498 = vst [vmem:[#allocation10_spill] sm:$0xff] %v2133_v60  ;;  %2500 = vst [vmem:[#allocation12_spill] sm:$0xff] %v2142_v23  ;;  %v2151_v24 = vsel %vm281_vm0, %v1450_v62, 0  ;;  %v1762_v56 = vld [vmem:[%s1944_s16 + $0xc] sm:$0xff]   ;;  %v2165_v57 = vld [vmem:[%s2451_s1 + $0x1a0] ss:$8 sps:$4 sm:$0xff]  }
  0x24   : > { %299 = vmatpush1.bf16.msra.mxu0 %v1949_v25  ;;  %722 = vmatpush1.bf16.msra.mxu1 %v1954_v26  ;;  %2501 = vst [vmem:[#allocation13_spill] sm:$0xff] %v2151_v24  ;;  %2502 = vst [vmem:[#allocation14_spill] sm:$0xff] %v2154_v29  ;;  %v1725_v62 = vld [vmem:[%s1944_s16] sm:$0xff]   ;;  %v1763_v63 = vld [vmem:[%s1944_s16 + $0x14] ss:$0 sps:$4 sm:$0x11]  }
  0x25   : > { %1435 = vmatprep.subr.msk.bf16.mxu0 %vm281_vm0, %v1958_v27  ;;  %1525 = vmatprep.subr.msk.bf16.mxu1 %vm281_vm0, %v1962_v28  ;;  %2503 = vst [vmem:[#allocation15_spill] sm:$0xff] %v2159_v30  ;;  %2504 = vst [vmem:[#allocation16_spill] sm:$0xff] %v2165_v57  ;;  %vm478_vm2 = vsmask.f32 7424 }
  0x28   : > { %301 = vmatpush1.bf16.msra.mxu0 %v1976_v32  ;;  %724 = vmatpush1.bf16.msra.mxu1 %v1979_v33 }
  0x29   : > { %410 = vmatprep.subr.bf16.mxu0 %v1969_v31  ;;  %825 = vmatprep.subr.bf16.mxu1 %v1984_v34 }
  0x2b   : > { %1436 = vmatmul.mubr.msk.bf16.vlgmr.msra.gmra.mrb[0].mxu0 %vm277_vm1, %v1992_v36  ;;  %1526 = vmatmul.mubr.msk.bf16.vlgmr.msra.gmra.mrb[0].mxu1 %vm277_vm1, %v1992_v36  ;;  %v1102_v36 = vshrl.u32 %v1762_v56, 16 }
  0x2c   : > { %411 = vmatpush1.bf16.msra.mxu0 %v1989_v35  ;;  %826 = vmatpush1.bf16.msra.mxu1 %v1999_v37 }
  0x2d   : > { %412 = vmatprep.subr.bf16.mxu0 %v2006_v38  ;;  %827 = vmatprep.subr.bf16.mxu1 %v2011_v39 }
  0x2e   : > { %442 = vmatprep.mubr.bf16.mxu0 %v2454_v2  ;;  %857 = vmatprep.mubr.bf16.mxu1 %v2454_v2  ;;  %v2170_v2 = vld [vmem:[%s2451_s1 + $0x208] ss:$8 sps:$4 sm:$0xff]  }
  0x2f   : > { %2505 = vst [vmem:[#allocation17_spill] sm:$0xff] %v2170_v2 }
  0x30   : > { %413 = vmatpush1.bf16.msra.mxu0 %v2020_v40  ;;  %828 = vmatpush1.bf16.msra.mxu1 %v2027_v41 }
  0x31   : > { %414 = vmatprep.subr.bf16.mxu0 %v2034_v42  ;;  %829 = vmatprep.subr.bf16.mxu1 %v2039_v43 }
  0x34   : > { %415 = vmatpush1.bf16.msra.mxu0 %v2046_v44  ;;  %830 = vmatpush1.bf16.msra.mxu1 %v2053_v45 }
  0x35   : > { %416 = vmatprep.subr.bf16.mxu0 %v2058_v46  ;;  %831 = vmatprep.subr.bf16.mxu1 %v2065_v47 }
  0x38   : > { %417 = vmatpush1.bf16.msra.mxu0 %v2072_v48  ;;  %832 = vmatpush1.bf16.msra.mxu1 %v2077_v49 }
  0x39   : > { %418 = vmatprep.subr.bf16.mxu0 %v2084_v50  ;;  %833 = vmatprep.subr.bf16.mxu1 %v2089_v51 }
  0x3c   : > { %419 = vmatpush1.bf16.msra.mxu0 %v2094_v52  ;;  %834 = vmatpush1.bf16.msra.mxu1 %v2101_v53 }
  0x3d   : > { %420 = vmatprep.subr.bf16.mxu0 %v2106_v54  ;;  %835 = vmatprep.subr.bf16.mxu1 %v2113_v55 }
  0x40   : > { %421 = vmatpush1.bf16.msra.mxu0 %v2126_v58  ;;  %836 = vmatpush1.bf16.msra.mxu1 %v2131_v59  ;;  %v2186_v59 = vld [vmem:[%s2451_s1 + $0x21c] ss:$8 sps:$4 sm:$0xff]   ;;  %v1109_v58 = vshll.u32 %v1763_v63, 16 }
  0x41   : > { %1452 = vmatprep.subr.msk.bf16.mxu0 %vm281_vm0, %v2133_v60  ;;  %1541 = vmatprep.subr.msk.bf16.mxu1 %vm281_vm0, %v2137_v61  ;;  %v1104_v61 = vshll.u32 %v1762_v56, 16  ;;  %v2181_v60 = vld [vmem:[%s2451_s1 + $0x1b4] ss:$8 sps:$4 sm:$0xff]   ;;  %2507 = vst [vmem:[#allocation19_spill] sm:$0xff] %v2186_v59  ;;  %v2195_v56 = vld [vmem:[%s2451_s1 + $0x1b0] ss:$8 sps:$4 sm:$0xff]  }
  0x42   : > { %2506 = vst [vmem:[#allocation18_spill] sm:$0xff] %v2181_v60  ;;  %2508 = vst [vmem:[#allocation20_spill] sm:$0xff] %v2195_v56  ;;  %v1111_v63 = vrot.slane %v1109_v58, 1  ;;  %v2224_v58 = vld [vmem:[%s2451_s1 + $0x1c0] ss:$8 sps:$4 sm:$0xff]  }
  0x43   : > { %2514 = vst [vmem:[#allocation25_spill] sm:$0xff] %v2224_v58 }
  0x44   : > { %423 = vmatpush1.bf16.msra.mxu0 %v2151_v24  ;;  %838 = vmatpush1.bf16.msra.mxu1 %v2154_v29  ;;  %v1106_v24 = vrot.slane %v1104_v61, 1 }
  0x45   : > { %565 = vmatprep.subr.bf16.mxu0 %v2142_v23  ;;  %953 = vmatprep.subr.bf16.mxu1 %v2159_v30  ;;  %v2200_v30 = vld [vmem:[%s2451_s1 + $0x218] ss:$8 sps:$4 sm:$0xff]  }
  0x46   : > { %2509 = vst [vmem:[#allocation21_spill] sm:$0xff] %v2200_v30  ;;  %v1107_v61 = vor.u32 %v1106_v24, %v1102_v36  ;;  %v2229_v24 = vld [vmem:[%s2451_s1 + $0x228] ss:$8 sps:$4 sm:$0xff]  }
  0x47   : > { %1453 = vmatmul.mubr.msk.bf16.vlgmr.msra.gmra.mrb[0].mxu0 %vm277_vm1, %v1725_v62  ;;  %1542 = vmatmul.mubr.msk.bf16.vlgmr.msra.gmra.mrb[0].mxu1 %vm277_vm1, %v1725_v62  ;;  %v2207_v62 = vld [vmem:[%s2451_s1 + $0x1c4] ss:$8 sps:$4 sm:$0xff]   ;;  %2515 = vst [vmem:[#allocation26_spill] sm:$0xff] %v2229_v24 }
  0x48   : > { %566 = vmatpush1.bf16.msra.mxu0 %v2165_v57  ;;  %954 = vmatpush1.bf16.msra.mxu1 %v2170_v2  ;;  %2510 = vst [vmem:[#allocation22_spill] sm:$0xff] %v2207_v62  ;;  %v2212_v2 = vld [vmem:[%s2451_s1 + $0x22c] ss:$8 sps:$4 sm:$0xff]   ;;  %v2512_v57 = vmov 0   ;;  %v2217_v36 = vsel %vm478_vm2, %v1107_v61, %v1111_v63  ;;  %v2241_v63 = vld [vmem:[%s2451_s1 + $0x23c] ss:$8 sps:$4 sm:$0xff]  }
  0x49   : > { %567 = vmatprep.subr.bf16.mxu0 %v2181_v60  ;;  %955 = vmatprep.subr.bf16.mxu1 %v2186_v59  ;;  %2511 = vst [vmem:[#allocation23_spill] sm:$0xff] %v2212_v2  ;;  %2513 = vst [vmem:[#allocation24_spill] sm:$0xff] %v2217_v36  ;;  %v2236_v61 = vld [vmem:[%s2451_s1 + $0x1d4] ss:$8 sps:$4 sm:$0xff]   ;;  %v2248_v36 = vld [vmem:[%s2451_s1 + $0x1d0] ss:$8 sps:$4 sm:$0xff]  }
  0x4a   : > { %597 = vmatprep.mubr.bf16.mxu0 %v2512_v57  ;;  %985 = vmatprep.mubr.bf16.mxu1 %v2512_v57  ;;  %2516 = vst [vmem:[#allocation27_spill] sm:$0xff] %v2236_v61  ;;  %2517 = vst [vmem:[#allocation28_spill] sm:$0xff] %v2241_v63  ;;  %v2286_v59 = vld [vmem:[%s2451_s1 + $0x1f4] ss:$8 sps:$4 sm:$0xff]   ;;  %v2309_v60 = vld [vmem:[%s2451_s1 + $0x258] ss:$8 sps:$4 sm:$0xff]  }
  0x4b   : > { %2518 = vst [vmem:[#allocation29_spill] sm:$0xff] %v2248_v36 }
  0x4c   : > { %568 = vmatpush1.bf16.msra.mxu0 %v2195_v56  ;;  %956 = vmatpush1.bf16.msra.mxu1 %v2200_v30  ;;  %v2271_v30 = vld [vmem:[%s2451_s1 + $0x1e0] ss:$8 sps:$4 sm:$0xff]  }
  0x4d   : > { %569 = vmatprep.subr.bf16.mxu0 %v2207_v62  ;;  %957 = vmatprep.subr.bf16.mxu1 %v2212_v2  ;;  %v2253_v2 = vld [vmem:[%s2451_s1 + $0x238] ss:$8 sps:$4 sm:$0xff]   ;;  %2522 = vst [vmem:[#allocation33_spill] sm:$0xff] %v2271_v30 }
  0x4e   : > { %2519 = vst [vmem:[#allocation30_spill] sm:$0xff] %v2253_v2  ;;  %v1760_v62 = vld [vmem:[%s1944_s16] sm:$0xff]  }
  0x4f   : > { %v482_v56 = vshll.u32 %v1760_v62, 16  ;;  %v480_v29 = vshrl.u32 %v1760_v62, 16 }
  0x50   : > { %570 = vmatpush1.bf16.msra.mxu0 %v2224_v58  ;;  %958 = vmatpush1.bf16.msra.mxu1 %v2229_v24  ;;  %v2261_v58 = vld [vmem:[%s2451_s1 + $0x1e4] ss:$8 sps:$4 sm:$0xff]  }
  0x51   : > { %571 = vmatprep.subr.bf16.mxu0 %v2236_v61  ;;  %959 = vmatprep.subr.bf16.mxu1 %v2241_v63  ;;  %2520 = vst [vmem:[#allocation31_spill] sm:$0xff] %v2261_v58  ;;  %v2266_v24 = vld [vmem:[%s2451_s1 + $0x24c] ss:$8 sps:$4 sm:$0xff]   ;;  %v2278_v63 = vld [vmem:[%s2451_s1 + $0x248] ss:$8 sps:$4 sm:$0xff]   ;;  %v484_v55 = vrot.slane %v482_v56, 1 }
  0x52   : > { %2521 = vst [vmem:[#allocation32_spill] sm:$0xff] %v2266_v24  ;;  %2523 = vst [vmem:[#allocation34_spill] sm:$0xff] %v2278_v63  ;;  %v1761_v61 = vld [vmem:[%s1944_s16 + $0x8] ss:$0 sps:$4 sm:$0x11]  }
  0x53   : > { %v487_v54 = vshll.u32 %v1761_v61, 16 }
  0x54   : > { %572 = vmatpush1.bf16.msra.mxu0 %v2248_v36  ;;  %960 = vmatpush1.bf16.msra.mxu1 %v2253_v2  ;;  %v2291_v2 = vld [vmem:[%s2451_s1 + $0x25c] ss:$8 sps:$4 sm:$0xff]  }
  0x55   : > { %573 = vmatprep.subr.bf16.mxu0 %v2261_v58  ;;  %961 = vmatprep.subr.bf16.mxu1 %v2266_v24  ;;  %v1466_v36 = vld [vmem:[%s2451_s1 + $0x200] sm:$0x77]  ;;  %v1555_v58 = vld [vmem:[%s2451_s1 + $0x268] sm:$0x77]  ;;  %v2302_v24 = vld [vmem:[%s2451_s1 + $0x1f0] ss:$8 sps:$4 sm:$0xff]  }
  0x56   : > { %v2311_v23 = vcombine.high %v1466_v36, %v1466_v36  ;;  %v2315_v53 = vcombine.high %v1555_v58, %v1555_v58  ;;  %v1481_v52 = vcombine.low %v1466_v36, %v1466_v36  ;;  %v489_v51 = vrot.slane %v487_v54, 1 }
  0x58   : > { %574 = vmatpush1.bf16.msra.mxu0 %v2271_v30  ;;  %962 = vmatpush1.bf16.msra.mxu1 %v2278_v63  ;;  %v1568_v30 = vcombine.low %v1555_v58, %v1555_v58  ;;  %v485_v63 = vor.u32 %v484_v55, %v480_v29  ;;  %v2324_v56 = vsel %vm281_vm0, %v1481_v52, 0 }
  0x59   : > { %575 = vmatprep.subr.bf16.mxu0 %v2286_v59  ;;  %963 = vmatprep.subr.bf16.mxu1 %v2291_v2 }
  0x5a   : > { %v2327_v62 = vsel %vm281_vm0, %v1568_v30, 0  ;;  %v490_v36 = vsel %vm478_vm2, %v485_v63, %v489_v51 }
  0x5c   : > { %576 = vmatpush1.bf16.msra.mxu0 %v2302_v24  ;;  %964 = vmatpush1.bf16.msra.mxu1 %v2309_v60 }
  0x5d   : > { %1483 = vmatprep.subr.msk.bf16.mxu0 %vm281_vm0, %v2311_v23  ;;  %1570 = vmatprep.subr.msk.bf16.mxu1 %vm281_vm0, %v2315_v53 }
  0x60   : > { %578 = vmatpush1.bf16.msra.mxu0 %v2324_v56  ;;  %966 = vmatpush1.bf16.msra.mxu1 %v2327_v62 }
  0x61   : > { %1004 = vmatprep.subr.bf16.mxu0 %v1806_v0  ;;  %1163 = vmatprep.subr.bf16.mxu1 %v1811_v1  ;;  %v2524_v0 = vld [vmem:[#allocation3_spill] sm:$0xff]  ;;  %v2525_v1 = vld [vmem:[#allocation4_spill] sm:$0xff] }
  0x63   : > { %1484 = vmatmul.mubr.msk.bf16.vlgmr.msra.gmra.mrb[0].mxu0 %vm277_vm1, %v490_v36  ;;  %1571 = vmatmul.mubr.msk.bf16.vlgmr.msra.gmra.mrb[0].mxu1 %vm277_vm1, %v490_v36 }
  0x64   : > { %1005 = vmatpush1.bf16.msra.mxu0 %v1819_v3  ;;  %1164 = vmatpush1.bf16.msra.mxu1 %v1824_v4  ;;  %v2526_v3 = vld [vmem:[#allocation5_spill] sm:$0xff]  ;;  %v2527_v4 = vld [vmem:[#allocation6_spill] sm:$0xff] }
  0x65   : > { %1006 = vmatprep.subr.bf16.mxu0 %v1830_v5  ;;  %1165 = vmatprep.subr.bf16.mxu1 %v1837_v6  ;;  %v2528_v5 = vld [vmem:[#allocation7_spill] sm:$0xff]  ;;  %v2529_v6 = vld [vmem:[#allocation8_spill] sm:$0xff] }
  0x66   : > { %1036 = vmatprep.mubr.bf16.mxu0 %v2512_v57  ;;  %1195 = vmatprep.mubr.bf16.mxu1 %v2512_v57 }
  0x68   : > { %1007 = vmatpush1.bf16.msra.mxu0 %v1842_v7  ;;  %1166 = vmatpush1.bf16.msra.mxu1 %v1848_v8  ;;  %v2530_v7 = vld [vmem:[#allocation9_spill] sm:$0xff]  ;;  %v2531_v8 = vld [vmem:[#allocation10_spill] sm:$0xff] }
  0x69   : > { %1008 = vmatprep.subr.bf16.mxu0 %v1854_v9  ;;  %1167 = vmatprep.subr.bf16.mxu1 %v1860_v10  ;;  %v2532_v9 = vld [vmem:[#allocation11_spill] sm:$0xff]  ;;  %v2533_v10 = vld [vmem:[#allocation13_spill] sm:$0xff] }
  0x6c   : > { %1009 = vmatpush1.bf16.msra.mxu0 %v1865_v11  ;;  %1168 = vmatpush1.bf16.msra.mxu1 %v1870_v12  ;;  %v2534_v11 = vld [vmem:[#allocation14_spill] sm:$0xff]  ;;  %v2535_v12 = vld [vmem:[#allocation12_spill] sm:$0xff] }
  0x6d   : > { %1010 = vmatprep.subr.bf16.mxu0 %v1877_v13  ;;  %1169 = vmatprep.subr.bf16.mxu1 %v1884_v14  ;;  %v2536_v13 = vld [vmem:[#allocation15_spill] sm:$0xff]  ;;  %v2537_v14 = vld [vmem:[#allocation2_spill] sm:$0xff] }
  0x70   : > { %1011 = vmatpush1.bf16.msra.mxu0 %v1890_v15  ;;  %1170 = vmatpush1.bf16.msra.mxu1 %v1897_v16  ;;  %v2538_v15 = vld [vmem:[#allocation16_spill] sm:$0xff]  ;;  %v2539_v16 = vld [vmem:[#allocation17_spill] sm:$0xff] }
  0x71   : > { %1012 = vmatprep.subr.bf16.mxu0 %v1902_v17  ;;  %1171 = vmatprep.subr.bf16.mxu1 %v1909_v18  ;;  %v2540_v17 = vld [vmem:[#allocation18_spill] sm:$0xff]  ;;  %v2541_v18 = vld [vmem:[#allocation19_spill] sm:$0xff] }
  0x74   : > { %1013 = vmatpush1.bf16.msra.mxu0 %v1914_v19  ;;  %1172 = vmatpush1.bf16.msra.mxu1 %v1921_v20  ;;  %v2542_v19 = vld [vmem:[#allocation20_spill] sm:$0xff]  ;;  %v2543_v20 = vld [vmem:[#allocation21_spill] sm:$0xff] }
  0x75   : > { %1014 = vmatprep.subr.bf16.mxu0 %v1926_v21  ;;  %1173 = vmatprep.subr.bf16.mxu1 %v1933_v22  ;;  %v2544_v21 = vld [vmem:[#allocation22_spill] sm:$0xff]  ;;  %v2545_v22 = vld [vmem:[#allocation23_spill] sm:$0xff] }
  0x78   : > { %1015 = vmatpush1.bf16.msra.mxu0 %v1949_v25  ;;  %1174 = vmatpush1.bf16.msra.mxu1 %v1954_v26  ;;  %v2546_v25 = vld [vmem:[#allocation25_spill] sm:$0xff]  ;;  %v2547_v26 = vld [vmem:[#allocation26_spill] sm:$0xff] }
  0x79   : > { %1572 = vmatprep.subr.msk.bf16.mxu0 %vm281_vm0, %v1958_v27  ;;  %1583 = vmatprep.subr.msk.bf16.mxu1 %vm281_vm0, %v1962_v28  ;;  %v2548_v27 = vld [vmem:[#allocation27_spill] sm:$0xff]  ;;  %v2549_v28 = vld [vmem:[#allocation28_spill] sm:$0xff] }
  0x7c   : > { %1017 = vmatpush1.bf16.msra.mxu0 %v1976_v32  ;;  %1176 = vmatpush1.bf16.msra.mxu1 %v1979_v33  ;;  %v2551_v32 = vld [vmem:[#allocation30_spill] sm:$0xff]  ;;  %v2552_v33 = vld [vmem:[#allocation31_spill] sm:$0xff] }
  0x7d   : > { %1047 = vmatprep.subr.bf16.mxu0 %v1969_v31  ;;  %1206 = vmatprep.subr.bf16.mxu1 %v1984_v34  ;;  %v2550_v31 = vld [vmem:[#allocation29_spill] sm:$0xff]  ;;  %v2553_v34 = vld [vmem:[#allocation32_spill] sm:$0xff] }
  0x7f   : > { %1573 = vmatmul.mubr.msk.bf16.vlgmr.msra.gmra.mrb[4].mxu0 %vm277_vm1, %v490_v36  ;;  %1584 = vmatmul.mubr.msk.bf16.vlgmr.msra.gmra.mrb[4].mxu1 %vm277_vm1, %v490_v36 }
  0x80   : > { %1048 = vmatpush1.bf16.msra.mxu0 %v1989_v35  ;;  %1207 = vmatpush1.bf16.msra.mxu1 %v1999_v37  ;;  %v2554_v35 = vld [vmem:[#allocation33_spill] sm:$0xff]  ;;  %v2555_v37 = vld [vmem:[#allocation34_spill] sm:$0xff] }
  0x81   : > { %1049 = vmatprep.subr.bf16.mxu0 %v2006_v38  ;;  %1208 = vmatprep.subr.bf16.mxu1 %v2011_v39  ;;  %v2556_v38 = vld [vmem:[#allocation24_spill] sm:$0xff] }
  0x82   : > { %1079 = vmatprep.mubr.bf16.mxu0 %v2512_v57  ;;  %1238 = vmatprep.mubr.bf16.mxu1 %v2512_v57 }
  0x84   : > { %1050 = vmatpush1.bf16.msra.mxu0 %v2020_v40  ;;  %1209 = vmatpush1.bf16.msra.mxu1 %v2027_v41 }
  0x85   : > { %1051 = vmatprep.subr.bf16.mxu0 %v2034_v42  ;;  %1210 = vmatprep.subr.bf16.mxu1 %v2039_v43 }
  0x88   : > { %1052 = vmatpush1.bf16.msra.mxu0 %v2046_v44  ;;  %1211 = vmatpush1.bf16.msra.mxu1 %v2053_v45 }
  0x89   : > { %1053 = vmatprep.subr.bf16.mxu0 %v2058_v46  ;;  %1212 = vmatprep.subr.bf16.mxu1 %v2065_v47 }
  0x8c   : > { %1054 = vmatpush1.bf16.msra.mxu0 %v2072_v48  ;;  %1213 = vmatpush1.bf16.msra.mxu1 %v2077_v49 }
  0x8d   : > { %1055 = vmatprep.subr.bf16.mxu0 %v2084_v50  ;;  %1214 = vmatprep.subr.bf16.mxu1 %v2524_v0  ;;  %v1306_v50 = vlaneseq }
  0x8f   : > { %v1307_v51 = vshrl.u32 %v1306_v50, 7 }
  0x90   : > { %1056 = vmatpush1.bf16.msra.mxu0 %v2525_v1  ;;  %1215 = vmatpush1.bf16.msra.mxu1 %v2526_v3 }
  0x91   : > { %1057 = vmatprep.subr.bf16.mxu0 %v2527_v4  ;;  %1216 = vmatprep.subr.bf16.mxu1 %v2528_v5  ;;  %v1308_v52 = vsub.s32 0, %v1307_v51  ;;  %v1312_v54 = vsub.s32 1, %v1307_v51 }
  0x94   : > { %1058 = vmatpush1.bf16.msra.mxu0 %v2529_v6  ;;  %1217 = vmatpush1.bf16.msra.mxu1 %v2530_v7 }
  0x95   : > { %1574 = vmatprep.subr.msk.bf16.mxu0 %vm281_vm0, %v2531_v8  ;;  %1585 = vmatprep.subr.msk.bf16.mxu1 %vm281_vm0, %v2532_v9 }
  0x98   : > { %1060 = vmatpush1.bf16.msra.mxu0 %v2533_v10  ;;  %1219 = vmatpush1.bf16.msra.mxu1 %v2534_v11 }
  0x99   : > { %1116 = vmatprep.subr.bf16.mxu0 %v2535_v12  ;;  %1249 = vmatprep.subr.bf16.mxu1 %v2536_v13 }
  0x9b   : > { %1575 = vmatmul.mubr.msk.bf16.vlgmr.msra.gmra.mrb[4].mxu0 %vm277_vm1, %v2537_v14  ;;  %1586 = vmatmul.mubr.msk.bf16.vlgmr.msra.gmra.mrb[4].mxu1 %vm277_vm1, %v2537_v14 }
  0x9c   : > { %1117 = vmatpush1.bf16.msra.mxu0 %v2538_v15  ;;  %1250 = vmatpush1.bf16.msra.mxu1 %v2539_v16 }
  0x9d   : > { %1118 = vmatprep.subr.bf16.mxu0 %v2540_v17  ;;  %1251 = vmatprep.subr.bf16.mxu1 %v2541_v18 }
  0x9e   : > { %1148 = vmatprep.mubr.bf16.mxu0 %v2512_v57  ;;  %1281 = vmatprep.mubr.bf16.mxu1 %v2512_v57 }
  0xa0   : > { %1119 = vmatpush1.bf16.msra.mxu0 %v2542_v19  ;;  %1252 = vmatpush1.bf16.msra.mxu1 %v2543_v20 }
  0xa1   : > { %1120 = vmatprep.subr.bf16.mxu0 %v2544_v21  ;;  %1253 = vmatprep.subr.bf16.mxu1 %v2545_v22 }
  0xa4   : > { %1121 = vmatpush1.bf16.msra.mxu0 %v2546_v25  ;;  %1254 = vmatpush1.bf16.msra.mxu1 %v2547_v26 }
  0xa5   : > { %1122 = vmatprep.subr.bf16.mxu0 %v2548_v27  ;;  %1255 = vmatprep.subr.bf16.mxu1 %v2549_v28 }
  0xa8   : > { %1123 = vmatpush1.bf16.msra.mxu0 %v2550_v31  ;;  %1256 = vmatpush1.bf16.msra.mxu1 %v2551_v32 }
  0xa9   : > { %1124 = vmatprep.subr.bf16.mxu0 %v2552_v33  ;;  %1257 = vmatprep.subr.bf16.mxu1 %v2553_v34 }
  0xac   : > { %1125 = vmatpush1.bf16.msra.mxu0 %v2554_v35  ;;  %1258 = vmatpush1.bf16.msra.mxu1 %v2555_v37 }
  0xad   : > { %1126 = vmatprep.subr.bf16.mxu0 %v2286_v59  ;;  %1259 = vmatprep.subr.bf16.mxu1 %v2291_v2 }
  0xb0   : > { %1127 = vmatpush1.bf16.msra.mxu0 %v2302_v24  ;;  %1260 = vmatpush1.bf16.msra.mxu1 %v2309_v60 }
  0xb1   : > { %1581 = vmatprep.subr.msk.bf16.mxu0 %vm281_vm0, %v2311_v23  ;;  %1587 = vmatprep.subr.msk.bf16.mxu1 %vm281_vm0, %v2315_v53  ;;  %v1304_v53 = vld [vmem:[%s2452_s2] sm:$0x3] }
  0xb2   : > { %v1309_v23 = vrot.slane %v1304_v53, %v1308_v52  ;;  %v1313_v58 = vrot.slane %v1304_v53, %v1312_v54 }
  0xb4   : > { %1129 = vmatpush1.bf16.msra.mxu0 %v2324_v56  ;;  %1262 = vmatpush1.bf16.msra.mxu1 %v2327_v62 }
  0xb7   : > { %1582 = vmatmul.mubr.msk.bf16.vlgmr.msra.gmra.mrb[4].mxu0 %vm277_vm1, %v2556_v38  ;;  %1588 = vmatmul.mubr.msk.bf16.vlgmr.msra.gmra.mrb[4].mxu1 %vm277_vm1, %v2556_v38 }
 0x136   : > { %v599_v2 = vpop.f32.mrb[0].mxu0  ;;  %v987_v39 = vpop.f32.mrb[0].mxu1 }
 0x137   : > { %v1000_v40 = vmax.f32 %v599_v2, %v987_v39  ;;  %v601_v41 = vpop.f32.mrb[1].mxu0  ;;  %v989_v42 = vpop.f32.mrb[1].mxu1 }
 0x138   : > { %v1001_v43 = vmax.f32 %v601_v41, %v989_v42  ;;  %v603_v44 = vpop.f32.mrb[2].mxu0  ;;  %v991_v45 = vpop.f32.mrb[2].mxu1 }
 0x139   : > { %v1002_v46 = vmax.f32 %v603_v44, %v991_v45  ;;  %v605_v47 = vpop.f32.mrb[3].mxu0  ;;  %v993_v48 = vpop.f32.mrb[3].mxu1 }
 0x13a   : > { %v1003_v49 = vmax.f32 %v605_v47, %v993_v48 }
 0x18a   : > { %v1150_v55 = vpop.f32.mrb[4].mxu0  ;;  %v1283_v59 = vpop.f32.mrb[4].mxu1 }
 0x18b   : > { %v1296_v60 = vmax.f32 %v1150_v55, %v1283_v59  ;;  %v1152_v29 = vpop.f32.mrb[5].mxu0  ;;  %v1285_v30 = vpop.f32.mrb[5].mxu1 }
 0x18c   : > { %v1297_v57 = vmax.f32 %v1152_v29, %v1285_v30  ;;  %v1154_v24 = vpop.f32.mrb[6].mxu0  ;;  %v1287_v61 = vpop.f32.mrb[6].mxu1 }
 0x18d   : > { %v1300_v63 = vmax.f32 %v1000_v40, %v1296_v60  ;;  %v1298_v56 = vmax.f32 %v1154_v24, %v1287_v61  ;;  %v1156_v62 = vpop.f32.mrb[7].mxu0  ;;  %v1289_v36 = vpop.f32.mrb[7].mxu1 }
 0x18e   : > { %v1301_v0 = vmax.f32 %v1001_v43, %v1297_v57  ;;  %v1299_v1 = vmax.f32 %v1156_v62, %v1289_v36 }
 0x18f   : > { %v1316_v3 = vadd.f32 %v1309_v23, %v1300_v63  ;;  %v1302_v4 = vmax.f32 %v1002_v46, %v1298_v56 }
 0x190   : > { %v1317_v5 = vadd.f32 %v1313_v58, %v1301_v0  ;;  %v1303_v6 = vmax.f32 %v1003_v49, %v1299_v1 }
 0x191   : > { %v1320_v7 = vmax.f32 %v1316_v3, 0.0  ;;  %v1318_v8 = vadd.f32 %v1309_v23, %v1302_v4 }
 0x192   : > { %v1321_v9 = vmax.f32 %v1317_v5, 0.0  ;;  %v1319_v10 = vadd.f32 %v1313_v58, %v1303_v6 }
 0x193   : > { %v1322_v11 = vmax.f32 %v1318_v8, 0.0 }
 0x194   : > { %v1594_v12 = vpack.c.bf16 %v1321_v9, %v1320_v7  ;;  %v1323_v13 = vmax.f32 %v1319_v10, 0.0 }
 0x196   : > { %1336 = vst [vmem:[%s172_s6] sm:$0xff] %v1594_v12  ;;  %v1595_v14 = vpack.c.bf16 %v1323_v13, %v1322_v11 }
 0x198   : > { %1337 = vst [vmem:[%s172_s6 + $0x8] sm:$0xff] %v1595_v14 }
 0x199 PF: > { %s13_s12 = sadd.s32 1, %s1770_s12  }
 0x19a   : > { %p10_p5 = scmp.ge.s32.totalorder %s13_s12, 4  }
 0x19c   :  { %12 = sbr.rel (!%p10_p5) target bundleno = 1 (0x1), region = 68 }

// kernel: tile.18
= control target key start
LH: loop header
LB: loop body
LE: loop exit
PB: predicated region body
PF: predicated region fallthrough
CT: control target
= control target key end

     0   :  { %s22_s0 = inlined_call_operand.vmem [shape: f32[32], index: 0, kind: input, shape index: {}]   ;;  %s23_s1 = inlined_call_operand.vmem [shape: f32[8,32], index: 1, kind: output, shape index: {}]  }
   0x1   :  { %v4_v0 = vld [vmem:[%s22_s0] ss:$0 sm:$0xff] }
   0x2   :  { %5 = vst [vmem:[%s23_s1] sm:$0xff] %v4_v0 }

// kernel: tile.19
= control target key start
LH: loop header
LB: loop body
LE: loop exit
PB: predicated region body
PF: predicated region fallthrough
CT: control target
= control target key end

     0   :  { %s7_s6 = smov 3  ;;  %s14_s9 = smov 3  ;;  %vm4_vm0 = vcmask 261120   ;;  %vm11_vm1 = vcmask 1048320   ;;  %vm18_vm2 = vcmask 785920   ;;  %vm25_vm3 = vcmask 523520   ;;  %s76_s0 = inlined_call_operand.vmem [shape: f32[8,32], index: 0, kind: input, shape index: {}]   ;;  %s77_s1 = inlined_call_operand.vmem [shape: f32[1,256], index: 1, kind: output, shape index: {}]  }
   0x1   :  { %v38_v0 = vld [vmem:[%s76_s0 + $0x3] ss:$4 sm:%s7_s6]   ;;  %s45_s10 = smov 96   ;;  %s21_s11 = smov 3  ;;  %v39_v1 = vld [vmem:[%s76_s0 + $0x2] ss:$4 sm:%s14_s9]  }
   0x2   :  { %9 = vrot.lane.b32.xlu0 %v38_v0, %s45_s10  ;;  %v40_v2 = vld [vmem:[%s76_s0 + $0x1] ss:$4 sm:%s21_s11]   ;;  %s2_s16 = smov 3  ;;  %s46_s17 = smov 32  }
   0x3   :  { %23 = vrot.lane.b32.xlu1 %v40_v2, %s46_s17  ;;  %v3_v3 = vld [vmem:[%s76_s0] ss:$4 sm:%s2_s16]   ;;  %s47_s0 = smov 64  }
   0x4   :  { %5 = vst.msk [vmem:[#allocation0] ss:$8 sm:$0x3] %vm4_vm0, %v3_v3  }
   0x6   :  { %16 = vrot.lane.b32.xlu0 %v39_v1, %s47_s0 }
  0x74   :  { %v10_v4 = vpop.permute.xlu0 %9  }
  0x75   :  { %12 = vst.msk [vmem:[#allocation0] ss:$8 sm:$0x3] %vm11_vm1, %v10_v4   ;;  %v24_v5 = vpop.permute.xlu1 %23  }
  0x78   :  { %v17_v6 = vpop.permute.xlu0 %16  }
  0x79   :  { %19 = vst.msk [vmem:[#allocation0] ss:$8 sm:$0x3] %vm18_vm2, %v17_v6  }
  0x7a   :  { %26 = vst.msk [vmem:[#allocation0] ss:$8 sm:$0x3] %vm25_vm3, %v24_v5  }
  0x81   :  { %v30_v7 = vld [vmem:[#allocation0] sm:$0x1]  ;;  %v34_v8 = vld [vmem:[#allocation0 + $0x8] sm:$0x1] }
  0x82   :  { %32 = vst [vmem:[%s77_s1] sm:$0x1] %v30_v7  ;;  %41 = vst [vmem:[%s77_s1 + $0x1] sm:$0x1] %v34_v8 }

// kernel: basic_cnn_forward.4
= control target key start
LH: loop header
LB: loop body
LE: loop exit
PB: predicated region body
PF: predicated region fallthrough
CT: control target
= control target key end

     0   :  { %s3643_s12 = smov 0   ;;  %s5183_s0 = inlined_call_operand.vmem [shape: bf16[2,2,9,288], index: 0, kind: input, shape index: {}]   ;;  %s5184_s1 = inlined_call_operand.vmem [shape: bf16[3,2,288,256], index: 1, kind: input, shape index: {}]   ;;  %s5185_s2 = inlined_call_operand.vmem [shape: f32[1,256], index: 2, kind: input, shape index: {}]   ;;  %s5186_s3 = inlined_call_operand.vmem [shape: bf16[16,256], index: 3, kind: output, shape index: {}]  }
   0x1 LB: > { %s2669_s13 = sadd.s32 4294967295, %s3620_s12   ;;  %p2673_p0 = scmp.ge.s32.totalorder %s3620_s12, 1  ;;  %s3620_s12 = sphi %s3643_s12, %s13_s12  }
   0x2   : > { %p137_p1 = scmp.lt.s32.totalorder %s3620_s12, 3 }
   0x4   : > { %p138_p2 = pnand %p2673_p0, %p137_p1 }
   0x6   : > { %141 = sbr.rel (%p138_p2) target bundleno = 695 (0x2b7), region = 32 }
   0xd   : > { %v3198_v0 = vld [vmem:[%s5184_s1 + $0x244] ss:$8 sps:$4 sm:$0xff]   ;;  %v3202_v2 = vld [vmem:[%s5184_s1 + $0x240] ss:$8 sps:$4 sm:$0xff]   ;;  %v3204_v4 = vld [vmem:[%s5184_s1 + $0x254] ss:$8 sps:$4 sm:$0xff]  }
   0xe   : > { %v3200_v1 = vld [vmem:[%s5184_s1 + $0x364] ss:$8 sps:$4 sm:$0xff]   ;;  %444 = vmatprep.subr.bf16.mxu0 %v3198_v0  ;;  %v3203_v3 = vld [vmem:[%s5184_s1 + $0x360] ss:$8 sps:$4 sm:$0xff]   ;;  %v3206_v5 = vld [vmem:[%s5184_s1 + $0x374] ss:$8 sps:$4 sm:$0xff]  }
   0xf   : > { %1399 = vmatprep.subr.bf16.mxu1 %v3200_v1  ;;  %445 = vmatpush1.bf16.msra.mxu0 %v3202_v2  ;;  %v3208_v6 = vld [vmem:[%s5184_s1 + $0x250] ss:$8 sps:$4 sm:$0xff]   ;;  %v3210_v8 = vld [vmem:[%s5184_s1 + $0x264] ss:$8 sps:$4 sm:$0xff]   ;;  %v3214_v10 = vld [vmem:[%s5184_s1 + $0x260] ss:$8 sps:$4 sm:$0xff]  }
  0x10   : > { %1400 = vmatpush1.bf16.msra.mxu1 %v3203_v3  ;;  %446 = vmatprep.subr.bf16.mxu0 %v3204_v4  ;;  %v3209_v7 = vld [vmem:[%s5184_s1 + $0x370] ss:$8 sps:$4 sm:$0xff]   ;;  %v3212_v9 = vld [vmem:[%s5184_s1 + $0x384] ss:$8 sps:$4 sm:$0xff]   ;;  %v3215_v11 = vld [vmem:[%s5184_s1 + $0x380] ss:$8 sps:$4 sm:$0xff]  }
  0x11   : > { %1401 = vmatprep.subr.bf16.mxu1 %v3206_v5  ;;  %v3216_v12 = vld [vmem:[%s5184_s1 + $0x274] ss:$8 sps:$4 sm:$0xff]   ;;  %v3220_v14 = vld [vmem:[%s5184_s1 + $0x270] ss:$8 sps:$4 sm:$0xff]   ;;  %v3222_v16 = vld [vmem:[%s5184_s1 + $0x284] ss:$8 sps:$4 sm:$0xff]  }
  0x12   : > { %v3218_v13 = vld [vmem:[%s5184_s1 + $0x394] ss:$8 sps:$4 sm:$0xff]   ;;  %v3221_v15 = vld [vmem:[%s5184_s1 + $0x390] ss:$8 sps:$4 sm:$0xff]   ;;  %v3224_v17 = vld [vmem:[%s5184_s1 + $0x3a4] ss:$8 sps:$4 sm:$0xff]  }
  0x13   : > { %447 = vmatpush1.bf16.msra.mxu0 %v3208_v6  ;;  %v3226_v18 = vld [vmem:[%s5184_s1 + $0x280] ss:$8 sps:$4 sm:$0xff]   ;;  %v3228_v20 = vld [vmem:[%s5184_s1 + $0x294] ss:$8 sps:$4 sm:$0xff]   ;;  %v3232_v22 = vld [vmem:[%s5184_s1 + $0x290] ss:$8 sps:$4 sm:$0xff]  }
  0x14   : > { %1402 = vmatpush1.bf16.msra.mxu1 %v3209_v7  ;;  %448 = vmatprep.subr.bf16.mxu0 %v3210_v8  ;;  %v3227_v19 = vld [vmem:[%s5184_s1 + $0x3a0] ss:$8 sps:$4 sm:$0xff]   ;;  %v3230_v21 = vld [vmem:[%s5184_s1 + $0x3b4] ss:$8 sps:$4 sm:$0xff]   ;;  %v3233_v23 = vld [vmem:[%s5184_s1 + $0x3b0] ss:$8 sps:$4 sm:$0xff]  }
  0x15   : > { %1403 = vmatprep.subr.bf16.mxu1 %v3212_v9  ;;  %v3234_v24 = vld [vmem:[%s5184_s1 + $0x2a4] ss:$8 sps:$4 sm:$0xff]   ;;  %v3238_v26 = vld [vmem:[%s5184_s1 + $0x2a0] ss:$8 sps:$4 sm:$0xff]   ;;  %v3240_v28 = vld [vmem:[%s5184_s1 + $0x2b4] ss:$8 sps:$4 sm:$0xff]  }
  0x16   : > { %v3236_v25 = vld [vmem:[%s5184_s1 + $0x3c4] ss:$8 sps:$4 sm:$0xff]   ;;  %v3239_v27 = vld [vmem:[%s5184_s1 + $0x3c0] ss:$8 sps:$4 sm:$0xff]   ;;  %v3242_v29 = vld [vmem:[%s5184_s1 + $0x3d4] ss:$8 sps:$4 sm:$0xff]  }
  0x17   : > { %449 = vmatpush1.bf16.msra.mxu0 %v3214_v10  ;;  %v3244_v30 = vld [vmem:[%s5184_s1 + $0x2b0] ss:$8 sps:$4 sm:$0xff]   ;;  %p161_p3 = scmp.lt.s32.totalorder %s2669_s13, 1  ;;  %v3246_v32 = vld [vmem:[%s5184_s1 + $0x2c4] ss:$8 sps:$4 sm:$0xff]   ;;  %vm440_vm0 = vcmask 261120  }
  0x18   : > { %1404 = vmatpush1.bf16.msra.mxu1 %v3215_v11  ;;  %450 = vmatprep.subr.bf16.mxu0 %v3216_v12  ;;  %v3245_v31 = vld [vmem:[%s5184_s1 + $0x3d0] ss:$8 sps:$4 sm:$0xff]   ;;  %v3248_v33 = vld [vmem:[%s5184_s1 + $0x3e4] ss:$8 sps:$4 sm:$0xff]   ;;  %v3250_v34 = vld [vmem:[%s5184_s1 + $0x2c0] ss:$8 sps:$4 sm:$0xff]  }
  0x19   : > { %1405 = vmatprep.subr.bf16.mxu1 %v3218_v13  ;;  %v3251_v35 = vld [vmem:[%s5184_s1 + $0x3e0] ss:$8 sps:$4 sm:$0xff]   ;;  %s5450_s13 = smov (!%p161_p3, %s2669_s13), 1  ;;  %v3252_v36 = vld [vmem:[%s5184_s1 + $0x2d4] ss:$8 sps:$4 sm:$0xff]   ;;  %v5187_v13 = vmov 0  }
  0x1a   : > { %v3254_v37 = vld [vmem:[%s5184_s1 + $0x3f4] ss:$8 sps:$4 sm:$0xff]   ;;  %v3256_v38 = vld [vmem:[%s5184_s1 + $0x2d0] ss:$8 sps:$4 sm:$0xff]   ;;  %s3188_s17 = smul.u32 48, %s5450_s13  ;;  %s3106_s27 = sshll.u32 %s5450_s13, 3 }
  0x1b   : > { %451 = vmatpush1.bf16.msra.mxu0 %v3220_v14  ;;  %v3257_v39 = vld [vmem:[%s5184_s1 + $0x3f0] ss:$8 sps:$4 sm:$0xff]   ;;  %v3258_v40 = vld [vmem:[%s5184_s1 + $0x2e4] ss:$8 sps:$4 sm:$0xff]   ;;  %v3262_v42 = vld [vmem:[%s5184_s1 + $0x2e0] ss:$8 sps:$4 sm:$0xff]   ;;  %s170_s4 = scalar_lea.vmem %s5186_s3, %s3106_s27 }
  0x1c   : > { %1406 = vmatpush1.bf16.msra.mxu1 %v3221_v15  ;;  %452 = vmatprep.subr.bf16.mxu0 %v3222_v16  ;;  %v3260_v41 = vld [vmem:[%s5184_s1 + $0x404] ss:$8 sps:$4 sm:$0xff]   ;;  %v3263_v43 = vld [vmem:[%s5184_s1 + $0x400] ss:$8 sps:$4 sm:$0xff]   ;;  %s3793_s30 = scalar_lea.vmem %s5183_s0, %s3188_s17  ;;  %v3264_v44 = vld [vmem:[%s5184_s1 + $0x2f4] ss:$8 sps:$4 sm:$0xff]  }
  0x1d   : > { %1407 = vmatprep.subr.bf16.mxu1 %v3224_v17  ;;  %v3266_v45 = vld [vmem:[%s5184_s1 + $0x414] ss:$8 sps:$4 sm:$0xff]   ;;  %v3268_v47 = vld [vmem:[%s5184_s1 + $0x2f0] ss:$8 sps:$4 sm:$0xff]   ;;  %v3270_v50 = vld [vmem:[%s5184_s1 + $0x304] ss:$8 sps:$4 sm:$0xff]  }
  0x1e   : > { %v2677_v46 = vld [vmem:[%s3793_s30 + $0x18] sm:$0xff]  ;;  %v3272_v51 = vld [vmem:[%s5184_s1 + $0x424] ss:$8 sps:$4 sm:$0xff]   ;;  %v3274_v52 = vld [vmem:[%s5184_s1 + $0x300] ss:$8 sps:$4 sm:$0xff]  }
  0x1f   : > { %453 = vmatpush1.bf16.msra.mxu0 %v3226_v18  ;;  %v3805_v48 = vcombine.high %v2677_v46, %v2677_v46  ;;  %v3269_v49 = vld [vmem:[%s5184_s1 + $0x410] ss:$8 sps:$4 sm:$0xff]   ;;  %v3275_v53 = vld [vmem:[%s5184_s1 + $0x420] ss:$8 sps:$4 sm:$0xff]   ;;  %v3276_v54 = vld [vmem:[%s5184_s1 + $0x314] ss:$8 sps:$4 sm:$0xff]   ;;  %v3866_v4 = vcombine.low %v2677_v46, %v2677_v46 }
  0x20   : > { %1408 = vmatpush1.bf16.msra.mxu1 %v3227_v19  ;;  %454 = vmatprep.subr.bf16.mxu0 %v3228_v20  ;;  %v3278_v55 = vld [vmem:[%s5184_s1 + $0x434] ss:$8 sps:$4 sm:$0xff]   ;;  %v3280_v56 = vld [vmem:[%s5184_s1 + $0x310] ss:$8 sps:$4 sm:$0xff]   ;;  %v3282_v58 = vld [vmem:[%s5184_s1 + $0x324] ss:$8 sps:$4 sm:$0xff]  }
  0x21   : > { %1409 = vmatprep.subr.bf16.mxu1 %v3230_v21  ;;  %476 = vmatprep.mubr.bf16.mxu0 %v3805_v48  ;;  %v3281_v57 = vld [vmem:[%s5184_s1 + $0x430] ss:$8 sps:$4 sm:$0xff]   ;;  %v3284_v59 = vld [vmem:[%s5184_s1 + $0x444] ss:$8 sps:$4 sm:$0xff]   ;;  %v3286_v60 = vld [vmem:[%s5184_s1 + $0x320] ss:$8 sps:$4 sm:$0xff]  }
  0x22   : > { %1431 = vmatprep.mubr.bf16.mxu1 %v3805_v48  ;;  %v3287_v61 = vld [vmem:[%s5184_s1 + $0x440] ss:$8 sps:$4 sm:$0xff]   ;;  %v3288_v62 = vld [vmem:[%s5184_s1 + $0x334] ss:$8 sps:$4 sm:$0xff]   ;;  %v3292_v0 = vld [vmem:[%s5184_s1 + $0x330] ss:$8 sps:$4 sm:$0xff]  }
  0x23   : > { %455 = vmatpush1.bf16.msra.mxu0 %v3232_v22  ;;  %v3290_v63 = vld [vmem:[%s5184_s1 + $0x454] ss:$8 sps:$4 sm:$0xff]   ;;  %v3293_v1 = vld [vmem:[%s5184_s1 + $0x450] ss:$8 sps:$4 sm:$0xff]   ;;  %v3298_v2 = vld [vmem:[%s5184_s1 + $0x344] ss:$8 sps:$4 sm:$0xff]  }
  0x24   : > { %1410 = vmatpush1.bf16.msra.mxu1 %v3233_v23  ;;  %456 = vmatprep.subr.bf16.mxu0 %v3234_v24  ;;  %v3301_v3 = vld [vmem:[%s5184_s1 + $0x464] ss:$8 sps:$4 sm:$0xff]   ;;  %5276 = vst [vmem:[#allocation2_spill] sm:$0xff] %v3866_v4  ;;  %v3296_v5 = vld [vmem:[%s5184_s1 + $0x340] ss:$8 sps:$4 sm:$0xff]  }
  0x25   : > { %1411 = vmatprep.subr.bf16.mxu1 %v3236_v25  ;;  %v3299_v6 = vld [vmem:[%s5184_s1 + $0x460] ss:$8 sps:$4 sm:$0xff]   ;;  %v3304_v7 = vld [vmem:[%s5184_s1 + $0x354] ss:$8 sps:$4 sm:$0xff]   ;;  %v3302_v9 = vld [vmem:[%s5184_s1 + $0x350] ss:$8 sps:$4 sm:$0xff]  }
  0x26   : > { %v3307_v8 = vld [vmem:[%s5184_s1 + $0x474] ss:$8 sps:$4 sm:$0xff]   ;;  %v3305_v10 = vld [vmem:[%s5184_s1 + $0x470] ss:$8 sps:$4 sm:$0xff]   ;;  %v3310_v11 = vld [vmem:[%s5184_s1 + $0x4] ss:$8 sps:$4 sm:$0xff]  }
  0x27   : > { %457 = vmatpush1.bf16.msra.mxu0 %v3238_v26  ;;  %v3313_v12 = vld [vmem:[%s5184_s1 + $0x124] ss:$8 sps:$4 sm:$0xff]   ;;  %v3308_v14 = vld [vmem:[%s5184_s1] ss:$8 sps:$4 sm:$0xff]   ;;  %v3317_v17 = vld [vmem:[%s5184_s1 + $0x14] ss:$8 sps:$4 sm:$0xff]  }
  0x28   : > { %1412 = vmatpush1.bf16.msra.mxu1 %v3239_v27  ;;  %458 = vmatprep.subr.bf16.mxu0 %v3240_v28  ;;  %v3314_v15 = vld [vmem:[%s3793_s30 + $0x20] ss:$0 sps:$4 sm:$0xff]   ;;  %v3320_v18 = vld [vmem:[%s5184_s1 + $0x134] ss:$8 sps:$4 sm:$0xff]   ;;  %v3914_v19 = vld [vmem:[%s5184_s1 + $0x10] ss:$8 sps:$4 sm:$0xff]  }
  0x29   : > { %1413 = vmatprep.subr.bf16.mxu1 %v3242_v29  ;;  %v3311_v16 = vld [vmem:[%s5184_s1 + $0x120] ss:$8 sps:$4 sm:$0xff]   ;;  %v3919_v20 = vld [vmem:[%s5184_s1 + $0x130] ss:$8 sps:$4 sm:$0xff]   ;;  %v3924_v21 = vld [vmem:[%s5184_s1 + $0x24] ss:$8 sps:$4 sm:$0xff]  }
  0x2a   : > { %v3929_v22 = vld [vmem:[%s5184_s1 + $0x144] ss:$8 sps:$4 sm:$0xff]   ;;  %v3934_v23 = vld [vmem:[%s5184_s1 + $0x20] ss:$8 sps:$4 sm:$0xff]   ;;  %v3946_v25 = vld [vmem:[%s5184_s1 + $0x34] ss:$8 sps:$4 sm:$0xff]  }
  0x2b   : > { %459 = vmatpush1.bf16.msra.mxu0 %v3244_v30  ;;  %v3941_v24 = vld [vmem:[%s5184_s1 + $0x140] ss:$8 sps:$4 sm:$0xff]   ;;  %v3953_v26 = vld [vmem:[%s5184_s1 + $0x154] ss:$8 sps:$4 sm:$0xff]   ;;  %v3958_v27 = vld [vmem:[%s5184_s1 + $0x30] ss:$8 sps:$4 sm:$0xff]  }
  0x2c   : > { %1414 = vmatpush1.bf16.msra.mxu1 %v3245_v31  ;;  %460 = vmatprep.subr.bf16.mxu0 %v3246_v32  ;;  %v3965_v28 = vld [vmem:[%s5184_s1 + $0x150] ss:$8 sps:$4 sm:$0xff]   ;;  %v3970_v29 = vld [vmem:[%s5184_s1 + $0x44] ss:$8 sps:$4 sm:$0xff]   ;;  %v3982_v31 = vld [vmem:[%s5184_s1 + $0x40] ss:$8 sps:$4 sm:$0xff]  }
  0x2d   : > { %1415 = vmatprep.subr.bf16.mxu1 %v3248_v33  ;;  %v3977_v30 = vld [vmem:[%s5184_s1 + $0x164] ss:$8 sps:$4 sm:$0xff]   ;;  %v3987_v32 = vld [vmem:[%s5184_s1 + $0x160] ss:$8 sps:$4 sm:$0xff]   ;;  %v4066_v46 = vld [vmem:[%s5184_s1 + $0x190] ss:$8 sps:$4 sm:$0xff]  }
  0x2e   : > { %v3990_v33 = vld [vmem:[%s3793_s30] sm:$0xff] }
  0x2f   : > { %461 = vmatpush1.bf16.msra.mxu0 %v3250_v34  ;;  %v3997_v34 = vld [vmem:[%s5184_s1 + $0x54] ss:$8 sps:$4 sm:$0xff]  }
  0x30   : > { %1416 = vmatpush1.bf16.msra.mxu1 %v3251_v35  ;;  %462 = vmatprep.subr.bf16.mxu0 %v3252_v36  ;;  %v2756_v35 = vcombine.high %v3990_v33, %v3990_v33  ;;  %v4006_v36 = vld [vmem:[%s5184_s1 + $0x174] ss:$8 sps:$4 sm:$0xff]  }
  0x31   : > { %1417 = vmatprep.subr.bf16.mxu1 %v3254_v37  ;;  %v4011_v37 = vld [vmem:[%s5184_s1 + $0x50] ss:$8 sps:$4 sm:$0xff]  }
  0x33   : > { %463 = vmatpush1.bf16.msra.mxu0 %v3256_v38  ;;  %v4016_v38 = vld [vmem:[%s5184_s1 + $0x170] ss:$8 sps:$4 sm:$0xff]  }
  0x34   : > { %1418 = vmatpush1.bf16.msra.mxu1 %v3257_v39  ;;  %464 = vmatprep.subr.bf16.mxu0 %v3258_v40  ;;  %v4023_v39 = vld [vmem:[%s5184_s1 + $0x64] ss:$8 sps:$4 sm:$0xff]  }
  0x35   : > { %1419 = vmatprep.subr.bf16.mxu1 %v3260_v41  ;;  %v4030_v40 = vld [vmem:[%s5184_s1 + $0x184] ss:$8 sps:$4 sm:$0xff]   ;;  %v4035_v41 = vld [vmem:[%s5184_s1 + $0x60] ss:$8 sps:$4 sm:$0xff]  }
  0x37   : > { %465 = vmatpush1.bf16.msra.mxu0 %v3262_v42  ;;  %v4042_v42 = vld [vmem:[%s5184_s1 + $0x180] ss:$8 sps:$4 sm:$0xff]  }
  0x38   : > { %1420 = vmatpush1.bf16.msra.mxu1 %v3263_v43  ;;  %466 = vmatprep.subr.bf16.mxu0 %v3264_v44  ;;  %v4049_v43 = vld [vmem:[%s5184_s1 + $0x74] ss:$8 sps:$4 sm:$0xff]  }
  0x39   : > { %1421 = vmatprep.subr.bf16.mxu1 %v3266_v45  ;;  %v4054_v44 = vld [vmem:[%s5184_s1 + $0x194] ss:$8 sps:$4 sm:$0xff]   ;;  %v4061_v45 = vld [vmem:[%s5184_s1 + $0x70] ss:$8 sps:$4 sm:$0xff]  }
  0x3b   : > { %467 = vmatpush1.bf16.msra.mxu0 %v3268_v47  ;;  %v4073_v47 = vld [vmem:[%s5184_s1 + $0x84] ss:$8 sps:$4 sm:$0xff]  }
  0x3c   : > { %1422 = vmatpush1.bf16.msra.mxu1 %v3269_v49  ;;  %468 = vmatprep.subr.bf16.mxu0 %v3270_v50  ;;  %v4078_v49 = vld [vmem:[%s5184_s1 + $0x1a4] ss:$8 sps:$4 sm:$0xff]   ;;  %v4085_v50 = vld [vmem:[%s5184_s1 + $0x80] ss:$8 sps:$4 sm:$0xff]  }
  0x3d   : > { %1423 = vmatprep.subr.bf16.mxu1 %v3272_v51  ;;  %v4090_v51 = vld [vmem:[%s5184_s1 + $0x1a0] ss:$8 sps:$4 sm:$0xff]  }
  0x3f   : > { %469 = vmatpush1.bf16.msra.mxu0 %v3274_v52  ;;  %v4097_v52 = vld [vmem:[%s5184_s1 + $0x94] ss:$8 sps:$4 sm:$0xff]  }
  0x40   : > { %1424 = vmatpush1.bf16.msra.mxu1 %v3275_v53  ;;  %470 = vmatprep.subr.bf16.mxu0 %v3276_v54  ;;  %v4102_v53 = vld [vmem:[%s5184_s1 + $0x1b4] ss:$8 sps:$4 sm:$0xff]   ;;  %v4109_v54 = vld [vmem:[%s5184_s1 + $0x90] ss:$8 sps:$4 sm:$0xff]  }
  0x41   : > { %1425 = vmatprep.subr.bf16.mxu1 %v3278_v55  ;;  %v4114_v55 = vld [vmem:[%s5184_s1 + $0x1b0] ss:$8 sps:$4 sm:$0xff]  }
  0x43   : > { %471 = vmatpush1.bf16.msra.mxu0 %v3280_v56  ;;  %v4121_v56 = vld [vmem:[%s5184_s1 + $0xa4] ss:$8 sps:$4 sm:$0xff]  }
  0x44   : > { %1426 = vmatpush1.bf16.msra.mxu1 %v3281_v57  ;;  %472 = vmatprep.subr.bf16.mxu0 %v3282_v58  ;;  %v4126_v57 = vld [vmem:[%s5184_s1 + $0x1c4] ss:$8 sps:$4 sm:$0xff]   ;;  %v4133_v58 = vld [vmem:[%s5184_s1 + $0xa0] ss:$8 sps:$4 sm:$0xff]  }
  0x45   : > { %1427 = vmatprep.subr.bf16.mxu1 %v3284_v59  ;;  %v4138_v59 = vld [vmem:[%s5184_s1 + $0x1c0] ss:$8 sps:$4 sm:$0xff]  }
  0x47   : > { %473 = vmatpush1.bf16.msra.mxu0 %v3286_v60  ;;  %v4145_v60 = vld [vmem:[%s5184_s1 + $0xb4] ss:$8 sps:$4 sm:$0xff]  }
  0x48   : > { %1428 = vmatpush1.bf16.msra.mxu1 %v3287_v61  ;;  %474 = vmatprep.subr.bf16.mxu0 %v3288_v62  ;;  %v4150_v61 = vld [vmem:[%s5184_s1 + $0x1d4] ss:$8 sps:$4 sm:$0xff]   ;;  %v4157_v62 = vld [vmem:[%s5184_s1 + $0xb0] ss:$8 sps:$4 sm:$0xff]  }
  0x49   : > { %1429 = vmatprep.subr.bf16.mxu1 %v3290_v63  ;;  %v4162_v63 = vld [vmem:[%s5184_s1 + $0x1d0] ss:$8 sps:$4 sm:$0xff]  }
  0x4b   : > { %475 = vmatpush1.bf16.msra.mxu0 %v3292_v0  ;;  %v4169_v0 = vld [vmem:[%s5184_s1 + $0xc4] ss:$8 sps:$4 sm:$0xff]  }
  0x4c   : > { %1430 = vmatpush1.bf16.msra.mxu1 %v3293_v1  ;;  %485 = vmatprep.subr.bf16.mxu0 %v3298_v2  ;;  %v4174_v1 = vld [vmem:[%s5184_s1 + $0x1e4] ss:$8 sps:$4 sm:$0xff]   ;;  %v4181_v2 = vld [vmem:[%s5184_s1 + $0xc0] ss:$8 sps:$4 sm:$0xff]  }
  0x4d   : > { %1440 = vmatprep.subr.bf16.mxu1 %v3301_v3  ;;  %v4186_v3 = vld [vmem:[%s5184_s1 + $0x1e0] ss:$8 sps:$4 sm:$0xff]  }
  0x4e   : > { %477 = vmatmul.mubr.bf16.vlgmr.msra.gmra.mrb[0].mxu0 %v3866_v4 }
  0x4f   : > { %1432 = vmatmul.mubr.bf16.vlgmr.msra.gmra.mrb[0].mxu1 %v3866_v4  ;;  %486 = vmatpush1.bf16.msra.mxu0 %v3296_v5  ;;  %v4193_v5 = vld [vmem:[%s5184_s1 + $0xd4] ss:$8 sps:$4 sm:$0xff]   ;;  %v4277_v4 = vld [vmem:[%s5184_s1 + $0x100] ss:$8 sps:$4 sm:$0xff]  }
  0x50   : > { %1441 = vmatpush1.bf16.msra.mxu1 %v3299_v6  ;;  %487 = vmatprep.subr.bf16.mxu0 %v3304_v7  ;;  %v4198_v6 = vld [vmem:[%s5184_s1 + $0x1f4] ss:$8 sps:$4 sm:$0xff]   ;;  %v4205_v7 = vld [vmem:[%s5184_s1 + $0xd0] ss:$8 sps:$4 sm:$0xff]   ;;  %5288 = vst [vmem:[#allocation14_spill] sm:$0xff] %v4277_v4 }
  0x51   : > { %1442 = vmatprep.subr.bf16.mxu1 %v3307_v8  ;;  %517 = vmatprep.mubr.bf16.mxu0 %v5187_v13  ;;  %v4210_v8 = vld [vmem:[%s5184_s1 + $0x1f0] ss:$8 sps:$4 sm:$0xff]  }
  0x52   : > { %1472 = vmatprep.mubr.bf16.mxu1 %v5187_v13  ;;  %5277 = vst [vmem:[#allocation3_spill] sm:$0xff] %v4210_v8  ;;  %v2755_v13 = vcombine.low %v3990_v33, %v3990_v33 }
  0x53   : > { %488 = vmatpush1.bf16.msra.mxu0 %v3302_v9  ;;  %v4217_v9 = vld [vmem:[%s5184_s1 + $0xe4] ss:$8 sps:$4 sm:$0xff]  }
  0x54   : > { %1443 = vmatpush1.bf16.msra.mxu1 %v3305_v10  ;;  %719 = vmatprep.subr.bf16.mxu0 %v3310_v11  ;;  %5278 = vst [vmem:[#allocation4_spill] sm:$0xff] %v4217_v9  ;;  %v4222_v10 = vld [vmem:[%s5184_s1 + $0x204] ss:$8 sps:$4 sm:$0xff]   ;;  %v4229_v11 = vld [vmem:[%s5184_s1 + $0xe0] ss:$8 sps:$4 sm:$0xff]  }
  0x55   : > { %1661 = vmatprep.subr.bf16.mxu1 %v3313_v12  ;;  %5279 = vst [vmem:[#allocation5_spill] sm:$0xff] %v4222_v10  ;;  %5280 = vst [vmem:[#allocation6_spill] sm:$0xff] %v4229_v11  ;;  %v4234_v12 = vld [vmem:[%s5184_s1 + $0x200] ss:$8 sps:$4 sm:$0xff]  }
  0x56   : > { %5281 = vst [vmem:[#allocation7_spill] sm:$0xff] %v4234_v12 }
  0x5a   : > { %2754 = vmatmul.mubr.msk.bf16.vlgmr.msra.gmra.mrb[0].mxu0 %vm440_vm0, %v3314_v15 }
  0x5b   : > { %2979 = vmatmul.mubr.msk.bf16.vlgmr.msra.gmra.mrb[0].mxu1 %vm440_vm0, %v3314_v15  ;;  %720 = vmatpush1.bf16.msra.mxu0 %v3308_v14  ;;  %v4241_v14 = vld [vmem:[%s5184_s1 + $0xf4] ss:$8 sps:$4 sm:$0xff]  }
  0x5c   : > { %1662 = vmatpush1.bf16.msra.mxu1 %v3311_v16  ;;  %721 = vmatprep.subr.bf16.mxu0 %v3317_v17  ;;  %5282 = vst [vmem:[#allocation8_spill] sm:$0xff] %v4241_v14  ;;  %v4246_v15 = vld [vmem:[%s5184_s1 + $0x214] ss:$8 sps:$4 sm:$0xff]   ;;  %v4253_v16 = vld [vmem:[%s5184_s1 + $0xf0] ss:$8 sps:$4 sm:$0xff]  }
  0x5d   : > { %1663 = vmatprep.subr.bf16.mxu1 %v3320_v18  ;;  %751 = vmatprep.mubr.bf16.mxu0 %v2756_v35  ;;  %5283 = vst [vmem:[#allocation9_spill] sm:$0xff] %v4246_v15  ;;  %5284 = vst [vmem:[#allocation10_spill] sm:$0xff] %v4253_v16  ;;  %v4258_v17 = vld [vmem:[%s5184_s1 + $0x210] ss:$8 sps:$4 sm:$0xff]   ;;  %v4265_v18 = vld [vmem:[%s5184_s1 + $0x104] ss:$8 sps:$4 sm:$0xff]  }
  0x5e   : > { %1693 = vmatprep.mubr.bf16.mxu1 %v2756_v35  ;;  %5285 = vst [vmem:[#allocation11_spill] sm:$0xff] %v4258_v17  ;;  %5286 = vst [vmem:[#allocation12_spill] sm:$0xff] %v4265_v18  ;;  %v4270_v35 = vld [vmem:[%s5184_s1 + $0x224] ss:$8 sps:$4 sm:$0xff]  }
  0x5f   : > { %722 = vmatpush1.bf16.msra.mxu0 %v3914_v19  ;;  %5287 = vst [vmem:[#allocation13_spill] sm:$0xff] %v4270_v35 }
  0x60   : > { %1664 = vmatpush1.bf16.msra.mxu1 %v3919_v20  ;;  %723 = vmatprep.subr.bf16.mxu0 %v3924_v21 }
  0x61   : > { %1665 = vmatprep.subr.bf16.mxu1 %v3929_v22 }
  0x63   : > { %724 = vmatpush1.bf16.msra.mxu0 %v3934_v23 }
  0x64   : > { %1666 = vmatpush1.bf16.msra.mxu1 %v3941_v24  ;;  %725 = vmatprep.subr.bf16.mxu0 %v3946_v25 }
  0x65   : > { %1667 = vmatprep.subr.bf16.mxu1 %v3953_v26 }
  0x67   : > { %726 = vmatpush1.bf16.msra.mxu0 %v3958_v27 }
  0x68   : > { %1668 = vmatpush1.bf16.msra.mxu1 %v3965_v28  ;;  %727 = vmatprep.subr.bf16.mxu0 %v3970_v29 }
  0x69   : > { %1669 = vmatprep.subr.bf16.mxu1 %v3977_v30 }
  0x6b   : > { %728 = vmatpush1.bf16.msra.mxu0 %v3982_v31 }
  0x6c   : > { %1670 = vmatpush1.bf16.msra.mxu1 %v3987_v32  ;;  %729 = vmatprep.subr.bf16.mxu0 %v3997_v34 }
  0x6d   : > { %1671 = vmatprep.subr.bf16.mxu1 %v4006_v36 }
  0x6f   : > { %730 = vmatpush1.bf16.msra.mxu0 %v4011_v37 }
  0x70   : > { %1672 = vmatpush1.bf16.msra.mxu1 %v4016_v38  ;;  %731 = vmatprep.subr.bf16.mxu0 %v4023_v39 }
  0x71   : > { %1673 = vmatprep.subr.bf16.mxu1 %v4030_v40 }
  0x73   : > { %732 = vmatpush1.bf16.msra.mxu0 %v4035_v41 }
  0x74   : > { %1674 = vmatpush1.bf16.msra.mxu1 %v4042_v42  ;;  %733 = vmatprep.subr.bf16.mxu0 %v4049_v43 }
  0x75   : > { %1675 = vmatprep.subr.bf16.mxu1 %v4054_v44 }
  0x77   : > { %734 = vmatpush1.bf16.msra.mxu0 %v4061_v45 }
  0x78   : > { %1676 = vmatpush1.bf16.msra.mxu1 %v4066_v46  ;;  %735 = vmatprep.subr.bf16.mxu0 %v4073_v47 }
  0x79   : > { %1677 = vmatprep.subr.bf16.mxu1 %v4078_v49 }
  0x7b   : > { %736 = vmatpush1.bf16.msra.mxu0 %v4085_v50 }
  0x7c   : > { %1678 = vmatpush1.bf16.msra.mxu1 %v4090_v51  ;;  %737 = vmatprep.subr.bf16.mxu0 %v4097_v52 }
  0x7d   : > { %1679 = vmatprep.subr.bf16.mxu1 %v4102_v53 }
  0x7f   : > { %738 = vmatpush1.bf16.msra.mxu0 %v4109_v54 }
  0x80   : > { %1680 = vmatpush1.bf16.msra.mxu1 %v4114_v55  ;;  %739 = vmatprep.subr.bf16.mxu0 %v4121_v56 }
  0x81   : > { %1681 = vmatprep.subr.bf16.mxu1 %v4126_v57 }
  0x83   : > { %740 = vmatpush1.bf16.msra.mxu0 %v4133_v58 }
  0x84   : > { %1682 = vmatpush1.bf16.msra.mxu1 %v4138_v59  ;;  %741 = vmatprep.subr.bf16.mxu0 %v4145_v60 }
  0x85   : > { %1683 = vmatprep.subr.bf16.mxu1 %v4150_v61 }
  0x87   : > { %742 = vmatpush1.bf16.msra.mxu0 %v4157_v62 }
  0x88   : > { %1684 = vmatpush1.bf16.msra.mxu1 %v4162_v63  ;;  %743 = vmatprep.subr.bf16.mxu0 %v4169_v0 }
  0x89   : > { %1685 = vmatprep.subr.bf16.mxu1 %v4174_v1 }
  0x8b   : > { %744 = vmatpush1.bf16.msra.mxu0 %v4181_v2 }
  0x8c   : > { %1686 = vmatpush1.bf16.msra.mxu1 %v4186_v3  ;;  %745 = vmatprep.subr.bf16.mxu0 %v4193_v5 }
  0x8d   : > { %1687 = vmatprep.subr.bf16.mxu1 %v4198_v6 }
  0x8f   : > { %746 = vmatpush1.bf16.msra.mxu0 %v4205_v7 }
  0x90   : > { %1688 = vmatpush1.bf16.msra.mxu1 %v4210_v8  ;;  %747 = vmatprep.subr.bf16.mxu0 %v4217_v9  ;;  %v4337_v9 = vld [vmem:[%s5184_s1 + $0x480] ss:$8 sps:$4 sm:$0xff]  }
  0x91   : > { %1689 = vmatprep.subr.bf16.mxu1 %v4222_v10  ;;  %v3425_v10 = vld [vmem:[%s3793_s30 + $0x8] ss:$0 sps:$4 sm:$0xff]  }
  0x92   : > { %v4342_v8 = vld [vmem:[%s5184_s1 + $0x5a0] ss:$8 sps:$4 sm:$0xff]  }
  0x93   : > { %748 = vmatpush1.bf16.msra.mxu0 %v4229_v11  ;;  %v4306_v11 = vld [vmem:[%s5184_s1 + $0x110] ss:$8 sps:$4 sm:$0xff]   ;;  %5296 = vst [vmem:[#allocation21_spill] sm:$0xff] %v4342_v8 }
  0x94   : > { %1690 = vmatpush1.bf16.msra.mxu1 %v4234_v12  ;;  %749 = vmatprep.subr.bf16.mxu0 %v4241_v14  ;;  %v4289_v14 = vld [vmem:[%s5184_s1 + $0x114] ss:$8 sps:$4 sm:$0xff]   ;;  %v4292_v12 = vld [vmem:[%s3793_s30 + $0xc] sm:$0x11] }
  0x95   : > { %1691 = vmatprep.subr.bf16.mxu1 %v4246_v15  ;;  %v4284_v15 = vld [vmem:[%s5184_s1 + $0x220] ss:$8 sps:$4 sm:$0xff]   ;;  %5290 = vst [vmem:[#allocation16_spill] sm:$0xff] %v4289_v14 }
  0x96   : > { %5289 = vst [vmem:[#allocation15_spill] sm:$0xff] %v4284_v15 }
  0x97   : > { %750 = vmatpush1.bf16.msra.mxu0 %v4253_v16  ;;  %v2832_v16 = vcombine.high %v3990_v33, %v4292_v12 }
  0x98   : > { %1692 = vmatpush1.bf16.msra.mxu1 %v4258_v17  ;;  %760 = vmatprep.subr.bf16.mxu0 %v4265_v18  ;;  %v4299_v17 = vld [vmem:[%s5184_s1 + $0x234] ss:$8 sps:$4 sm:$0xff]  }
  0x99   : > { %1702 = vmatprep.subr.bf16.mxu1 %v4270_v35  ;;  %5291 = vst [vmem:[#allocation17_spill] sm:$0xff] %v4299_v17  ;;  %v4313_v35 = vld [vmem:[%s5184_s1 + $0x230] ss:$8 sps:$4 sm:$0xff]   ;;  %v865_v18 = vshll.u32 %v2832_v16, 16 }
  0x9a   : > { %752 = vmatmul.mubr.bf16.vlgmr.msra.gmra.mrb[0].mxu0 %v2755_v13  ;;  %5292 = vst [vmem:[#allocation18_spill] sm:$0xff] %v4313_v35 }
  0x9b   : > { %1694 = vmatmul.mubr.bf16.vlgmr.msra.gmra.mrb[0].mxu1 %v2755_v13  ;;  %761 = vmatpush1.bf16.msra.mxu0 %v4277_v4  ;;  %v4320_v13 = vld [vmem:[%s5184_s1 + $0x484] ss:$8 sps:$4 sm:$0xff]  }
  0x9c   : > { %1703 = vmatpush1.bf16.msra.mxu1 %v4284_v15  ;;  %762 = vmatprep.subr.bf16.mxu0 %v4289_v14  ;;  %5293 = vst [vmem:[#allocation19_spill] sm:$0xff] %v4320_v13  ;;  %v4325_v4 = vld [vmem:[%s5184_s1 + $0x5a4] ss:$8 sps:$4 sm:$0xff]   ;;  %v5295_v15 = vmov 0   ;;  %v867_v14 = vrot.slane %v865_v18, 1 }
  0x9d   : > { %1704 = vmatprep.subr.bf16.mxu1 %v4299_v17  ;;  %5294 = vst [vmem:[#allocation20_spill] sm:$0xff] %v4325_v4  ;;  %792 = vmatprep.mubr.bf16.mxu0 %v5295_v15  ;;  %v863_v17 = vshrl.u32 %v2832_v16, 16  ;;  %v4352_v16 = vld [vmem:[%s5184_s1 + $0x5b4] ss:$8 sps:$4 sm:$0xff]  }
  0x9e   : > { %1734 = vmatprep.mubr.bf16.mxu1 %v5295_v15  ;;  %5298 = vst [vmem:[#allocation23_spill] sm:$0xff] %v4352_v16 }
  0x9f   : > { %763 = vmatpush1.bf16.msra.mxu0 %v4306_v11  ;;  %v4354_v18 = vor.u32 %v867_v14, %v863_v17  ;;  %v4380_v14 = vld [vmem:[%s5184_s1 + $0x5c4] ss:$8 sps:$4 sm:$0xff]   ;;  %v4389_v17 = vld [vmem:[%s5184_s1 + $0x4a0] ss:$8 sps:$4 sm:$0xff]  }
  0xa0   : > { %1705 = vmatpush1.bf16.msra.mxu1 %v4313_v35  ;;  %1061 = vmatprep.subr.bf16.mxu0 %v4320_v13  ;;  %v4347_v35 = vld [vmem:[%s5184_s1 + $0x494] ss:$8 sps:$4 sm:$0xff]   ;;  %v4368_v13 = vld [vmem:[%s5184_s1 + $0x5b0] ss:$8 sps:$4 sm:$0xff]   ;;  %5302 = vst [vmem:[#allocation27_spill] sm:$0xff] %v4380_v14  ;;  %5303 = vst [vmem:[#allocation28_spill] sm:$0xff] %v4389_v17 }
  0xa1   : > { %1960 = vmatprep.subr.bf16.mxu1 %v4325_v4  ;;  %5297 = vst [vmem:[#allocation22_spill] sm:$0xff] %v4347_v35  ;;  %v4363_v4 = vld [vmem:[%s5184_s1 + $0x490] ss:$8 sps:$4 sm:$0xff]   ;;  %5300 = vst [vmem:[#allocation25_spill] sm:$0xff] %v4368_v13 }
  0xa2   : > { %5299 = vst [vmem:[#allocation24_spill] sm:$0xff] %v4363_v4 }
  0xa6   : > { %2794 = vmatmul.mubr.msk.bf16.vlgmr.msra.gmra.mrb[0].mxu0 %vm440_vm0, %v3425_v10 }
  0xa7   : > { %3016 = vmatmul.mubr.msk.bf16.vlgmr.msra.gmra.mrb[0].mxu1 %vm440_vm0, %v3425_v10  ;;  %1062 = vmatpush1.bf16.msra.mxu0 %v4337_v9  ;;  %v4375_v10 = vld [vmem:[%s5184_s1 + $0x4a4] ss:$8 sps:$4 sm:$0xff]  }
  0xa8   : > { %1961 = vmatpush1.bf16.msra.mxu1 %v4342_v8  ;;  %1063 = vmatprep.subr.bf16.mxu0 %v4347_v35  ;;  %5301 = vst [vmem:[#allocation26_spill] sm:$0xff] %v4375_v10  ;;  %v2831_v35 = vcombine.low %v3990_v33, %v4292_v12  ;;  %v4667_v33 = vld [vmem:[%s5184_s1 + $0x564] ss:$8 sps:$4 sm:$0xff]  }
  0xa9   : > { %1962 = vmatprep.subr.bf16.mxu1 %v4352_v16  ;;  %1093 = vmatprep.mubr.bf16.mxu0 %v4354_v18  ;;  %v4394_v16 = vld [vmem:[%s5184_s1 + $0x5c0] ss:$8 sps:$4 sm:$0xff]   ;;  %5349 = vst [vmem:[#allocation74_spill] sm:$0xff] %v4667_v33  ;;  %v4672_v12 = vld [vmem:[%s5184_s1 + $0x684] ss:$8 sps:$4 sm:$0xff]  }
  0xaa   : > { %1992 = vmatprep.mubr.bf16.mxu1 %v4354_v18  ;;  %5304 = vst [vmem:[#allocation29_spill] sm:$0xff] %v4394_v16  ;;  %5350 = vst [vmem:[#allocation75_spill] sm:$0xff] %v4672_v12 }
  0xab   : > { %1064 = vmatpush1.bf16.msra.mxu0 %v4363_v4  ;;  %v4401_v4 = vld [vmem:[%s5184_s1 + $0x4b4] ss:$8 sps:$4 sm:$0xff]  }
  0xac   : > { %1963 = vmatpush1.bf16.msra.mxu1 %v4368_v13  ;;  %1065 = vmatprep.subr.bf16.mxu0 %v4375_v10  ;;  %5305 = vst [vmem:[#allocation30_spill] sm:$0xff] %v4401_v4  ;;  %v4406_v13 = vld [vmem:[%s5184_s1 + $0x5d4] ss:$8 sps:$4 sm:$0xff]   ;;  %v4413_v10 = vld [vmem:[%s5184_s1 + $0x4b0] ss:$8 sps:$4 sm:$0xff]  }
  0xad   : > { %1964 = vmatprep.subr.bf16.mxu1 %v4380_v14  ;;  %5306 = vst [vmem:[#allocation31_spill] sm:$0xff] %v4406_v13  ;;  %5307 = vst [vmem:[#allocation32_spill] sm:$0xff] %v4413_v10  ;;  %v4418_v14 = vld [vmem:[%s5184_s1 + $0x5d0] ss:$8 sps:$4 sm:$0xff]  }
  0xae   : > { %5308 = vst [vmem:[#allocation33_spill] sm:$0xff] %v4418_v14 }
  0xaf   : > { %1066 = vmatpush1.bf16.msra.mxu0 %v4389_v17  ;;  %v4425_v17 = vld [vmem:[%s5184_s1 + $0x4c4] ss:$8 sps:$4 sm:$0xff]  }
  0xb0   : > { %1965 = vmatpush1.bf16.msra.mxu1 %v4394_v16  ;;  %1067 = vmatprep.subr.bf16.mxu0 %v4401_v4  ;;  %5309 = vst [vmem:[#allocation34_spill] sm:$0xff] %v4425_v17  ;;  %v4430_v16 = vld [vmem:[%s5184_s1 + $0x5e4] ss:$8 sps:$4 sm:$0xff]   ;;  %v4437_v4 = vld [vmem:[%s5184_s1 + $0x4c0] ss:$8 sps:$4 sm:$0xff]  }
  0xb1   : > { %1966 = vmatprep.subr.bf16.mxu1 %v4406_v13  ;;  %5310 = vst [vmem:[#allocation35_spill] sm:$0xff] %v4430_v16  ;;  %5311 = vst [vmem:[#allocation36_spill] sm:$0xff] %v4437_v4  ;;  %v4442_v13 = vld [vmem:[%s5184_s1 + $0x5e0] ss:$8 sps:$4 sm:$0xff]  }
  0xb2   : > { %5312 = vst [vmem:[#allocation37_spill] sm:$0xff] %v4442_v13 }
  0xb3   : > { %1068 = vmatpush1.bf16.msra.mxu0 %v4413_v10  ;;  %v4449_v10 = vld [vmem:[%s5184_s1 + $0x4d4] ss:$8 sps:$4 sm:$0xff]  }
  0xb4   : > { %1967 = vmatpush1.bf16.msra.mxu1 %v4418_v14  ;;  %1069 = vmatprep.subr.bf16.mxu0 %v4425_v17  ;;  %5313 = vst [vmem:[#allocation38_spill] sm:$0xff] %v4449_v10  ;;  %v4454_v14 = vld [vmem:[%s5184_s1 + $0x5f4] ss:$8 sps:$4 sm:$0xff]   ;;  %v4461_v17 = vld [vmem:[%s5184_s1 + $0x4d0] ss:$8 sps:$4 sm:$0xff]  }
  0xb5   : > { %1968 = vmatprep.subr.bf16.mxu1 %v4430_v16  ;;  %5314 = vst [vmem:[#allocation39_spill] sm:$0xff] %v4454_v14  ;;  %5315 = vst [vmem:[#allocation40_spill] sm:$0xff] %v4461_v17  ;;  %v4466_v16 = vld [vmem:[%s5184_s1 + $0x5f0] ss:$8 sps:$4 sm:$0xff]  }
  0xb6   : > { %5316 = vst [vmem:[#allocation41_spill] sm:$0xff] %v4466_v16 }
  0xb7   : > { %1070 = vmatpush1.bf16.msra.mxu0 %v4437_v4  ;;  %v4473_v4 = vld [vmem:[%s5184_s1 + $0x4e4] ss:$8 sps:$4 sm:$0xff]  }
  0xb8   : > { %1969 = vmatpush1.bf16.msra.mxu1 %v4442_v13  ;;  %1071 = vmatprep.subr.bf16.mxu0 %v4449_v10  ;;  %5317 = vst [vmem:[#allocation42_spill] sm:$0xff] %v4473_v4  ;;  %v4478_v13 = vld [vmem:[%s5184_s1 + $0x604] ss:$8 sps:$4 sm:$0xff]   ;;  %v4485_v10 = vld [vmem:[%s5184_s1 + $0x4e0] ss:$8 sps:$4 sm:$0xff]  }
  0xb9   : > { %1970 = vmatprep.subr.bf16.mxu1 %v4454_v14  ;;  %5318 = vst [vmem:[#allocation43_spill] sm:$0xff] %v4478_v13  ;;  %5319 = vst [vmem:[#allocation44_spill] sm:$0xff] %v4485_v10  ;;  %v4490_v14 = vld [vmem:[%s5184_s1 + $0x600] ss:$8 sps:$4 sm:$0xff]  }
  0xba   : > { %5320 = vst [vmem:[#allocation45_spill] sm:$0xff] %v4490_v14 }
  0xbb   : > { %1072 = vmatpush1.bf16.msra.mxu0 %v4461_v17  ;;  %v4497_v17 = vld [vmem:[%s5184_s1 + $0x4f4] ss:$8 sps:$4 sm:$0xff]  }
  0xbc   : > { %1971 = vmatpush1.bf16.msra.mxu1 %v4466_v16  ;;  %1073 = vmatprep.subr.bf16.mxu0 %v4473_v4  ;;  %5321 = vst [vmem:[#allocation46_spill] sm:$0xff] %v4497_v17  ;;  %v4502_v16 = vld [vmem:[%s5184_s1 + $0x614] ss:$8 sps:$4 sm:$0xff]   ;;  %v4509_v4 = vld [vmem:[%s5184_s1 + $0x4f0] ss:$8 sps:$4 sm:$0xff]  }
  0xbd   : > { %1972 = vmatprep.subr.bf16.mxu1 %v4478_v13  ;;  %5322 = vst [vmem:[#allocation47_spill] sm:$0xff] %v4502_v16  ;;  %5323 = vst [vmem:[#allocation48_spill] sm:$0xff] %v4509_v4  ;;  %v4514_v13 = vld [vmem:[%s5184_s1 + $0x610] ss:$8 sps:$4 sm:$0xff]  }
  0xbe   : > { %5324 = vst [vmem:[#allocation49_spill] sm:$0xff] %v4514_v13 }
  0xbf   : > { %1074 = vmatpush1.bf16.msra.mxu0 %v4485_v10  ;;  %v4521_v10 = vld [vmem:[%s5184_s1 + $0x504] ss:$8 sps:$4 sm:$0xff]  }
  0xc0   : > { %1973 = vmatpush1.bf16.msra.mxu1 %v4490_v14  ;;  %1075 = vmatprep.subr.bf16.mxu0 %v4497_v17  ;;  %5325 = vst [vmem:[#allocation50_spill] sm:$0xff] %v4521_v10  ;;  %v4526_v14 = vld [vmem:[%s5184_s1 + $0x624] ss:$8 sps:$4 sm:$0xff]   ;;  %v4533_v17 = vld [vmem:[%s5184_s1 + $0x500] ss:$8 sps:$4 sm:$0xff]  }
  0xc1   : > { %1974 = vmatprep.subr.bf16.mxu1 %v4502_v16  ;;  %5326 = vst [vmem:[#allocation51_spill] sm:$0xff] %v4526_v14  ;;  %5327 = vst [vmem:[#allocation52_spill] sm:$0xff] %v4533_v17  ;;  %v4538_v16 = vld [vmem:[%s5184_s1 + $0x620] ss:$8 sps:$4 sm:$0xff]  }
  0xc2   : > { %5328 = vst [vmem:[#allocation53_spill] sm:$0xff] %v4538_v16 }
  0xc3   : > { %1076 = vmatpush1.bf16.msra.mxu0 %v4509_v4  ;;  %v4545_v4 = vld [vmem:[%s5184_s1 + $0x514] ss:$8 sps:$4 sm:$0xff]  }
  0xc4   : > { %1975 = vmatpush1.bf16.msra.mxu1 %v4514_v13  ;;  %1077 = vmatprep.subr.bf16.mxu0 %v4521_v10  ;;  %5329 = vst [vmem:[#allocation54_spill] sm:$0xff] %v4545_v4  ;;  %v4550_v13 = vld [vmem:[%s5184_s1 + $0x634] ss:$8 sps:$4 sm:$0xff]   ;;  %v4557_v10 = vld [vmem:[%s5184_s1 + $0x510] ss:$8 sps:$4 sm:$0xff]  }
  0xc5   : > { %1976 = vmatprep.subr.bf16.mxu1 %v4526_v14  ;;  %5330 = vst [vmem:[#allocation55_spill] sm:$0xff] %v4550_v13  ;;  %5331 = vst [vmem:[#allocation56_spill] sm:$0xff] %v4557_v10  ;;  %v4562_v14 = vld [vmem:[%s5184_s1 + $0x630] ss:$8 sps:$4 sm:$0xff]  }
  0xc6   : > { %5332 = vst [vmem:[#allocation57_spill] sm:$0xff] %v4562_v14 }
  0xc7   : > { %1078 = vmatpush1.bf16.msra.mxu0 %v4533_v17  ;;  %v4569_v17 = vld [vmem:[%s5184_s1 + $0x524] ss:$8 sps:$4 sm:$0xff]  }
  0xc8   : > { %1977 = vmatpush1.bf16.msra.mxu1 %v4538_v16  ;;  %1079 = vmatprep.subr.bf16.mxu0 %v4545_v4  ;;  %5333 = vst [vmem:[#allocation58_spill] sm:$0xff] %v4569_v17  ;;  %v4574_v16 = vld [vmem:[%s5184_s1 + $0x644] ss:$8 sps:$4 sm:$0xff]   ;;  %v4581_v4 = vld [vmem:[%s5184_s1 + $0x520] ss:$8 sps:$4 sm:$0xff]  }
  0xc9   : > { %1978 = vmatprep.subr.bf16.mxu1 %v4550_v13  ;;  %5334 = vst [vmem:[#allocation59_spill] sm:$0xff] %v4574_v16  ;;  %5335 = vst [vmem:[#allocation60_spill] sm:$0xff] %v4581_v4  ;;  %v4586_v13 = vld [vmem:[%s5184_s1 + $0x640] ss:$8 sps:$4 sm:$0xff]  }
  0xca   : > { %5336 = vst [vmem:[#allocation61_spill] sm:$0xff] %v4586_v13 }
  0xcb   : > { %1080 = vmatpush1.bf16.msra.mxu0 %v4557_v10  ;;  %v4593_v10 = vld [vmem:[%s5184_s1 + $0x534] ss:$8 sps:$4 sm:$0xff]  }
  0xcc   : > { %1979 = vmatpush1.bf16.msra.mxu1 %v4562_v14  ;;  %1081 = vmatprep.subr.bf16.mxu0 %v4569_v17  ;;  %5337 = vst [vmem:[#allocation62_spill] sm:$0xff] %v4593_v10  ;;  %v4598_v14 = vld [vmem:[%s5184_s1 + $0x654] ss:$8 sps:$4 sm:$0xff]   ;;  %v4605_v17 = vld [vmem:[%s5184_s1 + $0x530] ss:$8 sps:$4 sm:$0xff]  }
  0xcd   : > { %1980 = vmatprep.subr.bf16.mxu1 %v4574_v16  ;;  %5338 = vst [vmem:[#allocation63_spill] sm:$0xff] %v4598_v14  ;;  %5339 = vst [vmem:[#allocation64_spill] sm:$0xff] %v4605_v17  ;;  %v4610_v16 = vld [vmem:[%s5184_s1 + $0x650] ss:$8 sps:$4 sm:$0xff]  }
  0xce   : > { %5340 = vst [vmem:[#allocation65_spill] sm:$0xff] %v4610_v16 }
  0xcf   : > { %1082 = vmatpush1.bf16.msra.mxu0 %v4581_v4  ;;  %v4617_v4 = vld [vmem:[%s5184_s1 + $0x544] ss:$8 sps:$4 sm:$0xff]  }
  0xd0   : > { %1981 = vmatpush1.bf16.msra.mxu1 %v4586_v13  ;;  %1083 = vmatprep.subr.bf16.mxu0 %v4593_v10  ;;  %5341 = vst [vmem:[#allocation66_spill] sm:$0xff] %v4617_v4  ;;  %v4622_v13 = vld [vmem:[%s5184_s1 + $0x664] ss:$8 sps:$4 sm:$0xff]   ;;  %v4629_v10 = vld [vmem:[%s5184_s1 + $0x540] ss:$8 sps:$4 sm:$0xff]  }
  0xd1   : > { %1982 = vmatprep.subr.bf16.mxu1 %v4598_v14  ;;  %5342 = vst [vmem:[#allocation67_spill] sm:$0xff] %v4622_v13  ;;  %5343 = vst [vmem:[#allocation68_spill] sm:$0xff] %v4629_v10  ;;  %v4634_v14 = vld [vmem:[%s5184_s1 + $0x660] ss:$8 sps:$4 sm:$0xff]  }
  0xd2   : > { %5344 = vst [vmem:[#allocation69_spill] sm:$0xff] %v4634_v14 }
  0xd3   : > { %1084 = vmatpush1.bf16.msra.mxu0 %v4605_v17  ;;  %v4641_v17 = vld [vmem:[%s5184_s1 + $0x554] ss:$8 sps:$4 sm:$0xff]  }
  0xd4   : > { %1983 = vmatpush1.bf16.msra.mxu1 %v4610_v16  ;;  %1085 = vmatprep.subr.bf16.mxu0 %v4617_v4  ;;  %5345 = vst [vmem:[#allocation70_spill] sm:$0xff] %v4641_v17  ;;  %v4646_v16 = vld [vmem:[%s5184_s1 + $0x674] ss:$8 sps:$4 sm:$0xff]   ;;  %v4660_v4 = vld [vmem:[%s5184_s1 + $0x670] ss:$8 sps:$4 sm:$0xff]  }
  0xd5   : > { %1984 = vmatprep.subr.bf16.mxu1 %v4622_v13  ;;  %5346 = vst [vmem:[#allocation71_spill] sm:$0xff] %v4646_v16  ;;  %v4655_v13 = vld [vmem:[%s5184_s1 + $0x550] ss:$8 sps:$4 sm:$0xff]   ;;  %5348 = vst [vmem:[#allocation73_spill] sm:$0xff] %v4660_v4 }
  0xd6   : > { %5347 = vst [vmem:[#allocation72_spill] sm:$0xff] %v4655_v13 }
  0xd7   : > { %1086 = vmatpush1.bf16.msra.mxu0 %v4629_v10  ;;  %v856_v10 = vshrl.u32 %v2831_v35, 16 }
  0xd8   : > { %1985 = vmatpush1.bf16.msra.mxu1 %v4634_v14  ;;  %1087 = vmatprep.subr.bf16.mxu0 %v4641_v17  ;;  %v858_v14 = vshll.u32 %v2831_v35, 16  ;;  %v4679_v17 = vld [vmem:[%s5184_s1 + $0x560] ss:$8 sps:$4 sm:$0xff]   ;;  %v4715_v35 = vld [vmem:[%s5184_s1 + $0x584] ss:$8 sps:$4 sm:$0xff]  }
  0xd9   : > { %1986 = vmatprep.subr.bf16.mxu1 %v4646_v16  ;;  %5351 = vst [vmem:[#allocation76_spill] sm:$0xff] %v4679_v17  ;;  %v4684_v16 = vld [vmem:[%s5184_s1 + $0x680] ss:$8 sps:$4 sm:$0xff]   ;;  %5357 = vst [vmem:[#allocation82_spill] sm:$0xff] %v4715_v35 }
  0xda   : > { %5352 = vst [vmem:[#allocation77_spill] sm:$0xff] %v4684_v16  ;;  %v860_v8 = vrot.slane %v858_v14, 1  ;;  %v4720_v14 = vld [vmem:[%s5184_s1 + $0x6a4] ss:$8 sps:$4 sm:$0xff]  }
  0xdb   : > { %1088 = vmatpush1.bf16.msra.mxu0 %v4655_v13  ;;  %v4691_v13 = vld [vmem:[%s5184_s1 + $0x574] ss:$8 sps:$4 sm:$0xff]   ;;  %5358 = vst [vmem:[#allocation83_spill] sm:$0xff] %v4720_v14 }
  0xdc   : > { %1987 = vmatpush1.bf16.msra.mxu1 %v4660_v4  ;;  %1089 = vmatprep.subr.bf16.mxu0 %v4667_v33  ;;  %5353 = vst [vmem:[#allocation78_spill] sm:$0xff] %v4691_v13  ;;  %v4696_v4 = vld [vmem:[%s5184_s1 + $0x694] ss:$8 sps:$4 sm:$0xff]   ;;  %v4708_v33 = vld [vmem:[%s5184_s1 + $0x690] ss:$8 sps:$4 sm:$0xff]  }
  0xdd   : > { %1988 = vmatprep.subr.bf16.mxu1 %v4672_v12  ;;  %5354 = vst [vmem:[#allocation79_spill] sm:$0xff] %v4696_v4  ;;  %v4703_v12 = vld [vmem:[%s5184_s1 + $0x570] ss:$8 sps:$4 sm:$0xff]   ;;  %5356 = vst [vmem:[#allocation81_spill] sm:$0xff] %v4708_v33 }
  0xde   : > { %5355 = vst [vmem:[#allocation80_spill] sm:$0xff] %v4703_v12 }
  0xdf   : > { %1090 = vmatpush1.bf16.msra.mxu0 %v4679_v17  ;;  %v3530_v17 = vld [vmem:[%s3793_s30 + $0x8] ss:$12 sps:$4 sm:$0x1f]  }
  0xe0   : > { %1989 = vmatpush1.bf16.msra.mxu1 %v4684_v16  ;;  %1091 = vmatprep.subr.bf16.mxu0 %v4691_v13  ;;  %v4722_v16 = vor.u32 %v860_v8, %v856_v10  ;;  %v4735_v13 = vld [vmem:[%s5184_s1 + $0x6a0] ss:$8 sps:$4 sm:$0xff]   ;;  %v4742_v8 = vld [vmem:[%s5184_s1 + $0x594] ss:$8 sps:$4 sm:$0xff]  }
  0xe1   : > { %1990 = vmatprep.subr.bf16.mxu1 %v4696_v4  ;;  %v4730_v4 = vld [vmem:[%s5184_s1 + $0x580] ss:$8 sps:$4 sm:$0xff]   ;;  %5360 = vst [vmem:[#allocation85_spill] sm:$0xff] %v4735_v13  ;;  %5361 = vst [vmem:[#allocation86_spill] sm:$0xff] %v4742_v8  ;;  %v4747_v10 = vld [vmem:[%s5184_s1 + $0x6b4] ss:$8 sps:$4 sm:$0xff]  }
  0xe2   : > { %5359 = vst [vmem:[#allocation84_spill] sm:$0xff] %v4730_v4  ;;  %5362 = vst [vmem:[#allocation87_spill] sm:$0xff] %v4747_v10 }
  0xe3   : > { %1092 = vmatpush1.bf16.msra.mxu0 %v4703_v12  ;;  %v3535_v12 = vld [vmem:[%s5184_s1 + $0x244] ss:$8 sps:$4 sm:$0xff]  }
  0xe4   : > { %1991 = vmatpush1.bf16.msra.mxu1 %v4708_v33  ;;  %1102 = vmatprep.subr.bf16.mxu0 %v4715_v35  ;;  %v872_v33 = vshll.u32 %v3530_v17, 16  ;;  %v4761_v35 = vld [vmem:[%s5184_s1 + $0x6b0] ss:$8 sps:$4 sm:$0xff]  }
  0xe5   : > { %2001 = vmatprep.subr.bf16.mxu1 %v4720_v14  ;;  %v4756_v14 = vld [vmem:[%s5184_s1 + $0x590] ss:$8 sps:$4 sm:$0xff]  }
  0xe6   : > { %1094 = vmatmul.mubr.bf16.vlgmr.msra.gmra.mrb[0].mxu0 %v4722_v16 }
  0xe7   : > { %1993 = vmatmul.mubr.bf16.vlgmr.msra.gmra.mrb[0].mxu1 %v4722_v16  ;;  %1103 = vmatpush1.bf16.msra.mxu0 %v4730_v4  ;;  %v870_v4 = vshrl.u32 %v3530_v17, 16  ;;  %v3537_v17 = vld [vmem:[%s5184_s1 + $0x240] ss:$8 sps:$4 sm:$0xff]  }
  0xe8   : > { %2002 = vmatpush1.bf16.msra.mxu1 %v4735_v13  ;;  %1104 = vmatprep.subr.bf16.mxu0 %v4742_v8  ;;  %v874_v13 = vrot.slane %v872_v33, 1  ;;  %v3536_v8 = vld [vmem:[%s5184_s1 + $0x364] ss:$8 sps:$4 sm:$0xff]   ;;  %v3538_v33 = vld [vmem:[%s5184_s1 + $0x360] ss:$8 sps:$4 sm:$0xff]  }
  0xe9   : > { %2003 = vmatprep.subr.bf16.mxu1 %v4747_v10  ;;  %1134 = vmatprep.mubr.bf16.mxu0 %v5295_v15 }
  0xea   : > { %2033 = vmatprep.mubr.bf16.mxu1 %v5295_v15  ;;  %v4775_v10 = vor.u32 %v874_v13, %v870_v4  ;;  %v3539_v4 = vld [vmem:[%s5184_s1 + $0x254] ss:$8 sps:$4 sm:$0xff]  }
  0xeb   : > { %1105 = vmatpush1.bf16.msra.mxu0 %v4756_v14  ;;  %v3540_v13 = vld [vmem:[%s5184_s1 + $0x374] ss:$8 sps:$4 sm:$0xff]  }
  0xec   : > { %2004 = vmatpush1.bf16.msra.mxu1 %v4761_v35  ;;  %2046 = vmatprep.subr.bf16.mxu0 %v3535_v12  ;;  %v3541_v12 = vld [vmem:[%s5184_s1 + $0x250] ss:$8 sps:$4 sm:$0xff]  }
  0xed   : > { %2337 = vmatprep.subr.bf16.mxu1 %v3536_v8  ;;  %v3542_v8 = vld [vmem:[%s5184_s1 + $0x370] ss:$8 sps:$4 sm:$0xff]  }
  0xf2   : > { %2870 = vmatmul.mubr.msk.bf16.vlgmr.msra.gmra.mrb[0].mxu0 %vm440_vm0, %v4775_v10 }
  0xf3   : > { %3089 = vmatmul.mubr.msk.bf16.vlgmr.msra.gmra.mrb[0].mxu1 %vm440_vm0, %v4775_v10  ;;  %2047 = vmatpush1.bf16.msra.mxu0 %v3537_v17  ;;  %v3543_v17 = vld [vmem:[%s5184_s1 + $0x264] ss:$8 sps:$4 sm:$0xff]  }
  0xf4   : > { %2338 = vmatpush1.bf16.msra.mxu1 %v3538_v33  ;;  %2048 = vmatprep.subr.bf16.mxu0 %v3539_v4  ;;  %v3544_v33 = vld [vmem:[%s5184_s1 + $0x384] ss:$8 sps:$4 sm:$0xff]   ;;  %v3546_v4 = vld [vmem:[%s5184_s1 + $0x380] ss:$8 sps:$4 sm:$0xff]  }
  0xf5   : > { %2339 = vmatprep.subr.bf16.mxu1 %v3540_v13  ;;  %2078 = vmatprep.mubr.bf16.mxu0 %v4354_v18  ;;  %v3547_v13 = vld [vmem:[%s5184_s1 + $0x274] ss:$8 sps:$4 sm:$0xff]  }
  0xf6   : > { %2369 = vmatprep.mubr.bf16.mxu1 %v4354_v18  ;;  %v3545_v18 = vld [vmem:[%s5184_s1 + $0x260] ss:$8 sps:$4 sm:$0xff]  }
  0xf7   : > { %2049 = vmatpush1.bf16.msra.mxu0 %v3541_v12  ;;  %v3548_v12 = vld [vmem:[%s5184_s1 + $0x394] ss:$8 sps:$4 sm:$0xff]  }
  0xf8   : > { %2340 = vmatpush1.bf16.msra.mxu1 %v3542_v8  ;;  %2050 = vmatprep.subr.bf16.mxu0 %v3543_v17  ;;  %v3549_v8 = vld [vmem:[%s5184_s1 + $0x270] ss:$8 sps:$4 sm:$0xff]  }
  0xf9   : > { %2341 = vmatprep.subr.bf16.mxu1 %v3544_v33  ;;  %v3550_v17 = vld [vmem:[%s5184_s1 + $0x390] ss:$8 sps:$4 sm:$0xff]   ;;  %v3551_v33 = vld [vmem:[%s5184_s1 + $0x284] ss:$8 sps:$4 sm:$0xff]  }
  0xfb   : > { %2051 = vmatpush1.bf16.msra.mxu0 %v3545_v18  ;;  %v3552_v18 = vld [vmem:[%s5184_s1 + $0x3a4] ss:$8 sps:$4 sm:$0xff]  }
  0xfc   : > { %2342 = vmatpush1.bf16.msra.mxu1 %v3546_v4  ;;  %2052 = vmatprep.subr.bf16.mxu0 %v3547_v13  ;;  %v3553_v4 = vld [vmem:[%s5184_s1 + $0x280] ss:$8 sps:$4 sm:$0xff]  }
  0xfd   : > { %2343 = vmatprep.subr.bf16.mxu1 %v3548_v12  ;;  %v3554_v13 = vld [vmem:[%s5184_s1 + $0x3a0] ss:$8 sps:$4 sm:$0xff]   ;;  %v3555_v12 = vld [vmem:[%s5184_s1 + $0x294] ss:$8 sps:$4 sm:$0xff]  }
  0xff   : > { %2053 = vmatpush1.bf16.msra.mxu0 %v3549_v8  ;;  %v3556_v8 = vld [vmem:[%s5184_s1 + $0x3b4] ss:$8 sps:$4 sm:$0xff]  }
 0x100   : > { %2344 = vmatpush1.bf16.msra.mxu1 %v3550_v17  ;;  %2054 = vmatprep.subr.bf16.mxu0 %v3551_v33  ;;  %v3557_v17 = vld [vmem:[%s5184_s1 + $0x290] ss:$8 sps:$4 sm:$0xff]  }
 0x101   : > { %2345 = vmatprep.subr.bf16.mxu1 %v3552_v18  ;;  %v3558_v33 = vld [vmem:[%s5184_s1 + $0x3b0] ss:$8 sps:$4 sm:$0xff]   ;;  %v3559_v18 = vld [vmem:[%s5184_s1 + $0x2a4] ss:$8 sps:$4 sm:$0xff]  }
 0x103   : > { %2055 = vmatpush1.bf16.msra.mxu0 %v3553_v4  ;;  %v3560_v4 = vld [vmem:[%s5184_s1 + $0x3c4] ss:$8 sps:$4 sm:$0xff]  }
 0x104   : > { %2346 = vmatpush1.bf16.msra.mxu1 %v3554_v13  ;;  %2056 = vmatprep.subr.bf16.mxu0 %v3555_v12  ;;  %v3561_v13 = vld [vmem:[%s5184_s1 + $0x2a0] ss:$8 sps:$4 sm:$0xff]  }
 0x105   : > { %2347 = vmatprep.subr.bf16.mxu1 %v3556_v8  ;;  %v3562_v12 = vld [vmem:[%s5184_s1 + $0x3c0] ss:$8 sps:$4 sm:$0xff]   ;;  %v3563_v8 = vld [vmem:[%s5184_s1 + $0x2b4] ss:$8 sps:$4 sm:$0xff]  }
 0x107   : > { %2057 = vmatpush1.bf16.msra.mxu0 %v3557_v17  ;;  %v3564_v17 = vld [vmem:[%s5184_s1 + $0x3d4] ss:$8 sps:$4 sm:$0xff]  }
 0x108   : > { %2348 = vmatpush1.bf16.msra.mxu1 %v3558_v33  ;;  %2058 = vmatprep.subr.bf16.mxu0 %v3559_v18  ;;  %v3565_v33 = vld [vmem:[%s5184_s1 + $0x2b0] ss:$8 sps:$4 sm:$0xff]  }
 0x109   : > { %2349 = vmatprep.subr.bf16.mxu1 %v3560_v4  ;;  %v3566_v18 = vld [vmem:[%s5184_s1 + $0x3d0] ss:$8 sps:$4 sm:$0xff]   ;;  %v3567_v4 = vld [vmem:[%s5184_s1 + $0x2c4] ss:$8 sps:$4 sm:$0xff]  }
 0x10b   : > { %2059 = vmatpush1.bf16.msra.mxu0 %v3561_v13  ;;  %v3568_v13 = vld [vmem:[%s5184_s1 + $0x3e4] ss:$8 sps:$4 sm:$0xff]  }
 0x10c   : > { %2350 = vmatpush1.bf16.msra.mxu1 %v3562_v12  ;;  %2060 = vmatprep.subr.bf16.mxu0 %v3563_v8  ;;  %v3569_v12 = vld [vmem:[%s5184_s1 + $0x2c0] ss:$8 sps:$4 sm:$0xff]  }
 0x10d   : > { %2351 = vmatprep.subr.bf16.mxu1 %v3564_v17  ;;  %v3570_v8 = vld [vmem:[%s5184_s1 + $0x3e0] ss:$8 sps:$4 sm:$0xff]   ;;  %v3571_v17 = vld [vmem:[%s5184_s1 + $0x2d4] ss:$8 sps:$4 sm:$0xff]  }
 0x10f   : > { %2061 = vmatpush1.bf16.msra.mxu0 %v3565_v33  ;;  %v3572_v33 = vld [vmem:[%s5184_s1 + $0x3f4] ss:$8 sps:$4 sm:$0xff]  }
 0x110   : > { %2352 = vmatpush1.bf16.msra.mxu1 %v3566_v18  ;;  %2062 = vmatprep.subr.bf16.mxu0 %v3567_v4  ;;  %v3573_v18 = vld [vmem:[%s5184_s1 + $0x2d0] ss:$8 sps:$4 sm:$0xff]  }
 0x111   : > { %2353 = vmatprep.subr.bf16.mxu1 %v3568_v13  ;;  %v3574_v4 = vld [vmem:[%s5184_s1 + $0x3f0] ss:$8 sps:$4 sm:$0xff]   ;;  %v3575_v13 = vld [vmem:[%s5184_s1 + $0x2e4] ss:$8 sps:$4 sm:$0xff]  }
 0x113   : > { %2063 = vmatpush1.bf16.msra.mxu0 %v3569_v12  ;;  %v3576_v12 = vld [vmem:[%s5184_s1 + $0x404] ss:$8 sps:$4 sm:$0xff]  }
 0x114   : > { %2354 = vmatpush1.bf16.msra.mxu1 %v3570_v8  ;;  %2064 = vmatprep.subr.bf16.mxu0 %v3571_v17  ;;  %v3577_v8 = vld [vmem:[%s5184_s1 + $0x2e0] ss:$8 sps:$4 sm:$0xff]  }
 0x115   : > { %2355 = vmatprep.subr.bf16.mxu1 %v3572_v33  ;;  %v3578_v17 = vld [vmem:[%s5184_s1 + $0x400] ss:$8 sps:$4 sm:$0xff]   ;;  %v3579_v33 = vld [vmem:[%s5184_s1 + $0x2f4] ss:$8 sps:$4 sm:$0xff]  }
 0x117   : > { %2065 = vmatpush1.bf16.msra.mxu0 %v3573_v18  ;;  %v3580_v18 = vld [vmem:[%s5184_s1 + $0x414] ss:$8 sps:$4 sm:$0xff]  }
 0x118   : > { %2356 = vmatpush1.bf16.msra.mxu1 %v3574_v4  ;;  %2066 = vmatprep.subr.bf16.mxu0 %v3575_v13  ;;  %v3581_v4 = vld [vmem:[%s5184_s1 + $0x2f0] ss:$8 sps:$4 sm:$0xff]  }
 0x119   : > { %2357 = vmatprep.subr.bf16.mxu1 %v3576_v12  ;;  %v3582_v13 = vld [vmem:[%s5184_s1 + $0x410] ss:$8 sps:$4 sm:$0xff]   ;;  %v3583_v12 = vld [vmem:[%s5184_s1 + $0x304] ss:$8 sps:$4 sm:$0xff]  }
 0x11b   : > { %2067 = vmatpush1.bf16.msra.mxu0 %v3577_v8  ;;  %v3584_v8 = vld [vmem:[%s5184_s1 + $0x424] ss:$8 sps:$4 sm:$0xff]  }
 0x11c   : > { %2358 = vmatpush1.bf16.msra.mxu1 %v3578_v17  ;;  %2068 = vmatprep.subr.bf16.mxu0 %v3579_v33  ;;  %v3585_v17 = vld [vmem:[%s5184_s1 + $0x300] ss:$8 sps:$4 sm:$0xff]  }
 0x11d   : > { %2359 = vmatprep.subr.bf16.mxu1 %v3580_v18  ;;  %v3586_v33 = vld [vmem:[%s5184_s1 + $0x420] ss:$8 sps:$4 sm:$0xff]   ;;  %v3587_v18 = vld [vmem:[%s5184_s1 + $0x314] ss:$8 sps:$4 sm:$0xff]  }
 0x11f   : > { %2069 = vmatpush1.bf16.msra.mxu0 %v3581_v4  ;;  %v3588_v4 = vld [vmem:[%s5184_s1 + $0x434] ss:$8 sps:$4 sm:$0xff]  }
 0x120   : > { %2360 = vmatpush1.bf16.msra.mxu1 %v3582_v13  ;;  %2070 = vmatprep.subr.bf16.mxu0 %v3583_v12  ;;  %v3589_v13 = vld [vmem:[%s5184_s1 + $0x310] ss:$8 sps:$4 sm:$0xff]  }
 0x121   : > { %2361 = vmatprep.subr.bf16.mxu1 %v3584_v8  ;;  %v3590_v12 = vld [vmem:[%s5184_s1 + $0x430] ss:$8 sps:$4 sm:$0xff]   ;;  %v3591_v8 = vld [vmem:[%s5184_s1 + $0x324] ss:$8 sps:$4 sm:$0xff]  }
 0x123   : > { %2071 = vmatpush1.bf16.msra.mxu0 %v3585_v17  ;;  %v3592_v17 = vld [vmem:[%s5184_s1 + $0x444] ss:$8 sps:$4 sm:$0xff]  }
 0x124   : > { %2362 = vmatpush1.bf16.msra.mxu1 %v3586_v33  ;;  %2072 = vmatprep.subr.bf16.mxu0 %v3587_v18  ;;  %v3593_v33 = vld [vmem:[%s5184_s1 + $0x320] ss:$8 sps:$4 sm:$0xff]  }
 0x125   : > { %2363 = vmatprep.subr.bf16.mxu1 %v3588_v4  ;;  %v3594_v18 = vld [vmem:[%s5184_s1 + $0x440] ss:$8 sps:$4 sm:$0xff]   ;;  %v3595_v4 = vld [vmem:[%s5184_s1 + $0x334] ss:$8 sps:$4 sm:$0xff]  }
 0x127   : > { %2073 = vmatpush1.bf16.msra.mxu0 %v3589_v13  ;;  %v3596_v13 = vld [vmem:[%s5184_s1 + $0x454] ss:$8 sps:$4 sm:$0xff]  }
 0x128   : > { %2364 = vmatpush1.bf16.msra.mxu1 %v3590_v12  ;;  %2074 = vmatprep.subr.bf16.mxu0 %v3591_v8  ;;  %v3597_v12 = vld [vmem:[%s5184_s1 + $0x330] ss:$8 sps:$4 sm:$0xff]  }
 0x129   : > { %2365 = vmatprep.subr.bf16.mxu1 %v3592_v17  ;;  %v3598_v8 = vld [vmem:[%s5184_s1 + $0x450] ss:$8 sps:$4 sm:$0xff]   ;;  %v3599_v17 = vld [vmem:[%s5184_s1 + $0x344] ss:$8 sps:$4 sm:$0xff]  }
 0x12b   : > { %2075 = vmatpush1.bf16.msra.mxu0 %v3593_v33  ;;  %v3600_v33 = vld [vmem:[%s5184_s1 + $0x464] ss:$8 sps:$4 sm:$0xff]  }
 0x12c   : > { %2366 = vmatpush1.bf16.msra.mxu1 %v3594_v18  ;;  %2076 = vmatprep.subr.bf16.mxu0 %v3595_v4  ;;  %v3601_v18 = vld [vmem:[%s5184_s1 + $0x340] ss:$8 sps:$4 sm:$0xff]  }
 0x12d   : > { %2367 = vmatprep.subr.bf16.mxu1 %v3596_v13  ;;  %v3602_v4 = vld [vmem:[%s5184_s1 + $0x460] ss:$8 sps:$4 sm:$0xff]   ;;  %v3603_v13 = vld [vmem:[%s5184_s1 + $0x354] ss:$8 sps:$4 sm:$0xff]  }
 0x12f   : > { %2077 = vmatpush1.bf16.msra.mxu0 %v3597_v12  ;;  %v3604_v12 = vld [vmem:[%s5184_s1 + $0x474] ss:$8 sps:$4 sm:$0xff]  }
 0x130   : > { %2368 = vmatpush1.bf16.msra.mxu1 %v3598_v8  ;;  %2087 = vmatprep.subr.bf16.mxu0 %v3599_v17  ;;  %v3606_v8 = vld [vmem:[%s5184_s1 + $0x470] ss:$8 sps:$4 sm:$0xff]   ;;  %v3607_v17 = vld [vmem:[%s5184_s1 + $0x4] ss:$8 sps:$4 sm:$0xff]  }
 0x131   : > { %2378 = vmatprep.subr.bf16.mxu1 %v3600_v33  ;;  %v3608_v33 = vld [vmem:[%s5184_s1 + $0x124] ss:$8 sps:$4 sm:$0xff]  }
 0x132   : > { %2079 = vmatmul.mubr.bf16.vlgmr.msra.gmra.mrb[4].mxu0 %v4722_v16 }
 0x133   : > { %2370 = vmatmul.mubr.bf16.vlgmr.msra.gmra.mrb[4].mxu1 %v4722_v16  ;;  %2088 = vmatpush1.bf16.msra.mxu0 %v3601_v18  ;;  %v3605_v16 = vld [vmem:[%s5184_s1 + $0x350] ss:$8 sps:$4 sm:$0xff]   ;;  %v3609_v18 = vld [vmem:[%s5184_s1] ss:$8 sps:$4 sm:$0xff]  }
 0x134   : > { %2379 = vmatpush1.bf16.msra.mxu1 %v3602_v4  ;;  %2089 = vmatprep.subr.bf16.mxu0 %v3603_v13  ;;  %v3610_v4 = vld [vmem:[%s5184_s1 + $0x120] ss:$8 sps:$4 sm:$0xff]   ;;  %v3611_v13 = vld [vmem:[%s5184_s1 + $0x14] ss:$8 sps:$4 sm:$0xff]  }
 0x135   : > { %2380 = vmatprep.subr.bf16.mxu1 %v3604_v12  ;;  %2119 = vmatprep.mubr.bf16.mxu0 %v5295_v15  ;;  %v3612_v12 = vld [vmem:[%s5184_s1 + $0x134] ss:$8 sps:$4 sm:$0xff]  }
 0x136   : > { %2410 = vmatprep.mubr.bf16.mxu1 %v5295_v15 }
 0x137   : > { %2090 = vmatpush1.bf16.msra.mxu0 %v3605_v16  ;;  %v5410_v16 = vld [vmem:[#allocation49_spill] sm:$0xff] }
 0x138   : > { %2381 = vmatpush1.bf16.msra.mxu1 %v3606_v8  ;;  %2128 = vmatprep.subr.bf16.mxu0 %v3607_v17  ;;  %v5411_v8 = vld [vmem:[#allocation50_spill] sm:$0xff]  ;;  %v5412_v17 = vld [vmem:[#allocation51_spill] sm:$0xff] }
 0x139   : > { %2419 = vmatprep.subr.bf16.mxu1 %v3608_v33  ;;  %v5413_v33 = vld [vmem:[#allocation52_spill] sm:$0xff] }
 0x13e   : > { %3090 = vmatmul.mubr.msk.bf16.vlgmr.msra.gmra.mrb[4].mxu0 %vm440_vm0, %v4775_v10 }
 0x13f   : > { %3100 = vmatmul.mubr.msk.bf16.vlgmr.msra.gmra.mrb[4].mxu1 %vm440_vm0, %v4775_v10  ;;  %2129 = vmatpush1.bf16.msra.mxu0 %v3609_v18  ;;  %v5409_v10 = vld [vmem:[#allocation48_spill] sm:$0xff]  ;;  %v5414_v18 = vld [vmem:[#allocation53_spill] sm:$0xff] }
 0x140   : > { %2420 = vmatpush1.bf16.msra.mxu1 %v3610_v4  ;;  %2130 = vmatprep.subr.bf16.mxu0 %v3611_v13  ;;  %v5415_v4 = vld [vmem:[#allocation54_spill] sm:$0xff]  ;;  %v5416_v13 = vld [vmem:[#allocation55_spill] sm:$0xff] }
 0x141   : > { %2421 = vmatprep.subr.bf16.mxu1 %v3612_v12  ;;  %2160 = vmatprep.mubr.bf16.mxu0 %v3805_v48  ;;  %v5417_v12 = vld [vmem:[#allocation56_spill] sm:$0xff] }
 0x142   : > { %2451 = vmatprep.mubr.bf16.mxu1 %v3805_v48  ;;  %v5363_v48 = vld [vmem:[#allocation3_spill] sm:$0xff] }
 0x143   : > { %2131 = vmatpush1.bf16.msra.mxu0 %v3914_v19  ;;  %v5364_v19 = vld [vmem:[#allocation4_spill] sm:$0xff] }
 0x144   : > { %2422 = vmatpush1.bf16.msra.mxu1 %v3919_v20  ;;  %2132 = vmatprep.subr.bf16.mxu0 %v3924_v21  ;;  %v5365_v20 = vld [vmem:[#allocation5_spill] sm:$0xff]  ;;  %v5366_v21 = vld [vmem:[#allocation6_spill] sm:$0xff] }
 0x145   : > { %2423 = vmatprep.subr.bf16.mxu1 %v3929_v22  ;;  %v5367_v22 = vld [vmem:[#allocation7_spill] sm:$0xff] }
 0x147   : > { %2133 = vmatpush1.bf16.msra.mxu0 %v3934_v23  ;;  %v5368_v23 = vld [vmem:[#allocation8_spill] sm:$0xff] }
 0x148   : > { %2424 = vmatpush1.bf16.msra.mxu1 %v3941_v24  ;;  %2134 = vmatprep.subr.bf16.mxu0 %v3946_v25  ;;  %v5369_v24 = vld [vmem:[#allocation9_spill] sm:$0xff]  ;;  %v5370_v25 = vld [vmem:[#allocation10_spill] sm:$0xff] }
 0x149   : > { %2425 = vmatprep.subr.bf16.mxu1 %v3953_v26  ;;  %v5371_v26 = vld [vmem:[#allocation11_spill] sm:$0xff] }
 0x14b   : > { %2135 = vmatpush1.bf16.msra.mxu0 %v3958_v27  ;;  %v5372_v27 = vld [vmem:[#allocation12_spill] sm:$0xff] }
 0x14c   : > { %2426 = vmatpush1.bf16.msra.mxu1 %v3965_v28  ;;  %2136 = vmatprep.subr.bf16.mxu0 %v3970_v29  ;;  %v5373_v28 = vld [vmem:[#allocation13_spill] sm:$0xff] }
 0x14d   : > { %2427 = vmatprep.subr.bf16.mxu1 %v3977_v30  ;;  %v3533_v29 = vld [vmem:[%s3793_s30 + $0x1c] ss:$12 sps:$4 sm:$0x1f]   ;;  %v5374_v30 = vld [vmem:[#allocation2_spill] sm:$0xff] }
 0x14f   : > { %2137 = vmatpush1.bf16.msra.mxu0 %v3982_v31  ;;  %v5375_v31 = vld [vmem:[#allocation14_spill] sm:$0xff] }
 0x150   : > { %2428 = vmatpush1.bf16.msra.mxu1 %v3987_v32  ;;  %2138 = vmatprep.subr.bf16.mxu0 %v3997_v34  ;;  %v5376_v32 = vld [vmem:[#allocation15_spill] sm:$0xff]  ;;  %v5377_v34 = vld [vmem:[#allocation16_spill] sm:$0xff] }
 0x151   : > { %2429 = vmatprep.subr.bf16.mxu1 %v4006_v36  ;;  %v5378_v36 = vld [vmem:[#allocation17_spill] sm:$0xff] }
 0x153   : > { %2139 = vmatpush1.bf16.msra.mxu0 %v4011_v37  ;;  %v2237_v37 = vshll.u32 %v3533_v29, 16 }
 0x154   : > { %2430 = vmatpush1.bf16.msra.mxu1 %v4016_v38  ;;  %2140 = vmatprep.subr.bf16.mxu0 %v4023_v39  ;;  %v5379_v38 = vld [vmem:[#allocation18_spill] sm:$0xff]  ;;  %v5380_v39 = vld [vmem:[#allocation19_spill] sm:$0xff] }
 0x155   : > { %2431 = vmatprep.subr.bf16.mxu1 %v4030_v40  ;;  %v5381_v40 = vld [vmem:[#allocation20_spill] sm:$0xff] }
 0x157   : > { %2141 = vmatpush1.bf16.msra.mxu0 %v4035_v41  ;;  %v2235_v41 = vshrl.u32 %v3533_v29, 16  ;;  %v3531_v29 = vld [vmem:[%s3793_s30 + $0x18] ss:$12 sps:$4 sm:$0x1f]  }
 0x158   : > { %2432 = vmatpush1.bf16.msra.mxu1 %v4042_v42  ;;  %2142 = vmatprep.subr.bf16.mxu0 %v4049_v43  ;;  %v2239_v42 = vrot.slane %v2237_v37, 1  ;;  %v5433_v37 = vld [vmem:[#allocation72_spill] sm:$0xff] }
 0x159   : > { %2433 = vmatprep.subr.bf16.mxu1 %v4054_v44  ;;  %v3613_v44 = vld [vmem:[%s3793_s30 + $0x20] ss:$0 sps:$4 sm:$0xff]  }
 0x15a   : > { %v2240_v43 = vor.u32 %v2239_v42, %v2235_v41  ;;  %v2228_v41 = vshrl.u32 %v3531_v29, 16 }
 0x15b   : > { %2143 = vmatpush1.bf16.msra.mxu0 %v4061_v45  ;;  %v5382_v45 = vld [vmem:[#allocation21_spill] sm:$0xff] }
 0x15c   : > { %2434 = vmatpush1.bf16.msra.mxu1 %v4066_v46  ;;  %2144 = vmatprep.subr.bf16.mxu0 %v4073_v47  ;;  %v5383_v46 = vld [vmem:[#allocation22_spill] sm:$0xff]  ;;  %v5384_v47 = vld [vmem:[#allocation23_spill] sm:$0xff] }
 0x15d   : > { %2435 = vmatprep.subr.bf16.mxu1 %v4078_v49  ;;  %v5385_v49 = vld [vmem:[#allocation24_spill] sm:$0xff] }
 0x15f   : > { %2145 = vmatpush1.bf16.msra.mxu0 %v4085_v50  ;;  %v5386_v50 = vld [vmem:[#allocation25_spill] sm:$0xff] }
 0x160   : > { %2436 = vmatpush1.bf16.msra.mxu1 %v4090_v51  ;;  %2146 = vmatprep.subr.bf16.mxu0 %v4097_v52  ;;  %v5387_v51 = vld [vmem:[#allocation26_spill] sm:$0xff]  ;;  %v5388_v52 = vld [vmem:[#allocation27_spill] sm:$0xff] }
 0x161   : > { %2437 = vmatprep.subr.bf16.mxu1 %v4102_v53  ;;  %v5389_v53 = vld [vmem:[#allocation28_spill] sm:$0xff] }
 0x163   : > { %2147 = vmatpush1.bf16.msra.mxu0 %v4109_v54  ;;  %v5390_v54 = vld [vmem:[#allocation29_spill] sm:$0xff] }
 0x164   : > { %2438 = vmatpush1.bf16.msra.mxu1 %v4114_v55  ;;  %2148 = vmatprep.subr.bf16.mxu0 %v4121_v56  ;;  %v5391_v55 = vld [vmem:[#allocation30_spill] sm:$0xff]  ;;  %v5392_v56 = vld [vmem:[#allocation31_spill] sm:$0xff] }
 0x165   : > { %2439 = vmatprep.subr.bf16.mxu1 %v4126_v57  ;;  %v5393_v57 = vld [vmem:[#allocation32_spill] sm:$0xff] }
 0x167   : > { %2149 = vmatpush1.bf16.msra.mxu0 %v4133_v58  ;;  %v5394_v58 = vld [vmem:[#allocation33_spill] sm:$0xff] }
 0x168   : > { %2440 = vmatpush1.bf16.msra.mxu1 %v4138_v59  ;;  %2150 = vmatprep.subr.bf16.mxu0 %v4145_v60  ;;  %v5395_v59 = vld [vmem:[#allocation34_spill] sm:$0xff]  ;;  %v5396_v60 = vld [vmem:[#allocation35_spill] sm:$0xff] }
 0x169   : > { %2441 = vmatprep.subr.bf16.mxu1 %v4150_v61  ;;  %v5397_v61 = vld [vmem:[#allocation36_spill] sm:$0xff] }
 0x16b   : > { %2151 = vmatpush1.bf16.msra.mxu0 %v4157_v62  ;;  %v5398_v62 = vld [vmem:[#allocation37_spill] sm:$0xff] }
 0x16c   : > { %2442 = vmatpush1.bf16.msra.mxu1 %v4162_v63  ;;  %2152 = vmatprep.subr.bf16.mxu0 %v4169_v0  ;;  %v5399_v63 = vld [vmem:[#allocation38_spill] sm:$0xff]  ;;  %v5400_v0 = vld [vmem:[#allocation39_spill] sm:$0xff] }
 0x16d   : > { %2443 = vmatprep.subr.bf16.mxu1 %v4174_v1  ;;  %v5401_v1 = vld [vmem:[#allocation40_spill] sm:$0xff] }
 0x16f   : > { %2153 = vmatpush1.bf16.msra.mxu0 %v4181_v2  ;;  %v5402_v2 = vld [vmem:[#allocation41_spill] sm:$0xff] }
 0x170   : > { %2444 = vmatpush1.bf16.msra.mxu1 %v4186_v3  ;;  %2154 = vmatprep.subr.bf16.mxu0 %v4193_v5  ;;  %v5403_v3 = vld [vmem:[#allocation42_spill] sm:$0xff]  ;;  %v5404_v5 = vld [vmem:[#allocation43_spill] sm:$0xff] }
 0x171   : > { %2445 = vmatprep.subr.bf16.mxu1 %v4198_v6  ;;  %v5405_v6 = vld [vmem:[#allocation44_spill] sm:$0xff] }
 0x173   : > { %2155 = vmatpush1.bf16.msra.mxu0 %v4205_v7  ;;  %v5406_v7 = vld [vmem:[#allocation45_spill] sm:$0xff] }
 0x174   : > { %2446 = vmatpush1.bf16.msra.mxu1 %v5363_v48  ;;  %2156 = vmatprep.subr.bf16.mxu0 %v5364_v19  ;;  %v5418_v48 = vld [vmem:[#allocation57_spill] sm:$0xff]  ;;  %v5419_v19 = vld [vmem:[#allocation58_spill] sm:$0xff] }
 0x175   : > { %2447 = vmatprep.subr.bf16.mxu1 %v5365_v20  ;;  %v5420_v20 = vld [vmem:[#allocation59_spill] sm:$0xff] }
 0x177   : > { %2157 = vmatpush1.bf16.msra.mxu0 %v5366_v21  ;;  %v5421_v21 = vld [vmem:[#allocation60_spill] sm:$0xff] }
 0x178   : > { %2448 = vmatpush1.bf16.msra.mxu1 %v5367_v22  ;;  %2158 = vmatprep.subr.bf16.mxu0 %v5368_v23  ;;  %v5422_v22 = vld [vmem:[#allocation61_spill] sm:$0xff]  ;;  %v5423_v23 = vld [vmem:[#allocation62_spill] sm:$0xff] }
 0x179   : > { %2449 = vmatprep.subr.bf16.mxu1 %v5369_v24  ;;  %v5424_v24 = vld [vmem:[#allocation63_spill] sm:$0xff] }
 0x17b   : > { %2159 = vmatpush1.bf16.msra.mxu0 %v5370_v25  ;;  %v5425_v25 = vld [vmem:[#allocation64_spill] sm:$0xff] }
 0x17c   : > { %2450 = vmatpush1.bf16.msra.mxu1 %v5371_v26  ;;  %2169 = vmatprep.subr.bf16.mxu0 %v5372_v27  ;;  %v5426_v26 = vld [vmem:[#allocation65_spill] sm:$0xff]  ;;  %v5427_v27 = vld [vmem:[#allocation66_spill] sm:$0xff] }
 0x17d   : > { %2460 = vmatprep.subr.bf16.mxu1 %v5373_v28  ;;  %v5428_v28 = vld [vmem:[#allocation67_spill] sm:$0xff] }
 0x17e   : > { %2161 = vmatmul.mubr.bf16.vlgmr.msra.gmra.mrb[4].mxu0 %v5374_v30 }
 0x17f   : > { %2452 = vmatmul.mubr.bf16.vlgmr.msra.gmra.mrb[4].mxu1 %v5374_v30  ;;  %2170 = vmatpush1.bf16.msra.mxu0 %v5375_v31  ;;  %v5429_v30 = vld [vmem:[#allocation68_spill] sm:$0xff]  ;;  %v5430_v31 = vld [vmem:[#allocation69_spill] sm:$0xff] }
 0x180   : > { %2461 = vmatpush1.bf16.msra.mxu1 %v5376_v32  ;;  %2171 = vmatprep.subr.bf16.mxu0 %v5377_v34  ;;  %v5431_v32 = vld [vmem:[#allocation70_spill] sm:$0xff]  ;;  %v5432_v34 = vld [vmem:[#allocation71_spill] sm:$0xff] }
 0x181   : > { %2462 = vmatprep.subr.bf16.mxu1 %v5378_v36  ;;  %2201 = vmatprep.mubr.bf16.mxu0 %v5295_v15  ;;  %v2230_v36 = vshll.u32 %v3531_v29, 16 }
 0x182   : > { %2492 = vmatprep.mubr.bf16.mxu1 %v5295_v15 }
 0x183   : > { %2172 = vmatpush1.bf16.msra.mxu0 %v4306_v11  ;;  %v5408_v11 = vld [vmem:[#allocation47_spill] sm:$0xff]  ;;  %v2232_v42 = vrot.slane %v2230_v36, 1 }
 0x184   : > { %2463 = vmatpush1.bf16.msra.mxu1 %v5379_v38  ;;  %2253 = vmatprep.subr.bf16.mxu0 %v5380_v39  ;;  %v5434_v38 = vld [vmem:[#allocation73_spill] sm:$0xff]  ;;  %v5435_v39 = vld [vmem:[#allocation74_spill] sm:$0xff] }
 0x185   : > { %2501 = vmatprep.subr.bf16.mxu1 %v5381_v40  ;;  %v5436_v40 = vld [vmem:[#allocation75_spill] sm:$0xff] }
 0x18a   : > { %3091 = vmatmul.mubr.msk.bf16.vlgmr.msra.gmra.mrb[4].mxu0 %vm440_vm0, %v3613_v44 }
 0x18b   : > { %3101 = vmatmul.mubr.msk.bf16.vlgmr.msra.gmra.mrb[4].mxu1 %vm440_vm0, %v3613_v44  ;;  %2254 = vmatpush1.bf16.msra.mxu0 %v4337_v9  ;;  %v5407_v9 = vld [vmem:[#allocation46_spill] sm:$0xff]  ;;  %v5438_v44 = vld [vmem:[#allocation77_spill] sm:$0xff] }
 0x18c   : > { %2502 = vmatpush1.bf16.msra.mxu1 %v5382_v45  ;;  %2255 = vmatprep.subr.bf16.mxu0 %v5383_v46  ;;  %v5439_v45 = vld [vmem:[#allocation78_spill] sm:$0xff]  ;;  %v5440_v46 = vld [vmem:[#allocation79_spill] sm:$0xff] }
 0x18d   : > { %2503 = vmatprep.subr.bf16.mxu1 %v5384_v47  ;;  %2285 = vmatprep.mubr.bf16.mxu0 %v2240_v43 }
 0x18e   : > { %2533 = vmatprep.mubr.bf16.mxu1 %v2240_v43  ;;  %v5437_v43 = vld [vmem:[#allocation76_spill] sm:$0xff] }
 0x18f   : > { %2256 = vmatpush1.bf16.msra.mxu0 %v5385_v49 }
 0x190   : > { %2504 = vmatpush1.bf16.msra.mxu1 %v5386_v50  ;;  %2257 = vmatprep.subr.bf16.mxu0 %v5387_v51 }
 0x191   : > { %2505 = vmatprep.subr.bf16.mxu1 %v5388_v52 }
 0x193   : > { %2258 = vmatpush1.bf16.msra.mxu0 %v5389_v53  ;;  %v2233_v53 = vor.u32 %v2232_v42, %v2228_v41 }
 0x194   : > { %2506 = vmatpush1.bf16.msra.mxu1 %v5390_v54  ;;  %2259 = vmatprep.subr.bf16.mxu0 %v5391_v55  ;;  %v3534_v54 = vld [vmem:[%s3793_s30 + $0x20] ss:$12 sps:$4 sm:$0x1f]   ;;  %v5441_v55 = vld [vmem:[#allocation80_spill] sm:$0xff] }
 0x195   : > { %2507 = vmatprep.subr.bf16.mxu1 %v5392_v56  ;;  %v5442_v56 = vld [vmem:[#allocation81_spill] sm:$0xff] }
 0x197   : > { %2260 = vmatpush1.bf16.msra.mxu0 %v5393_v57 }
 0x198   : > { %2508 = vmatpush1.bf16.msra.mxu1 %v5394_v58  ;;  %2261 = vmatprep.subr.bf16.mxu0 %v5395_v59 }
 0x199   : > { %2509 = vmatprep.subr.bf16.mxu1 %v5396_v60  ;;  %v5443_v60 = vld [vmem:[#allocation82_spill] sm:$0xff] }
 0x19b   : > { %2262 = vmatpush1.bf16.msra.mxu0 %v5397_v61  ;;  %v5444_v61 = vld [vmem:[#allocation83_spill] sm:$0xff] }
 0x19c   : > { %2510 = vmatpush1.bf16.msra.mxu1 %v5398_v62  ;;  %2263 = vmatprep.subr.bf16.mxu0 %v5399_v63 }
 0x19d   : > { %2511 = vmatprep.subr.bf16.mxu1 %v5400_v0  ;;  %v2244_v0 = vshll.u32 %v3534_v54, 16 }
 0x19f   : > { %2264 = vmatpush1.bf16.msra.mxu0 %v5401_v1  ;;  %v5445_v1 = vld [vmem:[#allocation84_spill] sm:$0xff] }
 0x1a0   : > { %2512 = vmatpush1.bf16.msra.mxu1 %v5402_v2  ;;  %2265 = vmatprep.subr.bf16.mxu0 %v5403_v3  ;;  %v5446_v2 = vld [vmem:[#allocation85_spill] sm:$0xff]  ;;  %v5447_v3 = vld [vmem:[#allocation86_spill] sm:$0xff] }
 0x1a1   : > { %2513 = vmatprep.subr.bf16.mxu1 %v5404_v5  ;;  %v5448_v5 = vld [vmem:[#allocation87_spill] sm:$0xff] }
 0x1a3   : > { %2266 = vmatpush1.bf16.msra.mxu0 %v5405_v6  ;;  %v2242_v6 = vshrl.u32 %v3534_v54, 16 }
 0x1a4   : > { %2514 = vmatpush1.bf16.msra.mxu1 %v5406_v7  ;;  %2267 = vmatprep.subr.bf16.mxu0 %v5407_v9  ;;  %v2246_v7 = vrot.slane %v2244_v0, 1 }
 0x1a5   : > { %2515 = vmatprep.subr.bf16.mxu1 %v5408_v11  ;;  %v2591_v11 = vlaneseq }
 0x1a6   : > { %v2247_v9 = vor.u32 %v2246_v7, %v2242_v6 }
 0x1a7   : > { %2268 = vmatpush1.bf16.msra.mxu0 %v5409_v10  ;;  %v2592_v10 = vshrl.u32 %v2591_v11, 7 }
 0x1a8   : > { %2516 = vmatpush1.bf16.msra.mxu1 %v5410_v16  ;;  %2269 = vmatprep.subr.bf16.mxu0 %v5411_v8  ;;  %v2589_v8 = vld [vmem:[%s5185_s2] sm:$0x3] }
 0x1a9   : > { %2517 = vmatprep.subr.bf16.mxu1 %v5412_v17  ;;  %v2593_v16 = vsub.s32 0, %v2592_v10  ;;  %v2597_v17 = vsub.s32 1, %v2592_v10 }
 0x1ab   : > { %2270 = vmatpush1.bf16.msra.mxu0 %v5413_v33 }
 0x1ac   : > { %2518 = vmatpush1.bf16.msra.mxu1 %v5414_v18  ;;  %2271 = vmatprep.subr.bf16.mxu0 %v5415_v4 }
 0x1ad   : > { %2519 = vmatprep.subr.bf16.mxu1 %v5416_v13 }
 0x1af   : > { %2272 = vmatpush1.bf16.msra.mxu0 %v5417_v12  ;;  %v2598_v12 = vrot.slane %v2589_v8, %v2597_v17 }
 0x1b0   : > { %2520 = vmatpush1.bf16.msra.mxu1 %v5418_v48  ;;  %2273 = vmatprep.subr.bf16.mxu0 %v5419_v19 }
 0x1b1   : > { %2521 = vmatprep.subr.bf16.mxu1 %v5420_v20 }
 0x1b3   : > { %2274 = vmatpush1.bf16.msra.mxu0 %v5421_v21 }
 0x1b4   : > { %2522 = vmatpush1.bf16.msra.mxu1 %v5422_v22  ;;  %2275 = vmatprep.subr.bf16.mxu0 %v5423_v23 }
 0x1b5   : > { %2523 = vmatprep.subr.bf16.mxu1 %v5424_v24 }
 0x1b7   : > { %2276 = vmatpush1.bf16.msra.mxu0 %v5425_v25 }
 0x1b8   : > { %2524 = vmatpush1.bf16.msra.mxu1 %v5426_v26  ;;  %2277 = vmatprep.subr.bf16.mxu0 %v5427_v27 }
 0x1b9   : > { %2525 = vmatprep.subr.bf16.mxu1 %v5428_v28 }
 0x1bb   : > { %2278 = vmatpush1.bf16.msra.mxu0 %v5429_v30 }
 0x1bc   : > { %2526 = vmatpush1.bf16.msra.mxu1 %v5430_v31  ;;  %2279 = vmatprep.subr.bf16.mxu0 %v5431_v32 }
 0x1bd   : > { %2527 = vmatprep.subr.bf16.mxu1 %v5432_v34 }
 0x1bf   : > { %2280 = vmatpush1.bf16.msra.mxu0 %v5433_v37 }
 0x1c0   : > { %2528 = vmatpush1.bf16.msra.mxu1 %v5434_v38  ;;  %2281 = vmatprep.subr.bf16.mxu0 %v5435_v39 }
 0x1c1   : > { %2529 = vmatprep.subr.bf16.mxu1 %v5436_v40 }
 0x1c3   : > { %2282 = vmatpush1.bf16.msra.mxu0 %v5437_v43 }
 0x1c4   : > { %2530 = vmatpush1.bf16.msra.mxu1 %v5438_v44  ;;  %2283 = vmatprep.subr.bf16.mxu0 %v5439_v45 }
 0x1c5   : > { %2531 = vmatprep.subr.bf16.mxu1 %v5440_v46  ;;  %v1136_v47 = vpop.f32.mrb[0].mxu0 }
 0x1c6   : > { %v2035_v49 = vpop.f32.mrb[0].mxu1  ;;  %v1138_v51 = vpop.f32.mrb[1].mxu0 }
 0x1c7   : > { %v2044_v50 = vmax.f32 %v1136_v47, %v2035_v49  ;;  %v2037_v52 = vpop.f32.mrb[1].mxu1  ;;  %2284 = vmatpush1.bf16.msra.mxu0 %v5441_v55  ;;  %v1140_v58 = vpop.f32.mrb[2].mxu0 }
 0x1c8   : > { %2532 = vmatpush1.bf16.msra.mxu1 %v5442_v56  ;;  %v2045_v57 = vmax.f32 %v1138_v51, %v2037_v52  ;;  %v2039_v59 = vpop.f32.mrb[2].mxu1  ;;  %2294 = vmatprep.subr.bf16.mxu0 %v5443_v60  ;;  %v1141_v62 = vpop.f32.mrb[3].mxu0 }
 0x1c9   : > { %2542 = vmatprep.subr.bf16.mxu1 %v5444_v61  ;;  %v2040_v63 = vpop.f32.mrb[3].mxu1 }
 0x1ca   : > { %2286 = vmatmul.mubr.bf16.vlgmr.msra.gmra.mrb[4].mxu0 %v2233_v53 }
 0x1cb   : > { %2534 = vmatmul.mubr.bf16.vlgmr.msra.gmra.mrb[4].mxu1 %v2233_v53  ;;  %2295 = vmatpush1.bf16.msra.mxu0 %v5445_v1 }
 0x1cc   : > { %2543 = vmatpush1.bf16.msra.mxu1 %v5446_v2  ;;  %2296 = vmatprep.subr.bf16.mxu0 %v5447_v3 }
 0x1cd   : > { %2544 = vmatprep.subr.bf16.mxu1 %v5448_v5  ;;  %2326 = vmatprep.mubr.bf16.mxu0 %v5295_v15 }
 0x1ce   : > { %2574 = vmatprep.mubr.bf16.mxu1 %v5295_v15 }
 0x1cf   : > { %2297 = vmatpush1.bf16.msra.mxu0 %v4756_v14  ;;  %v2594_v14 = vrot.slane %v2589_v8, %v2593_v16 }
 0x1d0   : > { %2545 = vmatpush1.bf16.msra.mxu1 %v4761_v35 }
 0x1d6   : > { %3099 = vmatmul.mubr.msk.bf16.vlgmr.msra.gmra.mrb[4].mxu0 %vm440_vm0, %v2247_v9 }
 0x1d7   : > { %3102 = vmatmul.mubr.msk.bf16.vlgmr.msra.gmra.mrb[4].mxu1 %vm440_vm0, %v2247_v9 }
 0x2a9   : > { %v2328_v15 = vpop.f32.mrb[4].mxu0 }
 0x2aa   : > { %v2576_v33 = vpop.f32.mrb[4].mxu1  ;;  %v2330_v4 = vpop.f32.mrb[5].mxu0 }
 0x2ab   : > { %v2585_v18 = vmax.f32 %v2328_v15, %v2576_v33  ;;  %v2578_v35 = vpop.f32.mrb[5].mxu1  ;;  %v2332_v48 = vpop.f32.mrb[6].mxu0 }
 0x2ac   : > { %v2586_v13 = vmax.f32 %v2330_v4, %v2578_v35  ;;  %v2580_v19 = vpop.f32.mrb[6].mxu1  ;;  %v2333_v21 = vpop.f32.mrb[7].mxu0 }
 0x2ad   : > { %v2587_v20 = vmax.f32 %v2044_v50, %v2585_v18  ;;  %v2581_v22 = vpop.f32.mrb[7].mxu1 }
 0x2ae   : > { %v2588_v23 = vmax.f32 %v2045_v57, %v2586_v13 }
 0x2af   : > { %v2601_v24 = vadd.f32 %v2594_v14, %v2587_v20 }
 0x2b0   : > { %v2602_v25 = vadd.f32 %v2598_v12, %v2588_v23 }
 0x2b1   : > { %v2603_v26 = vmax.f32 %v2601_v24, 0.0 }
 0x2b2   : > { %v2604_v27 = vmax.f32 %v2602_v25, 0.0 }
 0x2b4   : > { %v3107_v28 = vpack.c.bf16 %v2604_v27, %v2603_v26 }
 0x2b6   : > { %2613 = vst [vmem:[%s170_s4] sm:$0xff] %v3107_v28 }
 0x2b7 PF: > { %s13_s12 = sadd.s32 1, %s3620_s12  }
 0x2b8   : > { %p10_p4 = scmp.ge.s32.totalorder %s13_s12, 4  }
 0x2ba   :  { %12 = sbr.rel (!%p10_p4) target bundleno = 1 (0x1), region = 68 }

// kernel: basic_cnn_forward.5
= control target key start
LH: loop header
LB: loop body
LE: loop exit
PB: predicated region body
PF: predicated region fallthrough
CT: control target
= control target key end

     0   :  { %v293_v28 = vlaneseq  ;;  %v2128_v36 = vmov 1966171168   ;;  %s2618_s0 = inlined_call_operand.vmem [shape: bf16[2,2048], index: 0, kind: input, shape index: {}]   ;;  %s2619_s1 = inlined_call_operand.vmem [shape: bf16[2048,128], index: 1, kind: input, shape index: {}]   ;;  %s2620_s2 = inlined_call_operand.vmem [shape: f32[1,128], index: 2, kind: input, shape index: {}]   ;;  %s2621_s3 = inlined_call_operand.vmem [shape: bf16[128,128], index: 3, kind: input, shape index: {}]   ;;  %s2622_s4 = inlined_call_operand.vmem [shape: f32[1,128], index: 4, kind: input, shape index: {}]   ;;  %s2623_s5 = inlined_call_operand.hbm [shape: f32[2,128], index: 5, kind: output, shape index: {}]  }
   0x1   :  { %v1966_v0 = vld [vmem:[%s2619_s1 + $0x40] sm:$0xff]   ;;  %v1970_v4 = vld [vmem:[%s2619_s1 + $0x48] sm:$0xff]   ;;  %v1974_v8 = vld [vmem:[%s2619_s1 + $0x50] sm:$0xff]   ;;  %v291_v37 = vunpack.c.l.s4 %v2128_v36 }
   0x2   :  { %v1967_v1 = vld [vmem:[%s2619_s1 + $0xc0] sm:$0xff]   ;;  %1757 = vmatprep.subr.bf16.mxu0 %v1966_v0  ;;  %v1971_v5 = vld [vmem:[%s2619_s1 + $0xc8] sm:$0xff]   ;;  %v1975_v9 = vld [vmem:[%s2619_s1 + $0xd0] sm:$0xff]   ;;  %v294_v33 = vshrl.u32 %v293_v28, 7 }
   0x3   :  { %v1968_v2 = vld [vmem:[%s2619_s1] sm:$0xff]   ;;  %1779 = vmatprep.subr.bf16.mxu1 %v1967_v1  ;;  %v1972_v6 = vld [vmem:[%s2619_s1 + $0x8] sm:$0xff]   ;;  %v1976_v10 = vld [vmem:[%s2619_s1 + $0x10] sm:$0xff]   ;;  %v292_v40 = vunpack.c.0.s8 %v291_v37 }
   0x4   :  { %v1969_v3 = vld [vmem:[%s2619_s1 + $0x80] sm:$0xff]   ;;  %1758 = vmatpush3.bf16.msra.mxu0 %v1968_v2  ;;  %v1973_v7 = vld [vmem:[%s2619_s1 + $0x88] sm:$0xff]   ;;  %v1977_v11 = vld [vmem:[%s2619_s1 + $0x90] sm:$0xff]  }
   0x5   :  { %1780 = vmatpush3.bf16.msra.mxu1 %v1969_v3  ;;  %1759 = vmatprep.subr.bf16.mxu0 %v1970_v4  ;;  %v1978_v12 = vld [vmem:[%s2619_s1 + $0x58] sm:$0xff]   ;;  %v1982_v16 = vld [vmem:[%s2619_s1 + $0x60] sm:$0xff]   ;;  %v1986_v20 = vld [vmem:[%s2619_s1 + $0x68] sm:$0xff]   ;;  %v2267_v41 = vsub.s32 %v292_v40, %v294_v33 }
   0x6   :  { %1781 = vmatprep.subr.bf16.mxu1 %v1971_v5  ;;  %v1979_v13 = vld [vmem:[%s2619_s1 + $0xd8] sm:$0xff]   ;;  %v1983_v17 = vld [vmem:[%s2619_s1 + $0xe0] sm:$0xff]   ;;  %v1987_v21 = vld [vmem:[%s2619_s1 + $0xe8] sm:$0xff]  }
   0x7   :  { %v1980_v14 = vld [vmem:[%s2619_s1 + $0x18] sm:$0xff]   ;;  %v1984_v18 = vld [vmem:[%s2619_s1 + $0x20] sm:$0xff]   ;;  %v1988_v22 = vld [vmem:[%s2619_s1 + $0x28] sm:$0xff]  }
   0x8   :  { %1760 = vmatpush3.bf16.msra.mxu0 %v1972_v6  ;;  %v1981_v15 = vld [vmem:[%s2619_s1 + $0x98] sm:$0xff]   ;;  %v1985_v19 = vld [vmem:[%s2619_s1 + $0xa0] sm:$0xff]   ;;  %v1989_v23 = vld [vmem:[%s2619_s1 + $0xa8] sm:$0xff]  }
   0x9   :  { %1782 = vmatpush3.bf16.msra.mxu1 %v1973_v7  ;;  %1761 = vmatprep.subr.bf16.mxu0 %v1974_v8  ;;  %v1990_v24 = vld [vmem:[%s2619_s1 + $0x70] sm:$0xff]   ;;  %v1994_v29 = vld [vmem:[%s2619_s1 + $0x78] sm:$0xff]   ;;  %v22_v34 = vld [vmem:[%s2618_s0] sm:$0xff] }
   0xa   :  { %1783 = vmatprep.subr.bf16.mxu1 %v1975_v9  ;;  %v1991_v25 = vld [vmem:[%s2619_s1 + $0xf0] sm:$0xff]   ;;  %v1995_v30 = vld [vmem:[%s2619_s1 + $0xf8] sm:$0xff]   ;;  %v1999_v35 = vld [vmem:[%s2619_s1 + $0x140] sm:$0xff]   ;;  %v289_v39 = vcombine.high %v22_v34, %v22_v34  ;;  %v296_v42 = vrot.slane %v22_v34, %v2267_v41 }
   0xb   :  { %v1992_v26 = vld [vmem:[%s2619_s1 + $0x30] sm:$0xff]   ;;  %v1996_v31 = vld [vmem:[%s2619_s1 + $0x38] sm:$0xff]   ;;  %v2000_v38 = vld [vmem:[%s2619_s1 + $0x1c0] sm:$0xff]  }
   0xc   :  { %1762 = vmatpush3.bf16.msra.mxu0 %v1976_v10  ;;  %v1993_v27 = vld [vmem:[%s2619_s1 + $0xb0] sm:$0xff]   ;;  %v1997_v32 = vld [vmem:[%s2619_s1 + $0xb8] sm:$0xff]   ;;  %v2271_v43 = vrot.slane %v289_v39, %v2267_v41  ;;  %v304_v44 = vcombine.high %v296_v42, %v296_v42  ;;  %v312_v45 = vrot.slane %v296_v42, %v2267_v41  ;;  %v2001_v47 = vld [vmem:[%s2619_s1 + $0x100] sm:$0xff]  }
   0xd   :  { %1784 = vmatpush3.bf16.msra.mxu1 %v1977_v11  ;;  %1763 = vmatprep.subr.bf16.mxu0 %v1978_v12  ;;  %v2002_v49 = vld [vmem:[%s2619_s1 + $0x180] sm:$0xff]   ;;  %v2003_v52 = vld [vmem:[%s2619_s1 + $0x148] sm:$0xff]   ;;  %v2007_v58 = vld [vmem:[%s2619_s1 + $0x150] sm:$0xff]  }
   0xe   :  { %1785 = vmatprep.subr.bf16.mxu1 %v1979_v13  ;;  %v305_v46 = vcombine.high %v2271_v43, %v2271_v43  ;;  %v326_v48 = vrot.slane %v304_v44, %v2267_v41  ;;  %v334_v51 = vcombine.high %v312_v45, %v312_v45  ;;  %v2004_v54 = vld [vmem:[%s2619_s1 + $0x1c8] sm:$0xff]   ;;  %v2008_v59 = vld [vmem:[%s2619_s1 + $0x1d0] sm:$0xff]   ;;  %v2011_v62 = vld [vmem:[%s2619_s1 + $0x158] sm:$0xff]  }
   0xf   :  { %v2005_v55 = vld [vmem:[%s2619_s1 + $0x108] sm:$0xff]   ;;  %v2009_v60 = vld [vmem:[%s2619_s1 + $0x110] sm:$0xff]   ;;  %v2012_v63 = vld [vmem:[%s2619_s1 + $0x1d8] sm:$0xff]  }
  0x10   :  { %1764 = vmatpush3.bf16.msra.mxu0 %v1980_v14  ;;  %v333_v50 = vrot.slane %v305_v46, %v2267_v41  ;;  %1203 = vmatprep.mubr.bf16.mxu0 %v326_v48  ;;  %v336_v53 = vcombine.high %v326_v48, %v326_v48  ;;  %v2006_v57 = vld [vmem:[%s2619_s1 + $0x188] sm:$0xff]   ;;  %v2010_v61 = vld [vmem:[%s2619_s1 + $0x190] sm:$0xff]   ;;  %v2013_v0 = vld [vmem:[%s2619_s1 + $0x118] sm:$0xff]  }
  0x11   :  { %1786 = vmatpush3.bf16.msra.mxu1 %v1981_v15  ;;  %1765 = vmatprep.subr.bf16.mxu0 %v1982_v16  ;;  %v2014_v1 = vld [vmem:[%s2619_s1 + $0x198] sm:$0xff]   ;;  %v2015_v2 = vld [vmem:[%s2619_s1 + $0x160] sm:$0xff]   ;;  %v2019_v6 = vld [vmem:[%s2619_s1 + $0x168] sm:$0xff]  }
  0x12   :  { %1787 = vmatprep.subr.bf16.mxu1 %v1983_v17  ;;  %v337_v56 = vcombine.high %v333_v50, %v333_v50  ;;  %1243 = vmatprep.mubr.bf16.mxu1 %v336_v53  ;;  %v2016_v3 = vld [vmem:[%s2619_s1 + $0x1e0] sm:$0xff]   ;;  %v2020_v7 = vld [vmem:[%s2619_s1 + $0x1e8] sm:$0xff]   ;;  %v2023_v10 = vld [vmem:[%s2619_s1 + $0x170] sm:$0xff]  }
  0x13   :  { %v2017_v4 = vld [vmem:[%s2619_s1 + $0x120] sm:$0xff]   ;;  %v2021_v8 = vld [vmem:[%s2619_s1 + $0x128] sm:$0xff]   ;;  %v2024_v11 = vld [vmem:[%s2619_s1 + $0x1f0] sm:$0xff]  }
  0x14   :  { %1766 = vmatpush3.bf16.msra.mxu0 %v1984_v18  ;;  %v2018_v5 = vld [vmem:[%s2619_s1 + $0x1a0] sm:$0xff]   ;;  %v2022_v9 = vld [vmem:[%s2619_s1 + $0x1a8] sm:$0xff]   ;;  %v2025_v12 = vld [vmem:[%s2619_s1 + $0x130] sm:$0xff]   ;;  %v319_v18 = vrot.slane %v2271_v43, %v2267_v41 }
  0x15   :  { %1788 = vmatpush3.bf16.msra.mxu1 %v1985_v19  ;;  %1767 = vmatprep.subr.bf16.mxu0 %v1986_v20  ;;  %v2026_v13 = vld [vmem:[%s2619_s1 + $0x1b0] sm:$0xff]   ;;  %v2027_v14 = vld [vmem:[%s2619_s1 + $0x178] sm:$0xff]   ;;  %v2031_v19 = vld [vmem:[%s2619_s1 + $0x240] sm:$0xff]  }
  0x16   :  { %1789 = vmatprep.subr.bf16.mxu1 %v1987_v21  ;;  %v2028_v15 = vld [vmem:[%s2619_s1 + $0x1f8] sm:$0xff]   ;;  %v2032_v20 = vld [vmem:[%s2619_s1 + $0x2c0] sm:$0xff]   ;;  %v2039_v28 = vld [vmem:[%s2619_s1 + $0x250] sm:$0xff]  }
  0x17   :  { %v2029_v16 = vld [vmem:[%s2619_s1 + $0x138] sm:$0xff]   ;;  %v2033_v21 = vld [vmem:[%s2619_s1 + $0x200] sm:$0xff]   ;;  %v2051_v40 = vld [vmem:[%s2619_s1 + $0x268] sm:$0xff]  }
  0x18   :  { %1768 = vmatpush3.bf16.msra.mxu0 %v1988_v22  ;;  %v2030_v17 = vld [vmem:[%s2619_s1 + $0x1b8] sm:$0xff]   ;;  %v2034_v22 = vld [vmem:[%s2619_s1 + $0x280] sm:$0xff]   ;;  %v2052_v42 = vld [vmem:[%s2619_s1 + $0x2e8] sm:$0xff]  }
  0x19   :  { %1790 = vmatpush3.bf16.msra.mxu1 %v1989_v23  ;;  %1769 = vmatprep.subr.bf16.mxu0 %v1990_v24  ;;  %v335_v23 = vcombine.high %v319_v18, %v319_v18  ;;  %v2035_v24 = vld [vmem:[%s2619_s1 + $0x248] sm:$0xff]   ;;  %v2044_v33 = vld [vmem:[%s2619_s1 + $0x2d8] sm:$0xff]   ;;  %v2047_v36 = vld [vmem:[%s2619_s1 + $0x260] sm:$0xff]  }
  0x1a   :  { %1791 = vmatprep.subr.bf16.mxu1 %v1991_v25  ;;  %v2036_v25 = vld [vmem:[%s2619_s1 + $0x2c8] sm:$0xff]   ;;  %v2045_v34 = vld [vmem:[%s2619_s1 + $0x218] sm:$0xff]   ;;  %v2048_v37 = vld [vmem:[%s2619_s1 + $0x2e0] sm:$0xff]  }
  0x1b   :  { %v2050_v39 = vld [vmem:[%s2619_s1 + $0x2a0] sm:$0xff]   ;;  %v2053_v43 = vld [vmem:[%s2619_s1 + $0x228] sm:$0xff]  }
  0x1c   :  { %1770 = vmatpush3.bf16.msra.mxu0 %v1992_v26  ;;  %v2037_v26 = vld [vmem:[%s2619_s1 + $0x208] sm:$0xff]  }
  0x1d   :  { %1792 = vmatpush3.bf16.msra.mxu1 %v1993_v27  ;;  %1771 = vmatprep.subr.bf16.mxu0 %v1994_v29  ;;  %v2038_v27 = vld [vmem:[%s2619_s1 + $0x288] sm:$0xff]   ;;  %v2040_v29 = vld [vmem:[%s2619_s1 + $0x2d0] sm:$0xff]  }
  0x1e   :  { %1793 = vmatprep.subr.bf16.mxu1 %v1995_v30  ;;  %v2041_v30 = vld [vmem:[%s2619_s1 + $0x210] sm:$0xff]   ;;  %v2054_v44 = vld [vmem:[%s2619_s1 + $0x2a8] sm:$0xff]  }
  0x1f   :  { %v23_v46 = vld [vmem:[%s2618_s0 + $0x8] sm:$0xff] }
  0x20   :  { %1772 = vmatpush3.bf16.msra.mxu0 %v1996_v31  ;;  %v2042_v31 = vld [vmem:[%s2619_s1 + $0x290] sm:$0xff]   ;;  %v345_v48 = vrot.slane %v23_v46, %v2267_v41 }
  0x21   :  { %1794 = vmatpush3.bf16.msra.mxu1 %v1997_v32  ;;  %1801 = vmatprep.subr.bf16.mxu0 %v1999_v35  ;;  %v2043_v32 = vld [vmem:[%s2619_s1 + $0x258] sm:$0xff]  }
  0x22   :  { %1823 = vmatprep.subr.bf16.mxu1 %v2000_v38  ;;  %v2046_v35 = vld [vmem:[%s2619_s1 + $0x298] sm:$0xff]   ;;  %v2049_v38 = vld [vmem:[%s2619_s1 + $0x220] sm:$0xff]  }
  0x23   :  { %1204 = vmatmul.mubr.bf16.vlgmr.msra.gmra.mrb[0].mxu0 %v312_v45  ;;  %v2055_v45 = vld [vmem:[%s2619_s1 + $0x270] sm:$0xff]  }
  0x24   :  { %1802 = vmatpush3.bf16.msra.mxu0 %v2001_v47  ;;  %1244 = vmatmul.mubr.bf16.vlgmr.msra.gmra.mrb[0].mxu1 %v334_v51  ;;  %v2056_v47 = vld [vmem:[%s2619_s1 + $0x2f0] sm:$0xff]  }
  0x25   :  { %1803 = vmatprep.subr.bf16.mxu0 %v2003_v52  ;;  %1824 = vmatpush3.bf16.msra.mxu1 %v2002_v49  ;;  %v338_v49 = vcombine.high %v23_v46, %v23_v46  ;;  %v2058_v51 = vld [vmem:[%s2619_s1 + $0x2b0] sm:$0xff]   ;;  %v353_v52 = vcombine.high %v345_v48, %v345_v48 }
  0x26   :  { %1283 = vmatprep.mubr.bf16.mxu0 %v333_v50  ;;  %1825 = vmatprep.subr.bf16.mxu1 %v2004_v54  ;;  %v2057_v50 = vld [vmem:[%s2619_s1 + $0x230] sm:$0xff]   ;;  %v2059_v54 = vld [vmem:[%s2619_s1 + $0x278] sm:$0xff]  }
  0x27   :  { %1323 = vmatprep.mubr.bf16.mxu1 %v337_v56  ;;  %v2459_v53 = vrot.slane %v338_v49, %v2267_v41  ;;  %v375_v56 = vrot.slane %v353_v52, %v2267_v41 }
  0x28   :  { %1804 = vmatpush3.bf16.msra.mxu0 %v2005_v55  ;;  %v2060_v55 = vld [vmem:[%s2619_s1 + $0x2f8] sm:$0xff]  }
  0x29   :  { %1805 = vmatprep.subr.bf16.mxu0 %v2007_v58  ;;  %1826 = vmatpush3.bf16.msra.mxu1 %v2006_v57  ;;  %v354_v57 = vcombine.high %v2459_v53, %v2459_v53  ;;  %v2061_v58 = vld [vmem:[%s2619_s1 + $0x238] sm:$0xff]  }
  0x2a   :  { %1827 = vmatprep.subr.bf16.mxu1 %v2008_v59  ;;  %v2062_v59 = vld [vmem:[%s2619_s1 + $0x2b8] sm:$0xff]  }
  0x2c   :  { %1806 = vmatpush3.bf16.msra.mxu0 %v2009_v60  ;;  %v385_v60 = vcombine.high %v375_v56, %v375_v56 }
  0x2d   :  { %1807 = vmatprep.subr.bf16.mxu0 %v2011_v62  ;;  %1828 = vmatpush3.bf16.msra.mxu1 %v2010_v61  ;;  %v361_v61 = vrot.slane %v345_v48, %v2267_v41  ;;  %v2063_v62 = vld [vmem:[%s2619_s1 + $0x340] sm:$0xff]  }
  0x2e   :  { %1829 = vmatprep.subr.bf16.mxu1 %v2012_v63  ;;  %v2064_v63 = vld [vmem:[%s2619_s1 + $0x3c0] sm:$0xff]  }
  0x30   :  { %1808 = vmatpush3.bf16.msra.mxu0 %v2013_v0  ;;  %v382_v0 = vrot.slane %v354_v57, %v2267_v41 }
  0x31   :  { %1809 = vmatprep.subr.bf16.mxu0 %v2015_v2  ;;  %1830 = vmatpush3.bf16.msra.mxu1 %v2014_v1  ;;  %v2065_v1 = vld [vmem:[%s2619_s1 + $0x300] sm:$0xff]  }
  0x32   :  { %1831 = vmatprep.subr.bf16.mxu1 %v2016_v3  ;;  %v2066_v2 = vld [vmem:[%s2619_s1 + $0x380] sm:$0xff]   ;;  %v383_v3 = vcombine.high %v361_v61, %v361_v61 }
  0x34   :  { %1810 = vmatpush3.bf16.msra.mxu0 %v2017_v4  ;;  %v2067_v4 = vld [vmem:[%s2619_s1 + $0x348] sm:$0xff]  }
  0x35   :  { %1811 = vmatprep.subr.bf16.mxu0 %v2019_v6  ;;  %1832 = vmatpush3.bf16.msra.mxu1 %v2018_v5  ;;  %v2068_v5 = vld [vmem:[%s2619_s1 + $0x3c8] sm:$0xff]   ;;  %v386_v6 = vcombine.high %v382_v0, %v382_v0 }
  0x36   :  { %1833 = vmatprep.subr.bf16.mxu1 %v2020_v7  ;;  %v2069_v7 = vld [vmem:[%s2619_s1 + $0x308] sm:$0xff]  }
  0x38   :  { %1812 = vmatpush3.bf16.msra.mxu0 %v2021_v8  ;;  %v2070_v8 = vld [vmem:[%s2619_s1 + $0x388] sm:$0xff]  }
  0x39   :  { %1813 = vmatprep.subr.bf16.mxu0 %v2023_v10  ;;  %1834 = vmatpush3.bf16.msra.mxu1 %v2022_v9  ;;  %v2071_v9 = vld [vmem:[%s2619_s1 + $0x350] sm:$0xff]  }
  0x3a   :  { %1835 = vmatprep.subr.bf16.mxu1 %v2024_v11  ;;  %v2072_v10 = vld [vmem:[%s2619_s1 + $0x3d0] sm:$0xff]  }
  0x3b   :  { %v2073_v11 = vld [vmem:[%s2619_s1 + $0x310] sm:$0xff]  }
  0x3c   :  { %1814 = vmatpush3.bf16.msra.mxu0 %v2025_v12  ;;  %v2074_v12 = vld [vmem:[%s2619_s1 + $0x390] sm:$0xff]  }
  0x3d   :  { %1815 = vmatprep.subr.bf16.mxu0 %v2027_v14  ;;  %1836 = vmatpush3.bf16.msra.mxu1 %v2026_v13  ;;  %v2075_v13 = vld [vmem:[%s2619_s1 + $0x358] sm:$0xff]  }
  0x3e   :  { %1837 = vmatprep.subr.bf16.mxu1 %v2028_v15  ;;  %v2076_v14 = vld [vmem:[%s2619_s1 + $0x3d8] sm:$0xff]  }
  0x3f   :  { %v2077_v15 = vld [vmem:[%s2619_s1 + $0x318] sm:$0xff]  }
  0x40   :  { %1816 = vmatpush3.bf16.msra.mxu0 %v2029_v16  ;;  %v2078_v16 = vld [vmem:[%s2619_s1 + $0x398] sm:$0xff]  }
  0x41   :  { %1845 = vmatprep.subr.bf16.mxu0 %v2031_v19  ;;  %1838 = vmatpush3.bf16.msra.mxu1 %v2030_v17  ;;  %v2079_v17 = vld [vmem:[%s2619_s1 + $0x360] sm:$0xff]  }
  0x42   :  { %1867 = vmatprep.subr.bf16.mxu1 %v2032_v20  ;;  %v2081_v19 = vld [vmem:[%s2619_s1 + $0x320] sm:$0xff]  }
  0x43   :  { %1284 = vmatmul.mubr.bf16.vlgmr.msra.gmra.mrb[4].mxu0 %v319_v18  ;;  %v2080_v18 = vld [vmem:[%s2619_s1 + $0x3e0] sm:$0xff]  }
  0x44   :  { %1846 = vmatpush3.bf16.msra.mxu0 %v2033_v21  ;;  %1324 = vmatmul.mubr.bf16.vlgmr.msra.gmra.mrb[4].mxu1 %v335_v23  ;;  %v2082_v20 = vld [vmem:[%s2619_s1 + $0x3a0] sm:$0xff]   ;;  %v2083_v21 = vld [vmem:[%s2619_s1 + $0x368] sm:$0xff]  }
  0x45   :  { %1847 = vmatprep.subr.bf16.mxu0 %v2035_v24  ;;  %1868 = vmatpush3.bf16.msra.mxu1 %v2034_v22  ;;  %v2084_v22 = vld [vmem:[%s2619_s1 + $0x3e8] sm:$0xff]  }
  0x46   :  { %1869 = vmatprep.subr.bf16.mxu1 %v2036_v25  ;;  %1363 = vmatprep.mubr.bf16.mxu0 %v375_v56  ;;  %v2085_v23 = vld [vmem:[%s2619_s1 + $0x328] sm:$0xff]   ;;  %v2087_v25 = vld [vmem:[%s2619_s1 + $0x370] sm:$0xff]  }
  0x47   :  { %1403 = vmatprep.mubr.bf16.mxu1 %v385_v60  ;;  %v2086_v24 = vld [vmem:[%s2619_s1 + $0x3a8] sm:$0xff]  }
  0x48   :  { %1848 = vmatpush3.bf16.msra.mxu0 %v2037_v26  ;;  %v2088_v26 = vld [vmem:[%s2619_s1 + $0x3f0] sm:$0xff]  }
  0x49   :  { %1849 = vmatprep.subr.bf16.mxu0 %v2039_v28  ;;  %1870 = vmatpush3.bf16.msra.mxu1 %v2038_v27  ;;  %v2089_v27 = vld [vmem:[%s2619_s1 + $0x330] sm:$0xff]  }
  0x4a   :  { %1871 = vmatprep.subr.bf16.mxu1 %v2040_v29  ;;  %v2090_v28 = vld [vmem:[%s2619_s1 + $0x3b0] sm:$0xff]   ;;  %v2091_v29 = vld [vmem:[%s2619_s1 + $0x378] sm:$0xff]  }
  0x4c   :  { %1850 = vmatpush3.bf16.msra.mxu0 %v2041_v30  ;;  %v2092_v30 = vld [vmem:[%s2619_s1 + $0x3f8] sm:$0xff]  }
  0x4d   :  { %1851 = vmatprep.subr.bf16.mxu0 %v2043_v32  ;;  %1872 = vmatpush3.bf16.msra.mxu1 %v2042_v31 }
  0x4e   :  { %1873 = vmatprep.subr.bf16.mxu1 %v2044_v33 }
  0x50   :  { %1852 = vmatpush3.bf16.msra.mxu0 %v2045_v34 }
  0x51   :  { %1853 = vmatprep.subr.bf16.mxu0 %v2047_v36  ;;  %1874 = vmatpush3.bf16.msra.mxu1 %v2046_v35 }
  0x52   :  { %1875 = vmatprep.subr.bf16.mxu1 %v2048_v37 }
  0x54   :  { %1854 = vmatpush3.bf16.msra.mxu0 %v2049_v38 }
  0x55   :  { %1855 = vmatprep.subr.bf16.mxu0 %v2051_v40  ;;  %1876 = vmatpush3.bf16.msra.mxu1 %v2050_v39 }
  0x56   :  { %1877 = vmatprep.subr.bf16.mxu1 %v2052_v42 }
  0x58   :  { %1856 = vmatpush3.bf16.msra.mxu0 %v2053_v43 }
  0x59   :  { %1857 = vmatprep.subr.bf16.mxu0 %v2055_v45  ;;  %1878 = vmatpush3.bf16.msra.mxu1 %v2054_v44 }
  0x5a   :  { %1879 = vmatprep.subr.bf16.mxu1 %v2056_v47 }
  0x5c   :  { %1858 = vmatpush3.bf16.msra.mxu0 %v2057_v50 }
  0x5d   :  { %1859 = vmatprep.subr.bf16.mxu0 %v2059_v54  ;;  %1880 = vmatpush3.bf16.msra.mxu1 %v2058_v51 }
  0x5e   :  { %1881 = vmatprep.subr.bf16.mxu1 %v2060_v55 }
  0x60   :  { %1860 = vmatpush3.bf16.msra.mxu0 %v2061_v58 }
  0x61   :  { %1889 = vmatprep.subr.bf16.mxu0 %v2063_v62  ;;  %1882 = vmatpush3.bf16.msra.mxu1 %v2062_v59 }
  0x62   :  { %1911 = vmatprep.subr.bf16.mxu1 %v2064_v63 }
  0x63   :  { %1364 = vmatmul.mubr.bf16.vlgmr.msra.gmra.mrb[8].mxu0 %v361_v61 }
  0x64   :  { %1890 = vmatpush3.bf16.msra.mxu0 %v2065_v1  ;;  %1443 = vmatprep.mubr.bf16.mxu0 %v382_v0 }
  0x65   :  { %1404 = vmatmul.mubr.bf16.vlgmr.msra.gmra.mrb[8].mxu1 %v383_v3  ;;  %1891 = vmatprep.subr.bf16.mxu0 %v2067_v4 }
  0x66   :  { %1912 = vmatpush3.bf16.msra.mxu1 %v2066_v2  ;;  %1483 = vmatprep.mubr.bf16.mxu1 %v386_v6 }
  0x67   :  { %1913 = vmatprep.subr.bf16.mxu1 %v2068_v5 }
  0x68   :  { %1892 = vmatpush3.bf16.msra.mxu0 %v2069_v7 }
  0x69   :  { %1893 = vmatprep.subr.bf16.mxu0 %v2071_v9 }
  0x6a   :  { %1914 = vmatpush3.bf16.msra.mxu1 %v2070_v8 }
  0x6b   :  { %1915 = vmatprep.subr.bf16.mxu1 %v2072_v10 }
  0x6c   :  { %1894 = vmatpush3.bf16.msra.mxu0 %v2073_v11 }
  0x6d   :  { %1895 = vmatprep.subr.bf16.mxu0 %v2075_v13 }
  0x6e   :  { %1916 = vmatpush3.bf16.msra.mxu1 %v2074_v12 }
  0x6f   :  { %1917 = vmatprep.subr.bf16.mxu1 %v2076_v14 }
  0x70   :  { %1896 = vmatpush3.bf16.msra.mxu0 %v2077_v15 }
  0x71   :  { %1897 = vmatprep.subr.bf16.mxu0 %v2079_v17 }
  0x72   :  { %1918 = vmatpush3.bf16.msra.mxu1 %v2078_v16 }
  0x73   :  { %1919 = vmatprep.subr.bf16.mxu1 %v2080_v18 }
  0x74   :  { %1898 = vmatpush3.bf16.msra.mxu0 %v2081_v19 }
  0x75   :  { %1899 = vmatprep.subr.bf16.mxu0 %v2083_v21 }
  0x76   :  { %1920 = vmatpush3.bf16.msra.mxu1 %v2082_v20 }
  0x77   :  { %1921 = vmatprep.subr.bf16.mxu1 %v2084_v22 }
  0x78   :  { %1900 = vmatpush3.bf16.msra.mxu0 %v2085_v23 }
  0x79   :  { %1901 = vmatprep.subr.bf16.mxu0 %v2087_v25 }
  0x7a   :  { %1922 = vmatpush3.bf16.msra.mxu1 %v2086_v24 }
  0x7b   :  { %1923 = vmatprep.subr.bf16.mxu1 %v2088_v26 }
  0x7c   :  { %10 = vsyncpa [#allocation3], 0  ;;  %1902 = vmatpush3.bf16.msra.mxu0 %v2089_v27  ;;  %v2093_v31 = vld [vmem:[%s2619_s1 + $0x338] sm:$0xff]   ;;  %v368_v32 = vrot.slane %v2459_v53, %v2267_v41  ;;  %v2096_v35 = vld [vmem:[%s2621_s3] sm:$0xff]   ;;  %v2129_v36 = vmov 0.0   ;;  %vm2130_vm0 = vmmov 0  }
  0x7d   :  { %1903 = vmatprep.subr.bf16.mxu0 %v2091_v29  ;;  %v2094_v33 = vld [vmem:[%s2619_s1 + $0x3b8] sm:$0xff]   ;;  %v2097_v41 = vld [vmem:[%s2621_s3 + $0x8] sm:$0xff]   ;;  %v2098_v37 = vld [vmem:[%s2621_s3 + $0x10] sm:$0xff]   ;;  %s2131_s16 = smov [#allocation2]  }
  0x7e   :  { %1924 = vmatpush3.bf16.msra.mxu1 %v2090_v28  ;;  %v384_v34 = vcombine.high %v368_v32, %v368_v32  ;;  %v2099_v38 = vld [vmem:[%s2621_s3 + $0x18] sm:$0xff]   ;;  %v2100_v39 = vld [vmem:[%s2621_s3 + $0x20] sm:$0xff]   ;;  %v2101_v40 = vld [vmem:[%s2621_s3 + $0x28] sm:$0xff]   ;;  %s1611_s17 = sshll.u32 %s2131_s16, 4  ;;  %s1612_s17 = int_to_ptr.vmem [resolvable:$true] %s1611_s17 }
  0x7f   :  { %1925 = vmatprep.subr.bf16.mxu1 %v2092_v30  ;;  %v2102_v42 = vld [vmem:[%s2621_s3 + $0x30] sm:$0xff]   ;;  %v2103_v43 = vld [vmem:[%s2621_s3 + $0x38] sm:$0xff]   ;;  %v1619_v45 = vld [vmem:[%s2620_s2] ss:$0 sm:$0xff]  ;;  %s2104_s18 = scalar_lea.vmem %s1612_s17, 32  ;;  %p2109_p1 = scmp.lt.s32.totalorder %s1612_s17, %s1612_s17 }
  0x80   :  { %1904 = vmatpush3.bf16.msra.mxu0 %v2093_v31  ;;  %v1748_v31 = vld [vmem:[%s2622_s4] ss:$0 sm:$0xff]  ;;  %p2105_p0 = scmp.ne.s32.totalorder %s1612_s17, %s2104_s18  ;;  %p2110_p2 = scmp.lt.s32.totalorder %s2104_s18, %s2104_s18 }
  0x81   :  { %1942 = vmatprep.subr.bf16.mxu0 %v2129_v36 }
  0x82   :  { %1926 = vmatpush3.bf16.msra.mxu1 %v2094_v33  ;;  %p2111_p3 = por %p2110_p2, %p2109_p1 }
  0x83   :  { %1444 = vmatmul.mubr.bf16.vlgmr.msra.gmra.mrb[12].mxu0 %v368_v32 }
  0x84   :  { %1943 = vmatpush3.bf16.msra.mxu0 %v2096_v35  ;;  %1958 = vmatprep.mubr.msk.bf16.mxu0 %vm2130_vm0, %v2129_v36  ;;  %p2112_p4 = pnand %p2111_p3, %p2105_p0 }
  0x85   :  { %1484 = vmatmul.mubr.bf16.vlgmr.msra.gmra.mrb[12].mxu1 %v384_v34  ;;  %1944 = vmatprep.subr.bf16.mxu0 %v2129_v36 }
  0x88   :  { %1945 = vmatpush3.bf16.msra.mxu0 %v2097_v41 }
  0x89   :  { %1946 = vmatprep.subr.bf16.mxu0 %v2129_v36 }
  0x8c   :  { %1947 = vmatpush3.bf16.msra.mxu0 %v2098_v37 }
  0x8d   :  { %1948 = vmatprep.subr.bf16.mxu0 %v2129_v36 }
  0x90   :  { %1949 = vmatpush3.bf16.msra.mxu0 %v2099_v38 }
  0x91   :  { %1950 = vmatprep.subr.bf16.mxu0 %v2129_v36 }
  0x94   :  { %1951 = vmatpush3.bf16.msra.mxu0 %v2100_v39 }
  0x95   :  { %1952 = vmatprep.subr.bf16.mxu0 %v2129_v36 }
  0x98   :  { %1953 = vmatpush3.bf16.msra.mxu0 %v2101_v40 }
  0x99   :  { %1954 = vmatprep.subr.bf16.mxu0 %v2129_v36 }
  0x9c   :  { %1955 = vmatpush3.bf16.msra.mxu0 %v2102_v42 }
  0x9d   :  { %1956 = vmatprep.subr.bf16.mxu0 %v2129_v36 }
  0xa0   :  { %1957 = vmatpush3.bf16.msra.mxu0 %v2103_v43 }
  0xf6   :  { %v1773_v44 = vpop.f32.mrb[0].mxu0 }
  0xf7   :  { %v1774_v46 = vpop.f32.mrb[1].mxu0  ;;  %v1795_v47 = vpop.f32.mrb[0].mxu1 }
  0xf8   :  { %v1775_v48 = vadd.f32 %v1774_v46, %v1773_v44  ;;  %v1776_v49 = vpop.f32.mrb[2].mxu0  ;;  %v1796_v50 = vpop.f32.mrb[1].mxu1 }
  0xf9   :  { %v1777_v51 = vpop.f32.mrb[3].mxu0  ;;  %v1797_v53 = vadd.f32 %v1796_v50, %v1795_v47  ;;  %v1798_v54 = vpop.f32.mrb[2].mxu1 }
  0xfa   :  { %v1206_v52 = vadd.f32 %v1775_v48, %v1619_v45  ;;  %v1799_v55 = vpop.f32.mrb[3].mxu1 }
  0xfc   :  { %v1246_v56 = vadd.f32 %v1797_v53, %v1206_v52 }
 0x116   :  { %v1817_v57 = vpop.f32.mrb[4].mxu0 }
 0x117   :  { %v1818_v58 = vpop.f32.mrb[5].mxu0  ;;  %v1839_v59 = vpop.f32.mrb[4].mxu1 }
 0x118   :  { %v1819_v60 = vadd.f32 %v1818_v58, %v1817_v57  ;;  %v1820_v61 = vpop.f32.mrb[6].mxu0  ;;  %v1840_v62 = vpop.f32.mrb[5].mxu1 }
 0x119   :  { %v1821_v63 = vpop.f32.mrb[7].mxu0  ;;  %v1841_v1 = vadd.f32 %v1840_v62, %v1839_v59  ;;  %v1842_v2 = vpop.f32.mrb[6].mxu1 }
 0x11a   :  { %v1286_v0 = vadd.f32 %v1819_v60, %v1246_v56  ;;  %v1843_v3 = vpop.f32.mrb[7].mxu1 }
 0x11c   :  { %v1326_v4 = vadd.f32 %v1841_v1, %v1286_v0 }
 0x136   :  { %v1861_v5 = vpop.f32.mrb[8].mxu0 }
 0x137   :  { %v1862_v6 = vpop.f32.mrb[9].mxu0 }
 0x138   :  { %v1883_v7 = vpop.f32.mrb[8].mxu1  ;;  %v1863_v8 = vadd.f32 %v1862_v6, %v1861_v5  ;;  %v1864_v9 = vpop.f32.mrb[10].mxu0 }
 0x139   :  { %v1884_v10 = vpop.f32.mrb[9].mxu1  ;;  %v1865_v11 = vpop.f32.mrb[11].mxu0 }
 0x13a   :  { %v1366_v12 = vadd.f32 %v1863_v8, %v1326_v4  ;;  %v1885_v13 = vadd.f32 %v1884_v10, %v1883_v7  ;;  %v1886_v14 = vpop.f32.mrb[10].mxu1 }
 0x13b   :  { %v1887_v15 = vpop.f32.mrb[11].mxu1 }
 0x13c   :  { %v1406_v16 = vadd.f32 %v1885_v13, %v1366_v12 }
 0x156   :  { %v1905_v17 = vpop.f32.mrb[12].mxu0 }
 0x157   :  { %v1906_v18 = vpop.f32.mrb[13].mxu0 }
 0x158   :  { %v1927_v19 = vpop.f32.mrb[12].mxu1  ;;  %v1907_v20 = vadd.f32 %v1906_v18, %v1905_v17  ;;  %v1908_v21 = vpop.f32.mrb[14].mxu0 }
 0x159   :  { %v1928_v22 = vpop.f32.mrb[13].mxu1  ;;  %v1909_v23 = vpop.f32.mrb[15].mxu0 }
 0x15a   :  { %v1446_v24 = vadd.f32 %v1907_v20, %v1406_v16  ;;  %v1929_v25 = vadd.f32 %v1928_v22, %v1927_v19  ;;  %v1930_v26 = vpop.f32.mrb[14].mxu1 }
 0x15b   :  { %v1931_v27 = vpop.f32.mrb[15].mxu1 }
 0x15c   :  { %v1486_v28 = vadd.f32 %v1929_v25, %v1446_v24 }
 0x15e   :  { %v1491_v29 = vmax.f32 %v1486_v28, 0.0 }
 0x160   :  { %v1492_v30 = vpack.c.bf16 %v1491_v29, %v1491_v29 }
 0x162   :  { %1959 = vmatmul.mubr.bf16.vlgmr.msra.gmra.mrb[16].mxu0 %v1492_v30 }
 0x235   :  { %v1598_v32 = vpop.f32.mrb[16].mxu0 }
 0x236   :  { %v1599_v33 = vadd.f32 %v1748_v31, %v1598_v32  ;;  %v1960_v34 = vpop.f32.mrb[17].mxu0 }
 0x237   :  { %v1601_v35 = vpop.f32.mrb[18].mxu0 }
 0x238   :  { %1604 = vst [vmem:[#allocation2] sm:$0x3] %v1599_v33  ;;  %v1961_v36 = vpop.f32.mrb[19].mxu0 }
 0x239   :  { %2115 = shalt.err (!%p2112_p4)
}
 0x23a   :  { %s2116_s4 = scalar_lea.hbm %s2623_s5, 32 }
 0x23b   :  { %p2117_p5 = scmp.ne.s32.totalorder %s2623_s5, %s2116_s4  ;;  %p2120_p6 = scmp.lt.u32.totalorder %s2116_s4, %s2623_s5 }
 0x23d   :  { %p2122_p7 = pnand %p2120_p6, %p2117_p5 }
 0x23f   :  { %2125 = shalt.err (!%p2122_p7)
}
 0x240   :  { %1614 = dma.vmem_to_hbm [thread:$0]  %s1612_s17, 32, %s2623_s5, [#allocation3]  }
 0x241   :  { %2126 = dma.done.wait [#allocation3], 32  }
 0x242   :  { %2127 = vsyncadd [#allocation3], 4294967264 }
 0x243   :  { %1618 = vsyncpa [#allocation3], 1 }

</bundles_post_ra>
